<compile_context>
chip_gen: v7x
topology: tpu7x:2x2x1
jax: 0.10.0
libtpu: 0.0.40
codegen_flags: <defaults>
</compile_context>

<pallas_src>
import functools
import math

import jax
import jax.numpy as jnp
from jax.experimental import pallas as pl
from jax.experimental.pallas import tpu as pltpu


_LN_EPS = 1e-6            # the module uses eps=1e-06 for every LayerNorm

_SEQ_TILE = 512           # default max sequence-row tile
_FF_ROW_TILE = 1024       # FFN row tile target (rows = B*L flattened)
_FF_TILE = 2048           # max d_ff tile
_SCORE_BUDGET_BYTES = 16 * 1024 * 1024      # cap on f32 (H, tq, Lk) score tensor
_FF_WEIGHT_BUDGET_BYTES = 32 * 1024 * 1024  # double-buffered bf16 w1+w2 tiles


# ----------------------------------------------------------------------------
# Small helpers
# ----------------------------------------------------------------------------
@functools.lru_cache(maxsize=None)
def _vmem_limit_bytes():
    cap = 64 * 1024 * 1024
    try:
        info = pltpu.get_tpu_info()
        cap = int(getattr(info, "vmem_capacity_bytes", cap))
    except Exception:
        pass
    # ~7/8 of physical VMEM, never more than 100 MiB (v6e) -> ~56 MiB on v7x.
    return int(min(cap * 7 // 8, 100 * 1024 * 1024))


def _cparams(sem):
    return pltpu.CompilerParams(dimension_semantics=sem,
                                vmem_limit_bytes=_vmem_limit_bytes())


def _largest_divisor(n, target, multiple):
    """Largest d | n with d <= target and d % multiple == 0; else n itself."""
    if n <= target:
        return n
    for d in range(min(target, n), 0, -1):
        if n % d == 0 and d % multiple == 0:
            return d
    # TODO(synk): pad awkward sizes instead of falling back to one full block.
    return n


# ----------------------------------------------------------------------------
# In-kernel math helpers
# ----------------------------------------------------------------------------
_SQRT_2_OVER_PI = 0.7978845608028654


def _gelu(x):
    # tanh-approx GELU (torch GELU() is exact erf; max abs deviation ~1e-3).
    return 0.5 * x * (1.0 + jnp.tanh(_SQRT_2_OVER_PI * (x + 0.044715 * x * x * x)))


def _layernorm(x, gamma, beta, eps=_LN_EPS):
    # x: (rows, D); gamma/beta: (1, D); biased variance over the last axis.
    mean = jnp.mean(x, axis=-1, keepdims=True)
    var = jnp.mean(jnp.square(x - mean), axis=-1, keepdims=True)
    return (x - mean) * jax.lax.rsqrt(var + eps) * gamma + beta


def _softmax_last(s):
    # s: f32; softmax over the last axis.  Approx EUP reciprocal on the small
    # per-row denominator + one Newton step for near-exact normalization.
    s = s - jnp.max(s, axis=-1, keepdims=True)
    p = jnp.exp(s)
    denom = jnp.sum(p, axis=-1, keepdims=True)
    r = pl.reciprocal(denom, approx=True)
    r = r * (2.0 - denom * r)
    return p * r


# ----------------------------------------------------------------------------
# Pallas kernels
# ----------------------------------------------------------------------------
def layernorm_kernel(x_ref, g_ref, b_ref, o_ref):
    x = x_ref[...].astype(jnp.float32)                     # (rows, D)
    o_ref[...] = _layernorm(x, g_ref[...], b_ref[...]).astype(o_ref.dtype)


def posenc_kernel(x_ref, w0_ref, w1_ref, w2_ref, bias_ref, g_ref, b_ref, o_ref):
    # LearnablePositionalEncoder: ln(gelu(conv1d(x, k=3, pad=1)) + x); LN fused.
    # Conv folded into three accumulated (L,D)@(D,D) matmuls (no (L,3D) concat).
    x = x_ref[0].astype(jnp.float32)                       # (L, D)
    L, D = x.shape
    mm = w0_ref.dtype
    xb = x.astype(mm)
    zero = jnp.zeros((1, D), mm)
    x_prev = jnp.concatenate([zero, xb[: L - 1, :]], axis=0)   # x[t-1], row 0 zero-padded
    x_next = jnp.concatenate([xb[1:, :], zero], axis=0)        # x[t+1], row L-1 zero-padded

    y = jnp.dot(xb, w1_ref[...], preferred_element_type=jnp.float32)
    y += jnp.dot(x_prev, w0_ref[...], preferred_element_type=jnp.float32)
    y += jnp.dot(x_next, w2_ref[...], preferred_element_type=jnp.float32)
    y += bias_ref[...]
    y = _gelu(y)
    o_ref[0] = _layernorm(y + x, g_ref[...], b_ref[...]).astype(o_ref.dtype)
    # TODO(synk): tile the sequence with a 1-row halo for very long L.


def kv_proj_kernel(kv_ref, g_ref, b_ref, wkv_ref, bkv_ref, k_ref, v_ref, *, apply_ln):
    # Per-layer K/V LayerNorm + fused (Lk,D)@(D,2D) projection, hoisted out of
    # the per-query-tile attention loop (computed exactly once per layer).
    kv = kv_ref[0].astype(jnp.float32)                     # (tk, D)
    if apply_ln:
        kv = _layernorm(kv, g_ref[...], b_ref[...])
    mm = wkv_ref.dtype
    kvp = jnp.dot(kv.astype(mm), wkv_ref[...],
                  preferred_element_type=jnp.float32) + bkv_ref[...]   # (tk, 2D)
    D = kv.shape[-1]
    k_ref[0] = kvp[:, :D].astype(k_ref.dtype)
    v_ref[0] = kvp[:, D:].astype(v_ref.dtype)


def mha_kernel(*refs, num_heads, kv_projected, ln_kv, causal, use_mask_tensor, q_tile):
    # Multi-head attention with the preceding LayerNorm (query side) and the
    # residual add fused in.  One (batch, query-tile) per grid step.
    it = iter(refs)
    xres_ref = next(it)
    if kv_projected:
        k_ref = next(it)
        v_ref = next(it)
    else:
        kv_ref = next(it)
    mask_ref = next(it) if use_mask_tensor else None
    g_ref = next(it)
    b_ref = next(it)
    wq_ref = next(it)
    bq_ref = next(it)
    if not kv_projected:
        wkv_ref = next(it)
        bkv_ref = next(it)
    wo_ref = next(it)
    bo_ref = next(it)
    o_ref = next(it)

    x_res = xres_ref[0].astype(jnp.float32)                # (tq, D) pre-LN residual
    x_ln = _layernorm(x_res, g_ref[...], b_ref[...])       # query source
    mm = wq_ref.dtype
    tq, D = x_res.shape
    H = num_heads
    hd = D // H

    # Q projection (the 1/sqrt(hd) softmax scale is folded into wq/bq at prep).
    q = jnp.dot(x_ln.astype(mm), wq_ref[...],
                preferred_element_type=jnp.float32) + bq_ref[...]      # (tq, D)

    if kv_projected:
        k = k_ref[0]                                       # (Lk, D) already mm dtype
        v = v_ref[0]
    else:
        kv_in = kv_ref[0].astype(jnp.float32)              # (Lk, D)
        kv_ln = _layernorm(kv_in, g_ref[...], b_ref[...]) if ln_kv else kv_in
        kvp = jnp.dot(kv_ln.astype(mm), wkv_ref[...],
                      preferred_element_type=jnp.float32) + bkv_ref[...]   # (Lk, 2D)
        k = kvp[:, :D]
        v = kvp[:, D:]
    Lk = k.shape[0]

    # Head split via reshape + major-axis transpose (no per-head lane slices).
    q3 = jnp.transpose(q.astype(mm).reshape(tq, H, hd), (1, 0, 2))     # (H, tq, hd)
    k3 = jnp.transpose(k.astype(mm).reshape(Lk, H, hd), (1, 0, 2))     # (H, Lk, hd)
    v3 = jnp.transpose(v.astype(mm).reshape(Lk, H, hd), (1, 0, 2))

    s = jnp.einsum("hqd,hkd->hqk", q3, k3,
                   preferred_element_type=jnp.float32)                 # (H, tq, Lk)
    if use_mask_tensor:
        s = s + mask_ref[...].astype(jnp.float32)[None, :, :]
    if causal:
        q_pos = q_tile * pl.program_id(1) + jax.lax.broadcasted_iota(
            jnp.int32, (tq, Lk), 0)
        k_pos = jax.lax.broadcasted_iota(jnp.int32, (tq, Lk), 1)
        s = s + jnp.where(k_pos <= q_pos, 0.0, -1e9)[None, :, :]
    p = _softmax_last(s)
    # TODO(synk): flash-style KV-axis tiling (online softmax) for very long Lk.

    heads = jnp.einsum("hqk,hkd->hqd", p.astype(mm), v3,
                       preferred_element_type=jnp.float32)             # (H, tq, hd)
    cat = jnp.transpose(heads, (1, 0, 2)).reshape(tq, D)               # (tq, D)
    out = jnp.dot(cat.astype(mm), wo_ref[...],
                  preferred_element_type=jnp.float32) + bo_ref[...]
    o_ref[0] = (x_res + out).astype(o_ref.dtype)


def ffn_kernel(*refs, activation, fuse_final_ln):
    # FFN with the preceding LayerNorm and the residual fused; d_ff reduction-
    # tiled on the last ("arbitrary") grid axis with a resident f32 accumulator.
    # For the last decoder block the final decoder LayerNorm is fused into the
    # epilogue.
    if fuse_final_ln:
        (xres_ref, g_ref, b_ref, w1_ref, b1_ref, w2_ref, b2_ref,
         fg_ref, fb_ref, o_ref, acc_ref) = refs
    else:
        (xres_ref, g_ref, b_ref, w1_ref, b1_ref, w2_ref, b2_ref,
         o_ref, acc_ref) = refs

    ff_i = pl.program_id(1)
    n_ff = pl.num_programs(1)

    x = xres_ref[...].astype(jnp.float32)                  # (trow, D)
    xn = _layernorm(x, g_ref[...], b_ref[...])
    mm = w1_ref.dtype
    h = jnp.dot(xn.astype(mm), w1_ref[...],
                preferred_element_type=jnp.float32) + b1_ref[...]      # (trow, tff)
    h = _gelu(h) if activation == "gelu" else jnp.maximum(h, 0.0)
    y = jnp.dot(h.astype(mm), w2_ref[...],
                preferred_element_type=jnp.float32)                    # (trow, D)

    @pl.when(ff_i == 0)
    def _():
        acc_ref[...] = x + b2_ref[...]                     # residual + fc2 bias (once)

    acc_ref[...] += y

    @pl.when(ff_i == n_ff - 1)
    def _():
        out = acc_ref[...]
        if fuse_final_ln:
            out = _layernorm(out, fg_ref[...], fb_ref[...])
        o_ref[...] = out.astype(o_ref.dtype)


# ----------------------------------------------------------------------------
# Wrappers (BlockSpecs / grids)
# ----------------------------------------------------------------------------
def layernorm(x, gamma, beta, out_dtype=None):
    # Standalone LN; only used when the decoder has zero blocks (otherwise the
    # final LN is fused into the last FFN epilogue).
    B, L, D = x.shape
    rows = B * L
    x2 = x.reshape(rows, D)
    trow = _largest_divisor(rows, _FF_ROW_TILE, 8)
    act = pl.BlockSpec((trow, D), lambda ri: (ri, 0))
    vec = pl.BlockSpec((1, D), lambda ri: (0, 0))
    out = pl.pallas_call(
        layernorm_kernel, grid=(rows // trow,),
        in_specs=[act, vec, vec], out_specs=act,
        out_shape=jax.ShapeDtypeStruct((rows, D), out_dtype or x.dtype),
        compiler_params=_cparams(("parallel",)),
    )(x2, gamma, beta)
    return out.reshape(B, L, D)


def pos_encoder(x, pos, *, out_dtype):
    # Conv needs +/-1 neighbours -> full sequence per grid step.
    B, L, D = x.shape
    act = pl.BlockSpec((1, L, D), lambda b: (b, 0, 0))
    mat = pl.BlockSpec((D, D), lambda b: (0, 0))
    vec = pl.BlockSpec((1, D), lambda b: (0, 0))
    return pl.pallas_call(
        posenc_kernel, grid=(B,),
        in_specs=[act, mat, mat, mat, vec, vec, vec], out_specs=act,
        out_shape=jax.ShapeDtypeStruct((B, L, D), out_dtype),
        compiler_params=_cparams(("parallel",)),
    )(x, pos["w0"], pos["w1"], pos["w2"], pos["b"], pos["ln_g"], pos["ln_b"])


def kv_project(kv, ln_g, ln_b, wkv, bkv, *, apply_ln, mm_dtype):
    B, Lk, D = kv.shape
    tk = _largest_divisor(Lk, _SEQ_TILE, 8)
    grid = (B, Lk // tk)
    kv_spec = pl.BlockSpec((1, tk, D), lambda b, i: (b, i, 0))
    vecD = pl.BlockSpec((1, D), lambda b, i: (0, 0))
    vec2D = pl.BlockSpec((1, 2 * D), lambda b, i: (0, 0))
    matKV = pl.BlockSpec((D, 2 * D), lambda b, i: (0, 0))
    kernel = functools.partial(kv_proj_kernel, apply_ln=apply_ln)
    return pl.pallas_call(
        kernel, grid=grid,
        in_specs=[kv_spec, vecD, vecD, matKV, vec2D],
        out_specs=(kv_spec, kv_spec),
        out_shape=(jax.ShapeDtypeStruct((B, Lk, D), mm_dtype),
                   jax.ShapeDtypeStruct((B, Lk, D), mm_dtype)),
        compiler_params=_cparams(("parallel", "parallel")),
    )(kv, ln_g, ln_b, wkv, bkv)


def mha_block(x, kv, ln_g, ln_b, wq, bq, wkv, bkv, wo, bo, *,
              num_heads, ln_kv, causal=False, mask=None,
              out_dtype, seq_tile=None):
    B, L, D = x.shape
    Lk = kv.shape[1]
    H = num_heads
    assert D % H == 0
    assert not (causal and mask is not None)

    # Query tile: cap the f32 (H, tq, Lk) score tensor (v7x has 64 MiB VMEM).
    row_budget = max(8, (_SCORE_BUDGET_BYTES // (H * Lk * 4)) // 8 * 8)
    row_target = min(seq_tile or _SEQ_TILE, row_budget)
    tq = _largest_divisor(L, row_target, 8)
    n_q = L // tq

    # Hoist the K/V LayerNorm + projection out of the per-query-tile loop
    # whenever it would otherwise be recomputed (n_q > 1); fuse when n_q == 1.
    kv_projected = n_q > 1
    if kv_projected:
        k_arr, v_arr = kv_project(kv, ln_g, ln_b, wkv, bkv,
                                  apply_ln=ln_kv, mm_dtype=wq.dtype)

    xq_spec = pl.BlockSpec((1, tq, D), lambda b, qi: (b, qi, 0))
    kvfull = pl.BlockSpec((1, Lk, D), lambda b, qi: (b, 0, 0))
    vecD = pl.BlockSpec((1, D), lambda b, qi: (0, 0))
    vec2D = pl.BlockSpec((1, 2 * D), lambda b, qi: (0, 0))
    matD = pl.BlockSpec((D, D), lambda b, qi: (0, 0))
    matKV = pl.BlockSpec((D, 2 * D), lambda b, qi: (0, 0))

    in_specs = [xq_spec]
    args = [x]
    if kv_projected:
        in_specs += [kvfull, kvfull]
        args += [k_arr, v_arr]
    else:
        in_specs += [kvfull]
        args += [kv]
    use_mask_tensor = mask is not None
    if use_mask_tensor:
        in_specs.append(pl.BlockSpec((tq, Lk), lambda b, qi: (qi, 0)))
        args.append(mask)
    in_specs += [vecD, vecD, matD, vecD]
    args += [ln_g, ln_b, wq, bq]
    if not kv_projected:
        in_specs += [matKV, vec2D]
        args += [wkv, bkv]
    in_specs += [matD, vecD]
    args += [wo, bo]

    kernel = functools.partial(
        mha_kernel, num_heads=H, kv_projected=kv_projected, ln_kv=ln_kv,
        causal=causal, use_mask_tensor=use_mask_tensor, q_tile=tq)
    return pl.pallas_call(
        kernel, grid=(B, n_q),
        in_specs=in_specs, out_specs=xq_spec,
        out_shape=jax.ShapeDtypeStruct((B, L, D), out_dtype),
        compiler_params=_cparams(("parallel", "parallel")),
    )(*args)


def ffn_block(x, ln_g, ln_b, w1, b1, w2, b2, *, activation,
              final_ln=None, out_dtype):
    B, L, D = x.shape
    d_ff = w1.shape[1]
    rows = B * L
    x2 = x.reshape(rows, D)                  # fold batch into the row axis

    trow = _largest_divisor(rows, _FF_ROW_TILE, 8)
    # VMEM-aware d_ff tile: double-buffered bf16 w1 + w2 tiles ~ 8*D*tff bytes.
    tff_target = min(_FF_TILE,
                     max(128, (_FF_WEIGHT_BUDGET_BYTES // (8 * D)) // 128 * 128))
    tff = _largest_divisor(d_ff, tff_target, 128)
    grid = (rows // trow, d_ff // tff)

    act = pl.BlockSpec((trow, D), lambda ri, fi: (ri, 0))
    vecD = pl.BlockSpec((1, D), lambda ri, fi: (0, 0))
    w1s = pl.BlockSpec((D, tff), lambda ri, fi: (0, fi))
    b1s = pl.BlockSpec((1, tff), lambda ri, fi: (0, fi))
    w2s = pl.BlockSpec((tff, D), lambda ri, fi: (fi, 0))

    fuse_final_ln = final_ln is not None
    in_specs = [act, vecD, vecD, w1s, b1s, w2s, vecD]
    args = [x2, ln_g, ln_b, w1, b1, w2, b2]
    if fuse_final_ln:
        in_specs += [vecD, vecD]
        args += [final_ln[0], final_ln[1]]

    kernel = functools.partial(ffn_kernel, activation=activation,
                               fuse_final_ln=fuse_final_ln)
    out = pl.pallas_call(
        kernel, grid=grid,
        in_specs=in_specs, out_specs=act,
        out_shape=jax.ShapeDtypeStruct((rows, D), out_dtype),
        scratch_shapes=[pltpu.VMEM((trow, D), jnp.float32)],
        compiler_params=_cparams(("parallel", "arbitrary")),
    )(*args)
    return out.reshape(B, L, D)


# ----------------------------------------------------------------------------
# One-time parameter preparation (transposes / fusions / bf16 cast / scale fold)
# ----------------------------------------------------------------------------
def prepare_params(params, *, num_heads, mm_dtype=jnp.bfloat16):
    D = params["conv_w"].shape[0]
    q_scale = 1.0 / math.sqrt(D // num_heads)

    def mm(w):
        return w.astype(mm_dtype)

    def vec(v):
        return v.reshape(1, -1).astype(jnp.float32)

    prepped = {
        "pos": {
            # Conv1d taps as three (D,D) matrices: y = x_prev@W0ᵀ + x@W1ᵀ + x_next@W2ᵀ + b
            "w0": mm(params["conv_w"][:, :, 0].T),
            "w1": mm(params["conv_w"][:, :, 1].T),
            "w2": mm(params["conv_w"][:, :, 2].T),
            "b": vec(params["conv_b"]),
            "ln_g": vec(params["pos_ln_g"]),
            "ln_b": vec(params["pos_ln_b"]),
        },
        "final_g": vec(params["final_g"]),
        "final_b": vec(params["final_b"]),
        "blocks": [],
    }
    for blk in params["blocks"]:
        pb = {}
        for name in ("ln1", "ln2", "ln3"):
            pb[f"{name}_g"] = vec(blk[f"{name}_g"])
            pb[f"{name}_b"] = vec(blk[f"{name}_b"])
        for pre in ("self", "cross"):
            in_w, in_b = blk[f"{pre}_in_w"], blk[f"{pre}_in_b"]
            # Q projection with the 1/sqrt(head_dim) softmax scale folded in.
            pb[f"{pre}_wq"] = mm(in_w[:D].T * q_scale)                  # (D, D)
            pb[f"{pre}_bq"] = vec(in_b[:D] * q_scale)
            pb[f"{pre}_wkv"] = mm(jnp.concatenate(                       # (D, 2D)
                [in_w[D:2 * D].T, in_w[2 * D:].T], axis=1))
            pb[f"{pre}_bkv"] = vec(in_b[D:])
            pb[f"{pre}_wo"] = mm(blk[f"{pre}_out_w"].T)                  # (D, D)
            pb[f"{pre}_bo"] = vec(blk[f"{pre}_out_b"])
        pb["fc1_w"] = mm(blk["fc1_w"].T)                                 # (D, d_ff)
        pb["fc1_b"] = vec(blk["fc1_b"])
        pb["fc2_w"] = mm(blk["fc2_w"].T)                                 # (d_ff, D)
        pb["fc2_b"] = vec(blk["fc2_b"])
        prepped["blocks"].append(pb)
    return prepped


# ----------------------------------------------------------------------------
# Full TransformerDecoder forward
# ----------------------------------------------------------------------------
def transformer_decoder_forward(prepped, x, e_output, d_mask=None, *,
                                num_heads, activation="gelu",
                                causal_mask=False, act_dtype=jnp.bfloat16,
                                seq_tile=None):
    # causal_mask=True  -> the self-attention mask is generated in-kernel
    #                      (no (L,L) mask DMA); d_mask is ignored.
    # causal_mask=False -> d_mask is applied as an additive attention mask.
    out_dtype = x.dtype
    n_blocks = len(prepped["blocks"])

    # LearnablePositionalEncoder (conv k=3 p=1 + GELU + residual + LN fused);
    # dropout = identity.  Intermediate activations kept in bf16 in HBM
    # (small numerics shift vs. f32; LN/softmax/accumulation stay f32).
    x = pos_encoder(x, prepped["pos"], out_dtype=act_dtype)
    e_output = e_output.astype(act_dtype)
    self_mask = None if causal_mask else d_mask

    for i, blk in enumerate(prepped["blocks"]):
        is_last = i == n_blocks - 1
        # masked self-attention (ln1 fused; causal in-kernel or additive tensor mask)
        x = mha_block(x, x, blk["ln1_g"], blk["ln1_b"],
                      blk["self_wq"], blk["self_bq"], blk["self_wkv"], blk["self_bkv"],
                      blk["self_wo"], blk["self_bo"],
                      num_heads=num_heads, ln_kv=True,
                      causal=causal_mask, mask=self_mask,
                      out_dtype=act_dtype, seq_tile=seq_tile)
        # cross-attention over encoder output (ln2 fused on query side; no mask)
        x = mha_block(x, e_output, blk["ln2_g"], blk["ln2_b"],
                      blk["cross_wq"], blk["cross_bq"], blk["cross_wkv"], blk["cross_bkv"],
                      blk["cross_wo"], blk["cross_bo"],
                      num_heads=num_heads, ln_kv=False,
                      causal=False, mask=None,
                      out_dtype=act_dtype, seq_tile=seq_tile)
        # feed-forward (ln3 fused, d_ff reduction-tiled); the decoder's final
        # LayerNorm is fused into the last block's FFN epilogue.
        x = ffn_block(x, blk["ln3_g"], blk["ln3_b"],
                      blk["fc1_w"], blk["fc1_b"], blk["fc2_w"], blk["fc2_b"],
                      activation=activation,
                      final_ln=(prepped["final_g"], prepped["final_b"]) if is_last else None,
                      out_dtype=out_dtype if is_last else act_dtype)

    if n_blocks == 0:
        x = layernorm(x, prepped["final_g"], prepped["final_b"], out_dtype=out_dtype)
    return x


# ----------------------------------------------------------------------------
# Deterministic parameter initialization (shapes follow the PyTorch module)
# ----------------------------------------------------------------------------
def init_params(key, num_blocks, d_model, d_ff):
    keys = iter(jax.random.split(key, 16 + 16 * num_blocks))

    def nrm(shape, scale=0.05):
        return (scale * jax.random.normal(next(keys), shape)).astype(jnp.float32)

    params = {
        "conv_w": nrm((d_model, d_model, 3)),     # Conv1d weight (out, in, k)
        "conv_b": nrm((d_model,)),
        "pos_ln_g": jnp.ones((d_model,), jnp.float32),
        "pos_ln_b": jnp.zeros((d_model,), jnp.float32),
        "final_g": jnp.ones((d_model,), jnp.float32),
        "final_b": jnp.zeros((d_model,), jnp.float32),
        "blocks": [],
    }
    for _ in range(num_blocks):
        blk = {}
        for name in ("ln1", "ln2", "ln3"):
            blk[f"{name}_g"] = jnp.ones((d_model,), jnp.float32)
            blk[f"{name}_b"] = jnp.zeros((d_model,), jnp.float32)
        for pre in ("self", "cross"):
            blk[f"{pre}_in_w"] = nrm((3 * d_model, d_model))   # MHA in_proj_weight
            blk[f"{pre}_in_b"] = nrm((3 * d_model,))
            blk[f"{pre}_out_w"] = nrm((d_model, d_model))      # MHA out_proj
            blk[f"{pre}_out_b"] = nrm((d_model,))
        blk["fc1_w"] = nrm((d_ff, d_model))                    # Linear(d_model, d_ff)
        blk["fc1_b"] = nrm((d_ff,))
        blk["fc2_w"] = nrm((d_model, d_ff))                    # Linear(d_ff, d_model)
        blk["fc2_b"] = nrm((d_model,))
        params["blocks"].append(blk)
    return params


# ----------------------------------------------------------------------------
if __name__ == "__main__":
    d_model, num_heads, d_ff = 32, 4, 64
    num_blocks = 2
    activation = "gelu"
    # dropout = 0.1 in the module; dropout is identity in inference mode.

    key = jax.random.PRNGKey(0)
    kx, ke, kp, kx2 = jax.random.split(key, 4)

    raw_params = init_params(kp, num_blocks, d_model, d_ff)
    prepped = prepare_params(raw_params, num_heads=num_heads, mm_dtype=jnp.bfloat16)

    fwd_mask = jax.jit(functools.partial(
        transformer_decoder_forward, num_heads=num_heads, activation=activation,
        causal_mask=False))
    fwd_causal = jax.jit(functools.partial(
        transformer_decoder_forward, num_heads=num_heads, activation=activation,
        causal_mask=True))
    fwd_causal_tiled = jax.jit(functools.partial(
        transformer_decoder_forward, num_heads=num_heads, activation=activation,
        causal_mask=True, seq_tile=8))

    # --- config 1: small shapes, single query tile (fused KV projection) -----
    B, L, L_enc = 2, 8, 12
    x = jax.random.normal(kx, (B, L, d_model), jnp.float32)
    e_output = jax.random.normal(ke, (B, L_enc, d_model), jnp.float32)
    d_mask = jnp.where(jnp.tril(jnp.ones((L, L), jnp.bool_)), 0.0, -1e9).astype(jnp.float32)

    out1 = jax.block_until_ready(fwd_mask(prepped, x, e_output, d_mask))
    out1c = jax.block_until_ready(fwd_causal(prepped, x, e_output))
    assert out1.shape == (B, L, d_model), out1.shape
    assert bool(jnp.all(jnp.isfinite(out1)))
    # in-kernel causal mask must match the explicit additive causal tensor mask
    assert bool(jnp.allclose(out1, out1c, atol=1e-3, rtol=1e-3)), \
        float(jnp.max(jnp.abs(out1 - out1c)))

    # --- config 2: two query tiles -> hoisted per-layer KV projection path ---
    B2, L2 = 2, 16
    x2 = jax.random.normal(kx2, (B2, L2, d_model), jnp.float32)
    out2 = jax.block_until_ready(fwd_causal_tiled(prepped, x2, e_output))
    assert out2.shape == (B2, L2, d_model), out2.shape
    assert bool(jnp.all(jnp.isfinite(out2)))

    print("KERNEL_OK")
</pallas_src>

<mosaic_0001>
module attributes {stable_mosaic.version = 11 : i64} {
  func.func @mha_kernel(%arg0: i32, %arg1: i32, %arg2: memref<1x8x32xbf16, #tpu.memory_space<vmem>>, %arg3: memref<1x12x32xbf16, #tpu.memory_space<vmem>>, %arg4: memref<1x32xf32, #tpu.memory_space<vmem>>, %arg5: memref<1x32xf32, #tpu.memory_space<vmem>>, %arg6: memref<32x32xbf16, #tpu.memory_space<vmem>>, %arg7: memref<1x32xf32, #tpu.memory_space<vmem>>, %arg8: memref<32x64xbf16, #tpu.memory_space<vmem>>, %arg9: memref<1x64xf32, #tpu.memory_space<vmem>>, %arg10: memref<32x32xbf16, #tpu.memory_space<vmem>>, %arg11: memref<1x32xf32, #tpu.memory_space<vmem>>, %arg12: memref<1x8x32xbf16, #tpu.memory_space<vmem>>) attributes {dimension_semantics = [#tpu.dimension_semantics<parallel>, #tpu.dimension_semantics<parallel>], iteration_bounds = array<i64: 2, 1>, scalar_prefetch = 0 : i64, scratch_operands = 0 : i64, tpu.core_type = #tpu.core_type<tc>, window_params = [{transform_indices = @transform_0, window_bounds = array<i64: 1, 8, 32>}, {transform_indices = @transform_1, window_bounds = array<i64: 1, 12, 32>}, {pipeline_mode = #tpu.pipeline_mode<synchronous>, transform_indices = @transform_2, window_bounds = array<i64: 1, 32>}, {pipeline_mode = #tpu.pipeline_mode<synchronous>, transform_indices = @transform_3, window_bounds = array<i64: 1, 32>}, {pipeline_mode = #tpu.pipeline_mode<synchronous>, transform_indices = @transform_4, window_bounds = array<i64: 32, 32>}, {pipeline_mode = #tpu.pipeline_mode<synchronous>, transform_indices = @transform_5, window_bounds = array<i64: 1, 32>}, {pipeline_mode = #tpu.pipeline_mode<synchronous>, transform_indices = @transform_6, window_bounds = array<i64: 32, 64>}, {pipeline_mode = #tpu.pipeline_mode<synchronous>, transform_indices = @transform_7, window_bounds = array<i64: 1, 64>}, {pipeline_mode = #tpu.pipeline_mode<synchronous>, transform_indices = @transform_8, window_bounds = array<i64: 32, 32>}, {pipeline_mode = #tpu.pipeline_mode<synchronous>, transform_indices = @transform_9, window_bounds = array<i64: 1, 32>}, {transform_indices = @transform_10, window_bounds = array<i64: 1, 8, 32>}]} {
    %c0 = arith.constant 0 : index
    %c0_0 = arith.constant 0 : index
    %c0_1 = arith.constant 0 : index
    %0 = vector.load %arg2[%c0, %c0_0, %c0_1] : memref<1x8x32xbf16, #tpu.memory_space<vmem>>, vector<1x8x32xbf16>
    %1 = vector.shape_cast %0 : vector<1x8x32xbf16> to vector<8x32xbf16>
    %2 = arith.extf %1 : vector<8x32xbf16> to vector<8x32xf32>
    %c0_2 = arith.constant 0 : index
    %c0_3 = arith.constant 0 : index
    %3 = vector.load %arg4[%c0_2, %c0_3] : memref<1x32xf32, #tpu.memory_space<vmem>>, vector<1x32xf32>
    %c0_4 = arith.constant 0 : index
    %c0_5 = arith.constant 0 : index
    %4 = vector.load %arg5[%c0_4, %c0_5] : memref<1x32xf32, #tpu.memory_space<vmem>>, vector<1x32xf32>
    %cst = arith.constant dense<0.000000e+00> : vector<8xf32>
    %5 = vector.multi_reduction <add>, %2, %cst [1] : vector<8x32xf32> to vector<8xf32>
    %6 = vector.shape_cast %5 : vector<8xf32> to vector<8x1xf32>
    %cst_6 = arith.constant 3.200000e+01 : f32
    %7 = vector.broadcast %cst_6 : f32 to vector<8x1xf32>
    %8 = arith.divf %6, %7 : vector<8x1xf32>
    %9 = vector.broadcast %8 : vector<8x1xf32> to vector<8x32xf32>
    %10 = arith.subf %2, %9 : vector<8x32xf32>
    %11 = arith.mulf %10, %10 : vector<8x32xf32>
    %cst_7 = arith.constant dense<0.000000e+00> : vector<8xf32>
    %12 = vector.multi_reduction <add>, %11, %cst_7 [1] : vector<8x32xf32> to vector<8xf32>
    %13 = vector.shape_cast %12 : vector<8xf32> to vector<8x1xf32>
    %cst_8 = arith.constant 3.200000e+01 : f32
    %14 = vector.broadcast %cst_8 : f32 to vector<8x1xf32>
    %15 = arith.divf %13, %14 : vector<8x1xf32>
    %16 = vector.broadcast %8 : vector<8x1xf32> to vector<8x32xf32>
    %17 = arith.subf %2, %16 : vector<8x32xf32>
    %cst_9 = arith.constant 9.99999997E-7 : f32
    %18 = vector.broadcast %cst_9 : f32 to vector<8x1xf32>
    %19 = arith.addf %15, %18 : vector<8x1xf32>
    %20 = math.rsqrt %19 : vector<8x1xf32>
    %21 = vector.broadcast %20 : vector<8x1xf32> to vector<8x32xf32>
    %22 = arith.mulf %17, %21 : vector<8x32xf32>
    %23 = vector.broadcast %3 : vector<1x32xf32> to vector<8x32xf32>
    %24 = arith.mulf %22, %23 : vector<8x32xf32>
    %25 = vector.broadcast %4 : vector<1x32xf32> to vector<8x32xf32>
    %26 = arith.addf %24, %25 : vector<8x32xf32>
    %27 = arith.truncf %26 : vector<8x32xf32> to vector<8x32xbf16>
    %c0_10 = arith.constant 0 : index
    %c0_11 = arith.constant 0 : index
    %28 = vector.load %arg6[%c0_10, %c0_11] : memref<32x32xbf16, #tpu.memory_space<vmem>>, vector<32x32xbf16>
    %cst_12 = arith.constant dense<0.000000e+00> : vector<8x32xf32>
    %29 = tpu.matmul %27, %28, %cst_12 {dimension_numbers = #tpu.dot_dimension_numbers<[1], [0], [0], [1], [0, 0, 1, 1], [], []>} : vector<8x32xbf16>, vector<32x32xbf16>, vector<8x32xf32> -> vector<8x32xf32>
    %c0_13 = arith.constant 0 : index
    %c0_14 = arith.constant 0 : index
    %30 = vector.load %arg7[%c0_13, %c0_14] : memref<1x32xf32, #tpu.memory_space<vmem>>, vector<1x32xf32>
    %31 = vector.broadcast %30 : vector<1x32xf32> to vector<8x32xf32>
    %32 = arith.addf %29, %31 : vector<8x32xf32>
    %c0_15 = arith.constant 0 : index
    %c0_16 = arith.constant 0 : index
    %c0_17 = arith.constant 0 : index
    %33 = vector.load %arg3[%c0_15, %c0_16, %c0_17] : memref<1x12x32xbf16, #tpu.memory_space<vmem>>, vector<1x12x32xbf16>
    %34 = vector.shape_cast %33 : vector<1x12x32xbf16> to vector<12x32xbf16>
    %35 = arith.extf %34 : vector<12x32xbf16> to vector<12x32xf32>
    %36 = arith.truncf %35 : vector<12x32xf32> to vector<12x32xbf16>
    %c0_18 = arith.constant 0 : index
    %c0_19 = arith.constant 0 : index
    %37 = vector.load %arg8[%c0_18, %c0_19] : memref<32x64xbf16, #tpu.memory_space<vmem>>, vector<32x64xbf16>
    %cst_20 = arith.constant dense<0.000000e+00> : vector<12x64xf32>
    %38 = tpu.matmul %36, %37, %cst_20 {dimension_numbers = #tpu.dot_dimension_numbers<[1], [0], [0], [1], [0, 0, 1, 1], [], []>} : vector<12x32xbf16>, vector<32x64xbf16>, vector<12x64xf32> -> vector<12x64xf32>
    %c0_21 = arith.constant 0 : index
    %c0_22 = arith.constant 0 : index
    %39 = vector.load %arg9[%c0_21, %c0_22] : memref<1x64xf32, #tpu.memory_space<vmem>>, vector<1x64xf32>
    %40 = vector.broadcast %39 : vector<1x64xf32> to vector<12x64xf32>
    %41 = arith.addf %38, %40 : vector<12x64xf32>
    %42 = vector.extract_strided_slice %41 {offsets = [0, 0], sizes = [12, 32], strides = [1, 1]} : vector<12x64xf32> to vector<12x32xf32>
    %43 = vector.extract_strided_slice %41 {offsets = [0, 32], sizes = [12, 32], strides = [1, 1]} : vector<12x64xf32> to vector<12x32xf32>
    %44 = arith.truncf %32 : vector<8x32xf32> to vector<8x32xbf16>
    %45 = vector.shape_cast %44 : vector<8x32xbf16> to vector<8x4x8xbf16>
    %46 = tpu.transpose %45, [1, 0, 2] : vector<8x4x8xbf16> -> vector<4x8x8xbf16>
    %47 = arith.truncf %42 : vector<12x32xf32> to vector<12x32xbf16>
    %48 = vector.shape_cast %47 : vector<12x32xbf16> to vector<12x4x8xbf16>
    %49 = tpu.transpose %48, [1, 0, 2] : vector<12x4x8xbf16> -> vector<4x12x8xbf16>
    %50 = arith.truncf %43 : vector<12x32xf32> to vector<12x32xbf16>
    %51 = vector.shape_cast %50 : vector<12x32xbf16> to vector<12x4x8xbf16>
    %52 = tpu.transpose %51, [1, 0, 2] : vector<12x4x8xbf16> -> vector<4x12x8xbf16>
    "tpu.trace_start"() <{level = 10 : i32, message = "hqd,hkd->hqk"}> : () -> ()
    %cst_23 = arith.constant dense<0.000000e+00> : vector<4x8x12xf32>
    %53 = tpu.matmul %46, %49, %cst_23 {dimension_numbers = #tpu.dot_dimension_numbers<[2], [2], [1], [1], [0, 0, 0, 1, 1, 1], [0], [0]>} : vector<4x8x8xbf16>, vector<4x12x8xbf16>, vector<4x8x12xf32> -> vector<4x8x12xf32>
    "tpu.trace_stop"() : () -> ()
    %cst_24 = arith.constant dense<0xFF800000> : vector<4x8xf32>
    %54 = vector.multi_reduction <maximumf>, %53, %cst_24 [2] : vector<4x8x12xf32> to vector<4x8xf32>
    %55 = vector.shape_cast %54 : vector<4x8xf32> to vector<4x8x1xf32>
    %56 = vector.broadcast %55 : vector<4x8x1xf32> to vector<4x8x12xf32>
    %57 = arith.subf %53, %56 : vector<4x8x12xf32>
    %58 = math.exp %57 : vector<4x8x12xf32>
    %cst_25 = arith.constant dense<0.000000e+00> : vector<4x8xf32>
    %59 = vector.multi_reduction <add>, %58, %cst_25 [2] : vector<4x8x12xf32> to vector<4x8xf32>
    %60 = vector.shape_cast %59 : vector<4x8xf32> to vector<4x8x1xf32>
    %61 = tpu.reciprocal %60 {approx = true} : vector<4x8x1xf32> -> vector<4x8x1xf32>
    %62 = arith.mulf %60, %61 : vector<4x8x1xf32>
    %cst_26 = arith.constant 2.000000e+00 : f32
    %63 = vector.broadcast %cst_26 : f32 to vector<4x8x1xf32>
    %64 = arith.subf %63, %62 : vector<4x8x1xf32>
    %65 = arith.mulf %61, %64 : vector<4x8x1xf32>
    %66 = vector.broadcast %65 : vector<4x8x1xf32> to vector<4x8x12xf32>
    %67 = arith.mulf %58, %66 : vector<4x8x12xf32>
    %68 = arith.truncf %67 : vector<4x8x12xf32> to vector<4x8x12xbf16>
    "tpu.trace_start"() <{level = 10 : i32, message = "hqk,hkd->hqd"}> : () -> ()
    %cst_27 = arith.constant dense<0.000000e+00> : vector<4x8x8xf32>
    %69 = tpu.matmul %68, %52, %cst_27 {dimension_numbers = #tpu.dot_dimension_numbers<[2], [1], [1], [2], [0, 0, 0, 1, 1, 2], [0], [0]>} : vector<4x8x12xbf16>, vector<4x12x8xbf16>, vector<4x8x8xf32> -> vector<4x8x8xf32>
    "tpu.trace_stop"() : () -> ()
    %70 = tpu.transpose %69, [1, 0, 2] : vector<4x8x8xf32> -> vector<8x4x8xf32>
    %71 = vector.shape_cast %70 : vector<8x4x8xf32> to vector<8x32xf32>
    %72 = arith.truncf %71 : vector<8x32xf32> to vector<8x32xbf16>
    %c0_28 = arith.constant 0 : index
    %c0_29 = arith.constant 0 : index
    %73 = vector.load %arg10[%c0_28, %c0_29] : memref<32x32xbf16, #tpu.memory_space<vmem>>, vector<32x32xbf16>
    %cst_30 = arith.constant dense<0.000000e+00> : vector<8x32xf32>
    %74 = tpu.matmul %72, %73, %cst_30 {dimension_numbers = #tpu.dot_dimension_numbers<[1], [0], [0], [1], [0, 0, 1, 1], [], []>} : vector<8x32xbf16>, vector<32x32xbf16>, vector<8x32xf32> -> vector<8x32xf32>
    %c0_31 = arith.constant 0 : index
    %c0_32 = arith.constant 0 : index
    %75 = vector.load %arg11[%c0_31, %c0_32] : memref<1x32xf32, #tpu.memory_space<vmem>>, vector<1x32xf32>
    %76 = vector.broadcast %75 : vector<1x32xf32> to vector<8x32xf32>
    %77 = arith.addf %74, %76 : vector<8x32xf32>
    %78 = arith.addf %2, %77 : vector<8x32xf32>
    %79 = arith.truncf %78 : vector<8x32xf32> to vector<8x32xbf16>
    %c0_33 = arith.constant 0 : index
    %c0_34 = arith.constant 0 : index
    %c0_35 = arith.constant 0 : index
    %80 = vector.load %arg12[%c0_33, %c0_34, %c0_35] : memref<1x8x32xbf16, #tpu.memory_space<vmem>>, vector<1x8x32xbf16>
    %81 = vector.shape_cast %80 : vector<1x8x32xbf16> to vector<8x32xbf16>
    %82 = vector.shape_cast %79 : vector<8x32xbf16> to vector<1x8x32xbf16>
    tpu.vector_store %arg12[%c0_33, %c0_34, %c0_35], %82 {strides = array<i32>} : memref<1x8x32xbf16, #tpu.memory_space<vmem>>, vector<1x8x32xbf16>,
    return
  }
  func.func @transform_0(%arg0: i32, %arg1: i32) -> (i32, i32, i32) {
    %c0_i32 = arith.constant 0 : i32
    %c0_i32_0 = arith.constant 0 : i32
    return %arg0, %arg1, %c0_i32 : i32, i32, i32
  }
  func.func @transform_1(%arg0: i32, %arg1: i32) -> (i32, i32, i32) {
    %c0_i32 = arith.constant 0 : i32
    %c0_i32_0 = arith.constant 0 : i32
    %c0_i32_1 = arith.constant 0 : i32
    return %arg0, %c0_i32, %c0_i32_0 : i32, i32, i32
  }
  func.func @transform_2(%arg0: i32, %arg1: i32) -> (i32, i32) {
    %c0_i32 = arith.constant 0 : i32
    %c0_i32_0 = arith.constant 0 : i32
    %c0_i32_1 = arith.constant 0 : i32
    return %c0_i32, %c0_i32_0 : i32, i32
  }
  func.func @transform_3(%arg0: i32, %arg1: i32) -> (i32, i32) {
    %c0_i32 = arith.constant 0 : i32
    %c0_i32_0 = arith.constant 0 : i32
    %c0_i32_1 = arith.constant 0 : i32
    return %c0_i32, %c0_i32_0 : i32, i32
  }
  func.func @transform_4(%arg0: i32, %arg1: i32) -> (i32, i32) {
    %c0_i32 = arith.constant 0 : i32
    %c0_i32_0 = arith.constant 0 : i32
    %c0_i32_1 = arith.constant 0 : i32
    return %c0_i32, %c0_i32_0 : i32, i32
  }
  func.func @transform_5(%arg0: i32, %arg1: i32) -> (i32, i32) {
    %c0_i32 = arith.constant 0 : i32
    %c0_i32_0 = arith.constant 0 : i32
    %c0_i32_1 = arith.constant 0 : i32
    return %c0_i32, %c0_i32_0 : i32, i32
  }
  func.func @transform_6(%arg0: i32, %arg1: i32) -> (i32, i32) {
    %c0_i32 = arith.constant 0 : i32
    %c0_i32_0 = arith.constant 0 : i32
    %c0_i32_1 = arith.constant 0 : i32
    return %c0_i32, %c0_i32_0 : i32, i32
  }
  func.func @transform_7(%arg0: i32, %arg1: i32) -> (i32, i32) {
    %c0_i32 = arith.constant 0 : i32
    %c0_i32_0 = arith.constant 0 : i32
    %c0_i32_1 = arith.constant 0 : i32
    return %c0_i32, %c0_i32_0 : i32, i32
  }
  func.func @transform_8(%arg0: i32, %arg1: i32) -> (i32, i32) {
    %c0_i32 = arith.constant 0 : i32
    %c0_i32_0 = arith.constant 0 : i32
    %c0_i32_1 = arith.constant 0 : i32
    return %c0_i32, %c0_i32_0 : i32, i32
  }
  func.func @transform_9(%arg0: i32, %arg1: i32) -> (i32, i32) {
    %c0_i32 = arith.constant 0 : i32
    %c0_i32_0 = arith.constant 0 : i32
    %c0_i32_1 = arith.constant 0 : i32
    return %c0_i32, %c0_i32_0 : i32, i32
  }
  func.func @transform_10(%arg0: i32, %arg1: i32) -> (i32, i32, i32) {
    %c0_i32 = arith.constant 0 : i32
    %c0_i32_0 = arith.constant 0 : i32
    return %arg0, %arg1, %c0_i32 : i32, i32, i32
  }
}

module attributes {stable_mosaic.version = 11 : i64} {
  func.func @mha_kernel(%arg0: i32, %arg1: i32, %arg2: memref<1x8x32xbf16, #tpu.memory_space<vmem>>, %arg3: memref<1x8x32xbf16, #tpu.memory_space<vmem>>, %arg4: memref<8x8xf32, #tpu.memory_space<vmem>>, %arg5: memref<1x32xf32, #tpu.memory_space<vmem>>, %arg6: memref<1x32xf32, #tpu.memory_space<vmem>>, %arg7: memref<32x32xbf16, #tpu.memory_space<vmem>>, %arg8: memref<1x32xf32, #tpu.memory_space<vmem>>, %arg9: memref<32x64xbf16, #tpu.memory_space<vmem>>, %arg10: memref<1x64xf32, #tpu.memory_space<vmem>>, %arg11: memref<32x32xbf16, #tpu.memory_space<vmem>>, %arg12: memref<1x32xf32, #tpu.memory_space<vmem>>, %arg13: memref<1x8x32xbf16, #tpu.memory_space<vmem>>) attributes {dimension_semantics = [#tpu.dimension_semantics<parallel>, #tpu.dimension_semantics<parallel>], iteration_bounds = array<i64: 2, 1>, scalar_prefetch = 0 : i64, scratch_operands = 0 : i64, tpu.core_type = #tpu.core_type<tc>, window_params = [{transform_indices = @transform_0, window_bounds = array<i64: 1, 8, 32>}, {transform_indices = @transform_1, window_bounds = array<i64: 1, 8, 32>}, {transform_indices = @transform_2, window_bounds = array<i64: 8, 8>}, {pipeline_mode = #tpu.pipeline_mode<synchronous>, transform_indices = @transform_3, window_bounds = array<i64: 1, 32>}, {pipeline_mode = #tpu.pipeline_mode<synchronous>, transform_indices = @transform_4, window_bounds = array<i64: 1, 32>}, {pipeline_mode = #tpu.pipeline_mode<synchronous>, transform_indices = @transform_5, window_bounds = array<i64: 32, 32>}, {pipeline_mode = #tpu.pipeline_mode<synchronous>, transform_indices = @transform_6, window_bounds = array<i64: 1, 32>}, {pipeline_mode = #tpu.pipeline_mode<synchronous>, transform_indices = @transform_7, window_bounds = array<i64: 32, 64>}, {pipeline_mode = #tpu.pipeline_mode<synchronous>, transform_indices = @transform_8, window_bounds = array<i64: 1, 64>}, {pipeline_mode = #tpu.pipeline_mode<synchronous>, transform_indices = @transform_9, window_bounds = array<i64: 32, 32>}, {pipeline_mode = #tpu.pipeline_mode<synchronous>, transform_indices = @transform_10, window_bounds = array<i64: 1, 32>}, {transform_indices = @transform_11, window_bounds = array<i64: 1, 8, 32>}]} {
    %c0 = arith.constant 0 : index
    %c0_0 = arith.constant 0 : index
    %c0_1 = arith.constant 0 : index
    %0 = vector.load %arg2[%c0, %c0_0, %c0_1] : memref<1x8x32xbf16, #tpu.memory_space<vmem>>, vector<1x8x32xbf16>
    %1 = vector.shape_cast %0 : vector<1x8x32xbf16> to vector<8x32xbf16>
    %2 = arith.extf %1 : vector<8x32xbf16> to vector<8x32xf32>
    %c0_2 = arith.constant 0 : index
    %c0_3 = arith.constant 0 : index
    %3 = vector.load %arg5[%c0_2, %c0_3] : memref<1x32xf32, #tpu.memory_space<vmem>>, vector<1x32xf32>
    %c0_4 = arith.constant 0 : index
    %c0_5 = arith.constant 0 : index
    %4 = vector.load %arg6[%c0_4, %c0_5] : memref<1x32xf32, #tpu.memory_space<vmem>>, vector<1x32xf32>
    %cst = arith.constant dense<0.000000e+00> : vector<8xf32>
    %5 = vector.multi_reduction <add>, %2, %cst [1] : vector<8x32xf32> to vector<8xf32>
    %6 = vector.shape_cast %5 : vector<8xf32> to vector<8x1xf32>
    %cst_6 = arith.constant 3.200000e+01 : f32
    %7 = vector.broadcast %cst_6 : f32 to vector<8x1xf32>
    %8 = arith.divf %6, %7 : vector<8x1xf32>
    %9 = vector.broadcast %8 : vector<8x1xf32> to vector<8x32xf32>
    %10 = arith.subf %2, %9 : vector<8x32xf32>
    %11 = arith.mulf %10, %10 : vector<8x32xf32>
    %cst_7 = arith.constant dense<0.000000e+00> : vector<8xf32>
    %12 = vector.multi_reduction <add>, %11, %cst_7 [1] : vector<8x32xf32> to vector<8xf32>
    %13 = vector.shape_cast %12 : vector<8xf32> to vector<8x1xf32>
    %cst_8 = arith.constant 3.200000e+01 : f32
    %14 = vector.broadcast %cst_8 : f32 to vector<8x1xf32>
    %15 = arith.divf %13, %14 : vector<8x1xf32>
    %16 = vector.broadcast %8 : vector<8x1xf32> to vector<8x32xf32>
    %17 = arith.subf %2, %16 : vector<8x32xf32>
    %cst_9 = arith.constant 9.99999997E-7 : f32
    %18 = vector.broadcast %cst_9 : f32 to vector<8x1xf32>
    %19 = arith.addf %15, %18 : vector<8x1xf32>
    %20 = math.rsqrt %19 : vector<8x1xf32>
    %21 = vector.broadcast %20 : vector<8x1xf32> to vector<8x32xf32>
    %22 = arith.mulf %17, %21 : vector<8x32xf32>
    %23 = vector.broadcast %3 : vector<1x32xf32> to vector<8x32xf32>
    %24 = arith.mulf %22, %23 : vector<8x32xf32>
    %25 = vector.broadcast %4 : vector<1x32xf32> to vector<8x32xf32>
    %26 = arith.addf %24, %25 : vector<8x32xf32>
    %27 = arith.truncf %26 : vector<8x32xf32> to vector<8x32xbf16>
    %c0_10 = arith.constant 0 : index
    %c0_11 = arith.constant 0 : index
    %28 = vector.load %arg7[%c0_10, %c0_11] : memref<32x32xbf16, #tpu.memory_space<vmem>>, vector<32x32xbf16>
    %cst_12 = arith.constant dense<0.000000e+00> : vector<8x32xf32>
    %29 = tpu.matmul %27, %28, %cst_12 {dimension_numbers = #tpu.dot_dimension_numbers<[1], [0], [0], [1], [0, 0, 1, 1], [], []>} : vector<8x32xbf16>, vector<32x32xbf16>, vector<8x32xf32> -> vector<8x32xf32>
    %c0_13 = arith.constant 0 : index
    %c0_14 = arith.constant 0 : index
    %30 = vector.load %arg8[%c0_13, %c0_14] : memref<1x32xf32, #tpu.memory_space<vmem>>, vector<1x32xf32>
    %31 = vector.broadcast %30 : vector<1x32xf32> to vector<8x32xf32>
    %32 = arith.addf %29, %31 : vector<8x32xf32>
    %c0_15 = arith.constant 0 : index
    %c0_16 = arith.constant 0 : index
    %c0_17 = arith.constant 0 : index
    %33 = vector.load %arg3[%c0_15, %c0_16, %c0_17] : memref<1x8x32xbf16, #tpu.memory_space<vmem>>, vector<1x8x32xbf16>
    %34 = vector.shape_cast %33 : vector<1x8x32xbf16> to vector<8x32xbf16>
    %35 = arith.extf %34 : vector<8x32xbf16> to vector<8x32xf32>
    %c0_18 = arith.constant 0 : index
    %c0_19 = arith.constant 0 : index
    %36 = vector.load %arg5[%c0_18, %c0_19] : memref<1x32xf32, #tpu.memory_space<vmem>>, vector<1x32xf32>
    %c0_20 = arith.constant 0 : index
    %c0_21 = arith.constant 0 : index
    %37 = vector.load %arg6[%c0_20, %c0_21] : memref<1x32xf32, #tpu.memory_space<vmem>>, vector<1x32xf32>
    %cst_22 = arith.constant dense<0.000000e+00> : vector<8xf32>
    %38 = vector.multi_reduction <add>, %35, %cst_22 [1] : vector<8x32xf32> to vector<8xf32>
    %39 = vector.shape_cast %38 : vector<8xf32> to vector<8x1xf32>
    %cst_23 = arith.constant 3.200000e+01 : f32
    %40 = vector.broadcast %cst_23 : f32 to vector<8x1xf32>
    %41 = arith.divf %39, %40 : vector<8x1xf32>
    %42 = vector.broadcast %41 : vector<8x1xf32> to vector<8x32xf32>
    %43 = arith.subf %35, %42 : vector<8x32xf32>
    %44 = arith.mulf %43, %43 : vector<8x32xf32>
    %cst_24 = arith.constant dense<0.000000e+00> : vector<8xf32>
    %45 = vector.multi_reduction <add>, %44, %cst_24 [1] : vector<8x32xf32> to vector<8xf32>
    %46 = vector.shape_cast %45 : vector<8xf32> to vector<8x1xf32>
    %cst_25 = arith.constant 3.200000e+01 : f32
    %47 = vector.broadcast %cst_25 : f32 to vector<8x1xf32>
    %48 = arith.divf %46, %47 : vector<8x1xf32>
    %49 = vector.broadcast %41 : vector<8x1xf32> to vector<8x32xf32>
    %50 = arith.subf %35, %49 : vector<8x32xf32>
    %cst_26 = arith.constant 9.99999997E-7 : f32
    %51 = vector.broadcast %cst_26 : f32 to vector<8x1xf32>
    %52 = arith.addf %48, %51 : vector<8x1xf32>
    %53 = math.rsqrt %52 : vector<8x1xf32>
    %54 = vector.broadcast %53 : vector<8x1xf32> to vector<8x32xf32>
    %55 = arith.mulf %50, %54 : vector<8x32xf32>
    %56 = vector.broadcast %36 : vector<1x32xf32> to vector<8x32xf32>
    %57 = arith.mulf %55, %56 : vector<8x32xf32>
    %58 = vector.broadcast %37 : vector<1x32xf32> to vector<8x32xf32>
    %59 = arith.addf %57, %58 : vector<8x32xf32>
    %60 = arith.truncf %59 : vector<8x32xf32> to vector<8x32xbf16>
    %c0_27 = arith.constant 0 : index
    %c0_28 = arith.constant 0 : index
    %61 = vector.load %arg9[%c0_27, %c0_28] : memref<32x64xbf16, #tpu.memory_space<vmem>>, vector<32x64xbf16>
    %cst_29 = arith.constant dense<0.000000e+00> : vector<8x64xf32>
    %62 = tpu.matmul %60, %61, %cst_29 {dimension_numbers = #tpu.dot_dimension_numbers<[1], [0], [0], [1], [0, 0, 1, 1], [], []>} : vector<8x32xbf16>, vector<32x64xbf16>, vector<8x64xf32> -> vector<8x64xf32>
    %c0_30 = arith.constant 0 : index
    %c0_31 = arith.constant 0 : index
    %63 = vector.load %arg10[%c0_30, %c0_31] : memref<1x64xf32, #tpu.memory_space<vmem>>, vector<1x64xf32>
    %64 = vector.broadcast %63 : vector<1x64xf32> to vector<8x64xf32>
    %65 = arith.addf %62, %64 : vector<8x64xf32>
    %66 = vector.extract_strided_slice %65 {offsets = [0, 0], sizes = [8, 32], strides = [1, 1]} : vector<8x64xf32> to vector<8x32xf32>
    %67 = vector.extract_strided_slice %65 {offsets = [0, 32], sizes = [8, 32], strides = [1, 1]} : vector<8x64xf32> to vector<8x32xf32>
    %68 = arith.truncf %32 : vector<8x32xf32> to vector<8x32xbf16>
    %69 = vector.shape_cast %68 : vector<8x32xbf16> to vector<8x4x8xbf16>
    %70 = tpu.transpose %69, [1, 0, 2] : vector<8x4x8xbf16> -> vector<4x8x8xbf16>
    %71 = arith.truncf %66 : vector<8x32xf32> to vector<8x32xbf16>
    %72 = vector.shape_cast %71 : vector<8x32xbf16> to vector<8x4x8xbf16>
    %73 = tpu.transpose %72, [1, 0, 2] : vector<8x4x8xbf16> -> vector<4x8x8xbf16>
    %74 = arith.truncf %67 : vector<8x32xf32> to vector<8x32xbf16>
    %75 = vector.shape_cast %74 : vector<8x32xbf16> to vector<8x4x8xbf16>
    %76 = tpu.transpose %75, [1, 0, 2] : vector<8x4x8xbf16> -> vector<4x8x8xbf16>
    "tpu.trace_start"() <{level = 10 : i32, message = "hqd,hkd->hqk"}> : () -> ()
    %cst_32 = arith.constant dense<0.000000e+00> : vector<4x8x8xf32>
    %77 = tpu.matmul %70, %73, %cst_32 {dimension_numbers = #tpu.dot_dimension_numbers<[2], [2], [1], [1], [0, 0, 0, 1, 1, 1], [0], [0]>} : vector<4x8x8xbf16>, vector<4x8x8xbf16>, vector<4x8x8xf32> -> vector<4x8x8xf32>
    "tpu.trace_stop"() : () -> ()
    %c0_33 = arith.constant 0 : index
    %c0_34 = arith.constant 0 : index
    %78 = vector.load %arg4[%c0_33, %c0_34] : memref<8x8xf32, #tpu.memory_space<vmem>>, vector<8x8xf32>
    %79 = vector.shape_cast %78 : vector<8x8xf32> to vector<1x8x8xf32>
    %80 = vector.broadcast %79 : vector<1x8x8xf32> to vector<4x8x8xf32>
    %81 = arith.addf %77, %80 : vector<4x8x8xf32>
    %cst_35 = arith.constant dense<0xFF800000> : vector<4x8xf32>
    %82 = vector.multi_reduction <maximumf>, %81, %cst_35 [2] : vector<4x8x8xf32> to vector<4x8xf32>
    %83 = vector.shape_cast %82 : vector<4x8xf32> to vector<4x8x1xf32>
    %84 = vector.broadcast %83 : vector<4x8x1xf32> to vector<4x8x8xf32>
    %85 = arith.subf %81, %84 : vector<4x8x8xf32>
    %86 = math.exp %85 : vector<4x8x8xf32>
    %cst_36 = arith.constant dense<0.000000e+00> : vector<4x8xf32>
    %87 = vector.multi_reduction <add>, %86, %cst_36 [2] : vector<4x8x8xf32> to vector<4x8xf32>
    %88 = vector.shape_cast %87 : vector<4x8xf32> to vector<4x8x1xf32>
    %89 = tpu.reciprocal %88 {approx = true} : vector<4x8x1xf32> -> vector<4x8x1xf32>
    %90 = arith.mulf %88, %89 : vector<4x8x1xf32>
    %cst_37 = arith.constant 2.000000e+00 : f32
    %91 = vector.broadcast %cst_37 : f32 to vector<4x8x1xf32>
    %92 = arith.subf %91, %90 : vector<4x8x1xf32>
    %93 = arith.mulf %89, %92 : vector<4x8x1xf32>
    %94 = vector.broadcast %93 : vector<4x8x1xf32> to vector<4x8x8xf32>
    %95 = arith.mulf %86, %94 : vector<4x8x8xf32>
    %96 = arith.truncf %95 : vector<4x8x8xf32> to vector<4x8x8xbf16>
    "tpu.trace_start"() <{level = 10 : i32, message = "hqk,hkd->hqd"}> : () -> ()
    %cst_38 = arith.constant dense<0.000000e+00> : vector<4x8x8xf32>
    %97 = tpu.matmul %96, %76, %cst_38 {dimension_numbers = #tpu.dot_dimension_numbers<[2], [1], [1], [2], [0, 0, 0, 1, 1, 2], [0], [0]>} : vector<4x8x8xbf16>, vector<4x8x8xbf16>, vector<4x8x8xf32> -> vector<4x8x8xf32>
    "tpu.trace_stop"() : () -> ()
    %98 = tpu.transpose %97, [1, 0, 2] : vector<4x8x8xf32> -> vector<8x4x8xf32>
    %99 = vector.shape_cast %98 : vector<8x4x8xf32> to vector<8x32xf32>
    %100 = arith.truncf %99 : vector<8x32xf32> to vector<8x32xbf16>
    %c0_39 = arith.constant 0 : index
    %c0_40 = arith.constant 0 : index
    %101 = vector.load %arg11[%c0_39, %c0_40] : memref<32x32xbf16, #tpu.memory_space<vmem>>, vector<32x32xbf16>
    %cst_41 = arith.constant dense<0.000000e+00> : vector<8x32xf32>
    %102 = tpu.matmul %100, %101, %cst_41 {dimension_numbers = #tpu.dot_dimension_numbers<[1], [0], [0], [1], [0, 0, 1, 1], [], []>} : vector<8x32xbf16>, vector<32x32xbf16>, vector<8x32xf32> -> vector<8x32xf32>
    %c0_42 = arith.constant 0 : index
    %c0_43 = arith.constant 0 : index
    %103 = vector.load %arg12[%c0_42, %c0_43] : memref<1x32xf32, #tpu.memory_space<vmem>>, vector<1x32xf32>
    %104 = vector.broadcast %103 : vector<1x32xf32> to vector<8x32xf32>
    %105 = arith.addf %102, %104 : vector<8x32xf32>
    %106 = arith.addf %2, %105 : vector<8x32xf32>
    %107 = arith.truncf %106 : vector<8x32xf32> to vector<8x32xbf16>
    %c0_44 = arith.constant 0 : index
    %c0_45 = arith.constant 0 : index
    %c0_46 = arith.constant 0 : index
    %108 = vector.load %arg13[%c0_44, %c0_45, %c0_46] : memref<1x8x32xbf16, #tpu.memory_space<vmem>>, vector<1x8x32xbf16>
    %109 = vector.shape_cast %108 : vector<1x8x32xbf16> to vector<8x32xbf16>
    %110 = vector.shape_cast %107 : vector<8x32xbf16> to vector<1x8x32xbf16>
    tpu.vector_store %arg13[%c0_44, %c0_45, %c0_46], %110 {strides = array<i32>} : memref<1x8x32xbf16, #tpu.memory_space<vmem>>, vector<1x8x32xbf16>,
    return
  }
  func.func @transform_0(%arg0: i32, %arg1: i32) -> (i32, i32, i32) {
    %c0_i32 = arith.constant 0 : i32
    %c0_i32_0 = arith.constant 0 : i32
    return %arg0, %arg1, %c0_i32 : i32, i32, i32
  }
  func.func @transform_1(%arg0: i32, %arg1: i32) -> (i32, i32, i32) {
    %c0_i32 = arith.constant 0 : i32
    %c0_i32_0 = arith.constant 0 : i32
    %c0_i32_1 = arith.constant 0 : i32
    return %arg0, %c0_i32, %c0_i32_0 : i32, i32, i32
  }
  func.func @transform_2(%arg0: i32, %arg1: i32) -> (i32, i32) {
    %c0_i32 = arith.constant 0 : i32
    %c0_i32_0 = arith.constant 0 : i32
    return %arg1, %c0_i32 : i32, i32
  }
  func.func @transform_3(%arg0: i32, %arg1: i32) -> (i32, i32) {
    %c0_i32 = arith.constant 0 : i32
    %c0_i32_0 = arith.constant 0 : i32
    %c0_i32_1 = arith.constant 0 : i32
    return %c0_i32, %c0_i32_0 : i32, i32
  }
  func.func @transform_4(%arg0: i32, %arg1: i32) -> (i32, i32) {
    %c0_i32 = arith.constant 0 : i32
    %c0_i32_0 = arith.constant 0 : i32
    %c0_i32_1 = arith.constant 0 : i32
    return %c0_i32, %c0_i32_0 : i32, i32
  }
  func.func @transform_5(%arg0: i32, %arg1: i32) -> (i32, i32) {
    %c0_i32 = arith.constant 0 : i32
    %c0_i32_0 = arith.constant 0 : i32
    %c0_i32_1 = arith.constant 0 : i32
    return %c0_i32, %c0_i32_0 : i32, i32
  }
  func.func @transform_6(%arg0: i32, %arg1: i32) -> (i32, i32) {
    %c0_i32 = arith.constant 0 : i32
    %c0_i32_0 = arith.constant 0 : i32
    %c0_i32_1 = arith.constant 0 : i32
    return %c0_i32, %c0_i32_0 : i32, i32
  }
  func.func @transform_7(%arg0: i32, %arg1: i32) -> (i32, i32) {
    %c0_i32 = arith.constant 0 : i32
    %c0_i32_0 = arith.constant 0 : i32
    %c0_i32_1 = arith.constant 0 : i32
    return %c0_i32, %c0_i32_0 : i32, i32
  }
  func.func @transform_8(%arg0: i32, %arg1: i32) -> (i32, i32) {
    %c0_i32 = arith.constant 0 : i32
    %c0_i32_0 = arith.constant 0 : i32
    %c0_i32_1 = arith.constant 0 : i32
    return %c0_i32, %c0_i32_0 : i32, i32
  }
  func.func @transform_9(%arg0: i32, %arg1: i32) -> (i32, i32) {
    %c0_i32 = arith.constant 0 : i32
    %c0_i32_0 = arith.constant 0 : i32
    %c0_i32_1 = arith.constant 0 : i32
    return %c0_i32, %c0_i32_0 : i32, i32
  }
  func.func @transform_10(%arg0: i32, %arg1: i32) -> (i32, i32) {
    %c0_i32 = arith.constant 0 : i32
    %c0_i32_0 = arith.constant 0 : i32
    %c0_i32_1 = arith.constant 0 : i32
    return %c0_i32, %c0_i32_0 : i32, i32
  }
  func.func @transform_11(%arg0: i32, %arg1: i32) -> (i32, i32, i32) {
    %c0_i32 = arith.constant 0 : i32
    %c0_i32_0 = arith.constant 0 : i32
    return %arg0, %arg1, %c0_i32 : i32, i32, i32
  }
}

module attributes {stable_mosaic.version = 11 : i64} {
  func.func @posenc_kernel(%arg0: i32, %arg1: memref<1x8x32xf32, #tpu.memory_space<vmem>>, %arg2: memref<32x32xbf16, #tpu.memory_space<vmem>>, %arg3: memref<32x32xbf16, #tpu.memory_space<vmem>>, %arg4: memref<32x32xbf16, #tpu.memory_space<vmem>>, %arg5: memref<1x32xf32, #tpu.memory_space<vmem>>, %arg6: memref<1x32xf32, #tpu.memory_space<vmem>>, %arg7: memref<1x32xf32, #tpu.memory_space<vmem>>, %arg8: memref<1x8x32xbf16, #tpu.memory_space<vmem>>) attributes {dimension_semantics = [#tpu.dimension_semantics<parallel>], iteration_bounds = array<i64: 2>, scalar_prefetch = 0 : i64, scratch_operands = 0 : i64, tpu.core_type = #tpu.core_type<tc>, window_params = [{transform_indices = @transform_0, window_bounds = array<i64: 1, 8, 32>}, {pipeline_mode = #tpu.pipeline_mode<synchronous>, transform_indices = @transform_1, window_bounds = array<i64: 32, 32>}, {pipeline_mode = #tpu.pipeline_mode<synchronous>, transform_indices = @transform_2, window_bounds = array<i64: 32, 32>}, {pipeline_mode = #tpu.pipeline_mode<synchronous>, transform_indices = @transform_3, window_bounds = array<i64: 32, 32>}, {pipeline_mode = #tpu.pipeline_mode<synchronous>, transform_indices = @transform_4, window_bounds = array<i64: 1, 32>}, {pipeline_mode = #tpu.pipeline_mode<synchronous>, transform_indices = @transform_5, window_bounds = array<i64: 1, 32>}, {pipeline_mode = #tpu.pipeline_mode<synchronous>, transform_indices = @transform_6, window_bounds = array<i64: 1, 32>}, {transform_indices = @transform_7, window_bounds = array<i64: 1, 8, 32>}]} {
    %c0 = arith.constant 0 : index
    %c0_0 = arith.constant 0 : index
    %c0_1 = arith.constant 0 : index
    %0 = vector.load %arg1[%c0, %c0_0, %c0_1] : memref<1x8x32xf32, #tpu.memory_space<vmem>>, vector<1x8x32xf32>
    %1 = vector.shape_cast %0 : vector<1x8x32xf32> to vector<8x32xf32>
    %2 = arith.truncf %1 : vector<8x32xf32> to vector<8x32xbf16>
    %cst = arith.constant 0.000000e+00 : bf16
    %3 = vector.broadcast %cst : bf16 to vector<1x32xbf16>
    %4 = vector.extract_strided_slice %2 {offsets = [0, 0], sizes = [7, 32], strides = [1, 1]} : vector<8x32xbf16> to vector<7x32xbf16>
    %5 = tpu.concatenate %3, %4 in 0 : vector<1x32xbf16>, vector<7x32xbf16> -> vector<8x32xbf16>
    %6 = vector.extract_strided_slice %2 {offsets = [1, 0], sizes = [7, 32], strides = [1, 1]} : vector<8x32xbf16> to vector<7x32xbf16>
    %7 = tpu.concatenate %6, %3 in 0 : vector<7x32xbf16>, vector<1x32xbf16> -> vector<8x32xbf16>
    %c0_2 = arith.constant 0 : index
    %c0_3 = arith.constant 0 : index
    %8 = vector.load %arg3[%c0_2, %c0_3] : memref<32x32xbf16, #tpu.memory_space<vmem>>, vector<32x32xbf16>
    %cst_4 = arith.constant dense<0.000000e+00> : vector<8x32xf32>
    %9 = tpu.matmul %2, %8, %cst_4 {dimension_numbers = #tpu.dot_dimension_numbers<[1], [0], [0], [1], [0, 0, 1, 1], [], []>} : vector<8x32xbf16>, vector<32x32xbf16>, vector<8x32xf32> -> vector<8x32xf32>
    %c0_5 = arith.constant 0 : index
    %c0_6 = arith.constant 0 : index
    %10 = vector.load %arg2[%c0_5, %c0_6] : memref<32x32xbf16, #tpu.memory_space<vmem>>, vector<32x32xbf16>
    %cst_7 = arith.constant dense<0.000000e+00> : vector<8x32xf32>
    %11 = tpu.matmul %5, %10, %cst_7 {dimension_numbers = #tpu.dot_dimension_numbers<[1], [0], [0], [1], [0, 0, 1, 1], [], []>} : vector<8x32xbf16>, vector<32x32xbf16>, vector<8x32xf32> -> vector<8x32xf32>
    %12 = arith.addf %9, %11 : vector<8x32xf32>
    %c0_8 = arith.constant 0 : index
    %c0_9 = arith.constant 0 : index
    %13 = vector.load %arg4[%c0_8, %c0_9] : memref<32x32xbf16, #tpu.memory_space<vmem>>, vector<32x32xbf16>
    %cst_10 = arith.constant dense<0.000000e+00> : vector<8x32xf32>
    %14 = tpu.matmul %7, %13, %cst_10 {dimension_numbers = #tpu.dot_dimension_numbers<[1], [0], [0], [1], [0, 0, 1, 1], [], []>} : vector<8x32xbf16>, vector<32x32xbf16>, vector<8x32xf32> -> vector<8x32xf32>
    %15 = arith.addf %12, %14 : vector<8x32xf32>
    %c0_11 = arith.constant 0 : index
    %c0_12 = arith.constant 0 : index
    %16 = vector.load %arg5[%c0_11, %c0_12] : memref<1x32xf32, #tpu.memory_space<vmem>>, vector<1x32xf32>
    %17 = vector.broadcast %16 : vector<1x32xf32> to vector<8x32xf32>
    %18 = arith.addf %15, %17 : vector<8x32xf32>
    %cst_13 = arith.constant 5.000000e-01 : f32
    %19 = vector.broadcast %cst_13 : f32 to vector<8x32xf32>
    %20 = arith.mulf %19, %18 : vector<8x32xf32>
    %cst_14 = arith.constant 4.471500e-02 : f32
    %21 = vector.broadcast %cst_14 : f32 to vector<8x32xf32>
    %22 = arith.mulf %21, %18 : vector<8x32xf32>
    %23 = arith.mulf %22, %18 : vector<8x32xf32>
    %24 = arith.mulf %23, %18 : vector<8x32xf32>
    %25 = arith.addf %18, %24 : vector<8x32xf32>
    %cst_15 = arith.constant 0.797884583 : f32
    %26 = vector.broadcast %cst_15 : f32 to vector<8x32xf32>
    %27 = arith.mulf %26, %25 : vector<8x32xf32>
    %28 = math.tanh %27 : vector<8x32xf32>
    %cst_16 = arith.constant 1.000000e+00 : f32
    %29 = vector.broadcast %cst_16 : f32 to vector<8x32xf32>
    %30 = arith.addf %29, %28 : vector<8x32xf32>
    %31 = arith.mulf %20, %30 : vector<8x32xf32>
    %32 = arith.addf %31, %1 : vector<8x32xf32>
    %c0_17 = arith.constant 0 : index
    %c0_18 = arith.constant 0 : index
    %33 = vector.load %arg6[%c0_17, %c0_18] : memref<1x32xf32, #tpu.memory_space<vmem>>, vector<1x32xf32>
    %c0_19 = arith.constant 0 : index
    %c0_20 = arith.constant 0 : index
    %34 = vector.load %arg7[%c0_19, %c0_20] : memref<1x32xf32, #tpu.memory_space<vmem>>, vector<1x32xf32>
    %cst_21 = arith.constant dense<0.000000e+00> : vector<8xf32>
    %35 = vector.multi_reduction <add>, %32, %cst_21 [1] : vector<8x32xf32> to vector<8xf32>
    %36 = vector.shape_cast %35 : vector<8xf32> to vector<8x1xf32>
    %cst_22 = arith.constant 3.200000e+01 : f32
    %37 = vector.broadcast %cst_22 : f32 to vector<8x1xf32>
    %38 = arith.divf %36, %37 : vector<8x1xf32>
    %39 = vector.broadcast %38 : vector<8x1xf32> to vector<8x32xf32>
    %40 = arith.subf %32, %39 : vector<8x32xf32>
    %41 = arith.mulf %40, %40 : vector<8x32xf32>
    %cst_23 = arith.constant dense<0.000000e+00> : vector<8xf32>
    %42 = vector.multi_reduction <add>, %41, %cst_23 [1] : vector<8x32xf32> to vector<8xf32>
    %43 = vector.shape_cast %42 : vector<8xf32> to vector<8x1xf32>
    %cst_24 = arith.constant 3.200000e+01 : f32
    %44 = vector.broadcast %cst_24 : f32 to vector<8x1xf32>
    %45 = arith.divf %43, %44 : vector<8x1xf32>
    %46 = vector.broadcast %38 : vector<8x1xf32> to vector<8x32xf32>
    %47 = arith.subf %32, %46 : vector<8x32xf32>
    %cst_25 = arith.constant 9.99999997E-7 : f32
    %48 = vector.broadcast %cst_25 : f32 to vector<8x1xf32>
    %49 = arith.addf %45, %48 : vector<8x1xf32>
    %50 = math.rsqrt %49 : vector<8x1xf32>
    %51 = vector.broadcast %50 : vector<8x1xf32> to vector<8x32xf32>
    %52 = arith.mulf %47, %51 : vector<8x32xf32>
    %53 = vector.broadcast %33 : vector<1x32xf32> to vector<8x32xf32>
    %54 = arith.mulf %52, %53 : vector<8x32xf32>
    %55 = vector.broadcast %34 : vector<1x32xf32> to vector<8x32xf32>
    %56 = arith.addf %54, %55 : vector<8x32xf32>
    %57 = arith.truncf %56 : vector<8x32xf32> to vector<8x32xbf16>
    %c0_26 = arith.constant 0 : index
    %c0_27 = arith.constant 0 : index
    %c0_28 = arith.constant 0 : index
    %58 = vector.load %arg8[%c0_26, %c0_27, %c0_28] : memref<1x8x32xbf16, #tpu.memory_space<vmem>>, vector<1x8x32xbf16>
    %59 = vector.shape_cast %58 : vector<1x8x32xbf16> to vector<8x32xbf16>
    %60 = vector.shape_cast %57 : vector<8x32xbf16> to vector<1x8x32xbf16>
    tpu.vector_store %arg8[%c0_26, %c0_27, %c0_28], %60 {strides = array<i32>} : memref<1x8x32xbf16, #tpu.memory_space<vmem>>, vector<1x8x32xbf16>,
    return
  }
  func.func @transform_0(%arg0: i32) -> (i32, i32, i32) {
    %c0_i32 = arith.constant 0 : i32
    %c0_i32_0 = arith.constant 0 : i32
    %c0_i32_1 = arith.constant 0 : i32
    return %arg0, %c0_i32, %c0_i32_0 : i32, i32, i32
  }
  func.func @transform_1(%arg0: i32) -> (i32, i32) {
    %c0_i32 = arith.constant 0 : i32
    %c0_i32_0 = arith.constant 0 : i32
    %c0_i32_1 = arith.constant 0 : i32
    return %c0_i32, %c0_i32_0 : i32, i32
  }
  func.func @transform_2(%arg0: i32) -> (i32, i32) {
    %c0_i32 = arith.constant 0 : i32
    %c0_i32_0 = arith.constant 0 : i32
    %c0_i32_1 = arith.constant 0 : i32
    return %c0_i32, %c0_i32_0 : i32, i32
  }
  func.func @transform_3(%arg0: i32) -> (i32, i32) {
    %c0_i32 = arith.constant 0 : i32
    %c0_i32_0 = arith.constant 0 : i32
    %c0_i32_1 = arith.constant 0 : i32
    return %c0_i32, %c0_i32_0 : i32, i32
  }
  func.func @transform_4(%arg0: i32) -> (i32, i32) {
    %c0_i32 = arith.constant 0 : i32
    %c0_i32_0 = arith.constant 0 : i32
    %c0_i32_1 = arith.constant 0 : i32
    return %c0_i32, %c0_i32_0 : i32, i32
  }
  func.func @transform_5(%arg0: i32) -> (i32, i32) {
    %c0_i32 = arith.constant 0 : i32
    %c0_i32_0 = arith.constant 0 : i32
    %c0_i32_1 = arith.constant 0 : i32
    return %c0_i32, %c0_i32_0 : i32, i32
  }
  func.func @transform_6(%arg0: i32) -> (i32, i32) {
    %c0_i32 = arith.constant 0 : i32
    %c0_i32_0 = arith.constant 0 : i32
    %c0_i32_1 = arith.constant 0 : i32
    return %c0_i32, %c0_i32_0 : i32, i32
  }
  func.func @transform_7(%arg0: i32) -> (i32, i32, i32) {
    %c0_i32 = arith.constant 0 : i32
    %c0_i32_0 = arith.constant 0 : i32
    %c0_i32_1 = arith.constant 0 : i32
    return %arg0, %c0_i32, %c0_i32_0 : i32, i32, i32
  }
}

module attributes {stable_mosaic.version = 11 : i64} {
  func.func @ffn_kernel(%arg0: i32, %arg1: i32, %arg2: memref<16x32xbf16, #tpu.memory_space<vmem>>, %arg3: memref<1x32xf32, #tpu.memory_space<vmem>>, %arg4: memref<1x32xf32, #tpu.memory_space<vmem>>, %arg5: memref<32x64xbf16, #tpu.memory_space<vmem>>, %arg6: memref<1x64xf32, #tpu.memory_space<vmem>>, %arg7: memref<64x32xbf16, #tpu.memory_space<vmem>>, %arg8: memref<1x32xf32, #tpu.memory_space<vmem>>, %arg9: memref<16x32xbf16, #tpu.memory_space<vmem>>, %arg10: memref<16x32xf32, #tpu.memory_space<vmem>>) attributes {dimension_semantics = [#tpu.dimension_semantics<parallel>, #tpu.dimension_semantics<arbitrary>], iteration_bounds = array<i64: 1, 1>, scalar_prefetch = 0 : i64, scratch_operands = 1 : i64, tpu.core_type = #tpu.core_type<tc>, window_params = [{transform_indices = @transform_0, window_bounds = array<i64: 16, 32>}, {pipeline_mode = #tpu.pipeline_mode<synchronous>, transform_indices = @transform_1, window_bounds = array<i64: 1, 32>}, {pipeline_mode = #tpu.pipeline_mode<synchronous>, transform_indices = @transform_2, window_bounds = array<i64: 1, 32>}, {transform_indices = @transform_3, window_bounds = array<i64: 32, 64>}, {transform_indices = @transform_4, window_bounds = array<i64: 1, 64>}, {transform_indices = @transform_5, window_bounds = array<i64: 64, 32>}, {pipeline_mode = #tpu.pipeline_mode<synchronous>, transform_indices = @transform_6, window_bounds = array<i64: 1, 32>}, {transform_indices = @transform_7, window_bounds = array<i64: 16, 32>}]} {
    %c0 = arith.constant 0 : index
    %c0_0 = arith.constant 0 : index
    %0 = vector.load %arg2[%c0, %c0_0] : memref<16x32xbf16, #tpu.memory_space<vmem>>, vector<16x32xbf16>
    %1 = arith.extf %0 : vector<16x32xbf16> to vector<16x32xf32>
    %c0_1 = arith.constant 0 : index
    %c0_2 = arith.constant 0 : index
    %2 = vector.load %arg3[%c0_1, %c0_2] : memref<1x32xf32, #tpu.memory_space<vmem>>, vector<1x32xf32>
    %c0_3 = arith.constant 0 : index
    %c0_4 = arith.constant 0 : index
    %3 = vector.load %arg4[%c0_3, %c0_4] : memref<1x32xf32, #tpu.memory_space<vmem>>, vector<1x32xf32>
    %cst = arith.constant dense<0.000000e+00> : vector<16xf32>
    %4 = vector.multi_reduction <add>, %1, %cst [1] : vector<16x32xf32> to vector<16xf32>
    %5 = vector.shape_cast %4 : vector<16xf32> to vector<16x1xf32>
    %cst_5 = arith.constant 3.200000e+01 : f32
    %6 = vector.broadcast %cst_5 : f32 to vector<16x1xf32>
    %7 = arith.divf %5, %6 : vector<16x1xf32>
    %8 = vector.broadcast %7 : vector<16x1xf32> to vector<16x32xf32>
    %9 = arith.subf %1, %8 : vector<16x32xf32>
    %10 = arith.mulf %9, %9 : vector<16x32xf32>
    %cst_6 = arith.constant dense<0.000000e+00> : vector<16xf32>
    %11 = vector.multi_reduction <add>, %10, %cst_6 [1] : vector<16x32xf32> to vector<16xf32>
    %12 = vector.shape_cast %11 : vector<16xf32> to vector<16x1xf32>
    %cst_7 = arith.constant 3.200000e+01 : f32
    %13 = vector.broadcast %cst_7 : f32 to vector<16x1xf32>
    %14 = arith.divf %12, %13 : vector<16x1xf32>
    %15 = vector.broadcast %7 : vector<16x1xf32> to vector<16x32xf32>
    %16 = arith.subf %1, %15 : vector<16x32xf32>
    %cst_8 = arith.constant 9.99999997E-7 : f32
    %17 = vector.broadcast %cst_8 : f32 to vector<16x1xf32>
    %18 = arith.addf %14, %17 : vector<16x1xf32>
    %19 = math.rsqrt %18 : vector<16x1xf32>
    %20 = vector.broadcast %19 : vector<16x1xf32> to vector<16x32xf32>
    %21 = arith.mulf %16, %20 : vector<16x32xf32>
    %22 = vector.broadcast %2 : vector<1x32xf32> to vector<16x32xf32>
    %23 = arith.mulf %21, %22 : vector<16x32xf32>
    %24 = vector.broadcast %3 : vector<1x32xf32> to vector<16x32xf32>
    %25 = arith.addf %23, %24 : vector<16x32xf32>
    %26 = arith.truncf %25 : vector<16x32xf32> to vector<16x32xbf16>
    %c0_9 = arith.constant 0 : index
    %c0_10 = arith.constant 0 : index
    %27 = vector.load %arg5[%c0_9, %c0_10] : memref<32x64xbf16, #tpu.memory_space<vmem>>, vector<32x64xbf16>
    %cst_11 = arith.constant dense<0.000000e+00> : vector<16x64xf32>
    %28 = tpu.matmul %26, %27, %cst_11 {dimension_numbers = #tpu.dot_dimension_numbers<[1], [0], [0], [1], [0, 0, 1, 1], [], []>} : vector<16x32xbf16>, vector<32x64xbf16>, vector<16x64xf32> -> vector<16x64xf32>
    %c0_12 = arith.constant 0 : index
    %c0_13 = arith.constant 0 : index
    %29 = vector.load %arg6[%c0_12, %c0_13] : memref<1x64xf32, #tpu.memory_space<vmem>>, vector<1x64xf32>
    %30 = vector.broadcast %29 : vector<1x64xf32> to vector<16x64xf32>
    %31 = arith.addf %28, %30 : vector<16x64xf32>
    %cst_14 = arith.constant 5.000000e-01 : f32
    %32 = vector.broadcast %cst_14 : f32 to vector<16x64xf32>
    %33 = arith.mulf %32, %31 : vector<16x64xf32>
    %cst_15 = arith.constant 4.471500e-02 : f32
    %34 = vector.broadcast %cst_15 : f32 to vector<16x64xf32>
    %35 = arith.mulf %34, %31 : vector<16x64xf32>
    %36 = arith.mulf %35, %31 : vector<16x64xf32>
    %37 = arith.mulf %36, %31 : vector<16x64xf32>
    %38 = arith.addf %31, %37 : vector<16x64xf32>
    %cst_16 = arith.constant 0.797884583 : f32
    %39 = vector.broadcast %cst_16 : f32 to vector<16x64xf32>
    %40 = arith.mulf %39, %38 : vector<16x64xf32>
    %41 = math.tanh %40 : vector<16x64xf32>
    %cst_17 = arith.constant 1.000000e+00 : f32
    %42 = vector.broadcast %cst_17 : f32 to vector<16x64xf32>
    %43 = arith.addf %42, %41 : vector<16x64xf32>
    %44 = arith.mulf %33, %43 : vector<16x64xf32>
    %45 = arith.truncf %44 : vector<16x64xf32> to vector<16x64xbf16>
    %c0_18 = arith.constant 0 : index
    %c0_19 = arith.constant 0 : index
    %46 = vector.load %arg7[%c0_18, %c0_19] : memref<64x32xbf16, #tpu.memory_space<vmem>>, vector<64x32xbf16>
    %cst_20 = arith.constant dense<0.000000e+00> : vector<16x32xf32>
    %47 = tpu.matmul %45, %46, %cst_20 {dimension_numbers = #tpu.dot_dimension_numbers<[1], [0], [0], [1], [0, 0, 1, 1], [], []>} : vector<16x64xbf16>, vector<64x32xbf16>, vector<16x32xf32> -> vector<16x32xf32>
    %c0_i32 = arith.constant 0 : i32
    %48 = arith.cmpi eq, %arg1, %c0_i32 : i32
    %49 = arith.extui %48 : i1 to i32
    %c0_i32_21 = arith.constant 0 : i32
    %50 = arith.cmpi ne, %49, %c0_i32_21 : i32
    scf.if %50 {
      %c0_28 = arith.constant 0 : index
      %c0_29 = arith.constant 0 : index
      %57 = vector.load %arg8[%c0_28, %c0_29] : memref<1x32xf32, #tpu.memory_space<vmem>>, vector<1x32xf32>
      %58 = vector.broadcast %57 : vector<1x32xf32> to vector<16x32xf32>
      %59 = arith.addf %1, %58 : vector<16x32xf32>
      %c0_30 = arith.constant 0 : index
      %c0_31 = arith.constant 0 : index
      %60 = vector.load %arg10[%c0_30, %c0_31] : memref<16x32xf32, #tpu.memory_space<vmem>>, vector<16x32xf32>
      tpu.vector_store %arg10[%c0_30, %c0_31], %59 {strides = array<i32>} : memref<16x32xf32, #tpu.memory_space<vmem>>, vector<16x32xf32>,
    } else {
    }
    %c0_22 = arith.constant 0 : index
    %c0_23 = arith.constant 0 : index
    %51 = vector.load %arg10[%c0_22, %c0_23] : memref<16x32xf32, #tpu.memory_space<vmem>>, vector<16x32xf32>
    %52 = arith.addf %51, %47 : vector<16x32xf32>
    %c0_24 = arith.constant 0 : index
    %c0_25 = arith.constant 0 : index
    %53 = vector.load %arg10[%c0_24, %c0_25] : memref<16x32xf32, #tpu.memory_space<vmem>>, vector<16x32xf32>
    tpu.vector_store %arg10[%c0_24, %c0_25], %52 {strides = array<i32>} : memref<16x32xf32, #tpu.memory_space<vmem>>, vector<16x32xf32>,
    %c0_i32_26 = arith.constant 0 : i32
    %54 = arith.cmpi eq, %arg1, %c0_i32_26 : i32
    %55 = arith.extui %54 : i1 to i32
    %c0_i32_27 = arith.constant 0 : i32
    %56 = arith.cmpi ne, %55, %c0_i32_27 : i32
    scf.if %56 {
      %c0_28 = arith.constant 0 : index
      %c0_29 = arith.constant 0 : index
      %57 = vector.load %arg10[%c0_28, %c0_29] : memref<16x32xf32, #tpu.memory_space<vmem>>, vector<16x32xf32>
      %58 = arith.truncf %57 : vector<16x32xf32> to vector<16x32xbf16>
      %c0_30 = arith.constant 0 : index
      %c0_31 = arith.constant 0 : index
      %59 = vector.load %arg9[%c0_30, %c0_31] : memref<16x32xbf16, #tpu.memory_space<vmem>>, vector<16x32xbf16>
      tpu.vector_store %arg9[%c0_30, %c0_31], %58 {strides = array<i32>} : memref<16x32xbf16, #tpu.memory_space<vmem>>, vector<16x32xbf16>,
    } else {
    }
    return
  }
  func.func @transform_0(%arg0: i32, %arg1: i32) -> (i32, i32) {
    %c0_i32 = arith.constant 0 : i32
    %c0_i32_0 = arith.constant 0 : i32
    return %arg0, %c0_i32 : i32, i32
  }
  func.func @transform_1(%arg0: i32, %arg1: i32) -> (i32, i32) {
    %c0_i32 = arith.constant 0 : i32
    %c0_i32_0 = arith.constant 0 : i32
    %c0_i32_1 = arith.constant 0 : i32
    return %c0_i32, %c0_i32_0 : i32, i32
  }
  func.func @transform_2(%arg0: i32, %arg1: i32) -> (i32, i32) {
    %c0_i32 = arith.constant 0 : i32
    %c0_i32_0 = arith.constant 0 : i32
    %c0_i32_1 = arith.constant 0 : i32
    return %c0_i32, %c0_i32_0 : i32, i32
  }
  func.func @transform_3(%arg0: i32, %arg1: i32) -> (i32, i32) {
    %c0_i32 = arith.constant 0 : i32
    %c0_i32_0 = arith.constant 0 : i32
    return %c0_i32, %arg1 : i32, i32
  }
  func.func @transform_4(%arg0: i32, %arg1: i32) -> (i32, i32) {
    %c0_i32 = arith.constant 0 : i32
    %c0_i32_0 = arith.constant 0 : i32
    return %c0_i32, %arg1 : i32, i32
  }
  func.func @transform_5(%arg0: i32, %arg1: i32) -> (i32, i32) {
    %c0_i32 = arith.constant 0 : i32
    %c0_i32_0 = arith.constant 0 : i32
    return %arg1, %c0_i32 : i32, i32
  }
  func.func @transform_6(%arg0: i32, %arg1: i32) -> (i32, i32) {
    %c0_i32 = arith.constant 0 : i32
    %c0_i32_0 = arith.constant 0 : i32
    %c0_i32_1 = arith.constant 0 : i32
    return %c0_i32, %c0_i32_0 : i32, i32
  }
  func.func @transform_7(%arg0: i32, %arg1: i32) -> (i32, i32) {
    %c0_i32 = arith.constant 0 : i32
    %c0_i32_0 = arith.constant 0 : i32
    return %arg0, %c0_i32 : i32, i32
  }
}

module attributes {stable_mosaic.version = 11 : i64} {
  func.func @ffn_kernel(%arg0: i32, %arg1: i32, %arg2: memref<16x32xbf16, #tpu.memory_space<vmem>>, %arg3: memref<1x32xf32, #tpu.memory_space<vmem>>, %arg4: memref<1x32xf32, #tpu.memory_space<vmem>>, %arg5: memref<32x64xbf16, #tpu.memory_space<vmem>>, %arg6: memref<1x64xf32, #tpu.memory_space<vmem>>, %arg7: memref<64x32xbf16, #tpu.memory_space<vmem>>, %arg8: memref<1x32xf32, #tpu.memory_space<vmem>>, %arg9: memref<1x32xf32, #tpu.memory_space<vmem>>, %arg10: memref<1x32xf32, #tpu.memory_space<vmem>>, %arg11: memref<16x32xf32, #tpu.memory_space<vmem>>, %arg12: memref<16x32xf32, #tpu.memory_space<vmem>>) attributes {dimension_semantics = [#tpu.dimension_semantics<parallel>, #tpu.dimension_semantics<arbitrary>], iteration_bounds = array<i64: 1, 1>, scalar_prefetch = 0 : i64, scratch_operands = 1 : i64, tpu.core_type = #tpu.core_type<tc>, window_params = [{transform_indices = @transform_0, window_bounds = array<i64: 16, 32>}, {pipeline_mode = #tpu.pipeline_mode<synchronous>, transform_indices = @transform_1, window_bounds = array<i64: 1, 32>}, {pipeline_mode = #tpu.pipeline_mode<synchronous>, transform_indices = @transform_2, window_bounds = array<i64: 1, 32>}, {transform_indices = @transform_3, window_bounds = array<i64: 32, 64>}, {transform_indices = @transform_4, window_bounds = array<i64: 1, 64>}, {transform_indices = @transform_5, window_bounds = array<i64: 64, 32>}, {pipeline_mode = #tpu.pipeline_mode<synchronous>, transform_indices = @transform_6, window_bounds = array<i64: 1, 32>}, {pipeline_mode = #tpu.pipeline_mode<synchronous>, transform_indices = @transform_7, window_bounds = array<i64: 1, 32>}, {pipeline_mode = #tpu.pipeline_mode<synchronous>, transform_indices = @transform_8, window_bounds = array<i64: 1, 32>}, {transform_indices = @transform_9, window_bounds = array<i64: 16, 32>}]} {
    %c0 = arith.constant 0 : index
    %c0_0 = arith.constant 0 : index
    %0 = vector.load %arg2[%c0, %c0_0] : memref<16x32xbf16, #tpu.memory_space<vmem>>, vector<16x32xbf16>
    %1 = arith.extf %0 : vector<16x32xbf16> to vector<16x32xf32>
    %c0_1 = arith.constant 0 : index
    %c0_2 = arith.constant 0 : index
    %2 = vector.load %arg3[%c0_1, %c0_2] : memref<1x32xf32, #tpu.memory_space<vmem>>, vector<1x32xf32>
    %c0_3 = arith.constant 0 : index
    %c0_4 = arith.constant 0 : index
    %3 = vector.load %arg4[%c0_3, %c0_4] : memref<1x32xf32, #tpu.memory_space<vmem>>, vector<1x32xf32>
    %cst = arith.constant dense<0.000000e+00> : vector<16xf32>
    %4 = vector.multi_reduction <add>, %1, %cst [1] : vector<16x32xf32> to vector<16xf32>
    %5 = vector.shape_cast %4 : vector<16xf32> to vector<16x1xf32>
    %cst_5 = arith.constant 3.200000e+01 : f32
    %6 = vector.broadcast %cst_5 : f32 to vector<16x1xf32>
    %7 = arith.divf %5, %6 : vector<16x1xf32>
    %8 = vector.broadcast %7 : vector<16x1xf32> to vector<16x32xf32>
    %9 = arith.subf %1, %8 : vector<16x32xf32>
    %10 = arith.mulf %9, %9 : vector<16x32xf32>
    %cst_6 = arith.constant dense<0.000000e+00> : vector<16xf32>
    %11 = vector.multi_reduction <add>, %10, %cst_6 [1] : vector<16x32xf32> to vector<16xf32>
    %12 = vector.shape_cast %11 : vector<16xf32> to vector<16x1xf32>
    %cst_7 = arith.constant 3.200000e+01 : f32
    %13 = vector.broadcast %cst_7 : f32 to vector<16x1xf32>
    %14 = arith.divf %12, %13 : vector<16x1xf32>
    %15 = vector.broadcast %7 : vector<16x1xf32> to vector<16x32xf32>
    %16 = arith.subf %1, %15 : vector<16x32xf32>
    %cst_8 = arith.constant 9.99999997E-7 : f32
    %17 = vector.broadcast %cst_8 : f32 to vector<16x1xf32>
    %18 = arith.addf %14, %17 : vector<16x1xf32>
    %19 = math.rsqrt %18 : vector<16x1xf32>
    %20 = vector.broadcast %19 : vector<16x1xf32> to vector<16x32xf32>
    %21 = arith.mulf %16, %20 : vector<16x32xf32>
    %22 = vector.broadcast %2 : vector<1x32xf32> to vector<16x32xf32>
    %23 = arith.mulf %21, %22 : vector<16x32xf32>
    %24 = vector.broadcast %3 : vector<1x32xf32> to vector<16x32xf32>
    %25 = arith.addf %23, %24 : vector<16x32xf32>
    %26 = arith.truncf %25 : vector<16x32xf32> to vector<16x32xbf16>
    %c0_9 = arith.constant 0 : index
    %c0_10 = arith.constant 0 : index
    %27 = vector.load %arg5[%c0_9, %c0_10] : memref<32x64xbf16, #tpu.memory_space<vmem>>, vector<32x64xbf16>
    %cst_11 = arith.constant dense<0.000000e+00> : vector<16x64xf32>
    %28 = tpu.matmul %26, %27, %cst_11 {dimension_numbers = #tpu.dot_dimension_numbers<[1], [0], [0], [1], [0, 0, 1, 1], [], []>} : vector<16x32xbf16>, vector<32x64xbf16>, vector<16x64xf32> -> vector<16x64xf32>
    %c0_12 = arith.constant 0 : index
    %c0_13 = arith.constant 0 : index
    %29 = vector.load %arg6[%c0_12, %c0_13] : memref<1x64xf32, #tpu.memory_space<vmem>>, vector<1x64xf32>
    %30 = vector.broadcast %29 : vector<1x64xf32> to vector<16x64xf32>
    %31 = arith.addf %28, %30 : vector<16x64xf32>
    %cst_14 = arith.constant 5.000000e-01 : f32
    %32 = vector.broadcast %cst_14 : f32 to vector<16x64xf32>
    %33 = arith.mulf %32, %31 : vector<16x64xf32>
    %cst_15 = arith.constant 4.471500e-02 : f32
    %34 = vector.broadcast %cst_15 : f32 to vector<16x64xf32>
    %35 = arith.mulf %34, %31 : vector<16x64xf32>
    %36 = arith.mulf %35, %31 : vector<16x64xf32>
    %37 = arith.mulf %36, %31 : vector<16x64xf32>
    %38 = arith.addf %31, %37 : vector<16x64xf32>
    %cst_16 = arith.constant 0.797884583 : f32
    %39 = vector.broadcast %cst_16 : f32 to vector<16x64xf32>
    %40 = arith.mulf %39, %38 : vector<16x64xf32>
    %41 = math.tanh %40 : vector<16x64xf32>
    %cst_17 = arith.constant 1.000000e+00 : f32
    %42 = vector.broadcast %cst_17 : f32 to vector<16x64xf32>
    %43 = arith.addf %42, %41 : vector<16x64xf32>
    %44 = arith.mulf %33, %43 : vector<16x64xf32>
    %45 = arith.truncf %44 : vector<16x64xf32> to vector<16x64xbf16>
    %c0_18 = arith.constant 0 : index
    %c0_19 = arith.constant 0 : index
    %46 = vector.load %arg7[%c0_18, %c0_19] : memref<64x32xbf16, #tpu.memory_space<vmem>>, vector<64x32xbf16>
    %cst_20 = arith.constant dense<0.000000e+00> : vector<16x32xf32>
    %47 = tpu.matmul %45, %46, %cst_20 {dimension_numbers = #tpu.dot_dimension_numbers<[1], [0], [0], [1], [0, 0, 1, 1], [], []>} : vector<16x64xbf16>, vector<64x32xbf16>, vector<16x32xf32> -> vector<16x32xf32>
    %c0_i32 = arith.constant 0 : i32
    %48 = arith.cmpi eq, %arg1, %c0_i32 : i32
    %49 = arith.extui %48 : i1 to i32
    %c0_i32_21 = arith.constant 0 : i32
    %50 = arith.cmpi ne, %49, %c0_i32_21 : i32
    scf.if %50 {
      %c0_28 = arith.constant 0 : index
      %c0_29 = arith.constant 0 : index
      %57 = vector.load %arg8[%c0_28, %c0_29] : memref<1x32xf32, #tpu.memory_space<vmem>>, vector<1x32xf32>
      %58 = vector.broadcast %57 : vector<1x32xf32> to vector<16x32xf32>
      %59 = arith.addf %1, %58 : vector<16x32xf32>
      %c0_30 = arith.constant 0 : index
      %c0_31 = arith.constant 0 : index
      %60 = vector.load %arg12[%c0_30, %c0_31] : memref<16x32xf32, #tpu.memory_space<vmem>>, vector<16x32xf32>
      tpu.vector_store %arg12[%c0_30, %c0_31], %59 {strides = array<i32>} : memref<16x32xf32, #tpu.memory_space<vmem>>, vector<16x32xf32>,
    } else {
    }
    %c0_22 = arith.constant 0 : index
    %c0_23 = arith.constant 0 : index
    %51 = vector.load %arg12[%c0_22, %c0_23] : memref<16x32xf32, #tpu.memory_space<vmem>>, vector<16x32xf32>
    %52 = arith.addf %51, %47 : vector<16x32xf32>
    %c0_24 = arith.constant 0 : index
    %c0_25 = arith.constant 0 : index
    %53 = vector.load %arg12[%c0_24, %c0_25] : memref<16x32xf32, #tpu.memory_space<vmem>>, vector<16x32xf32>
    tpu.vector_store %arg12[%c0_24, %c0_25], %52 {strides = array<i32>} : memref<16x32xf32, #tpu.memory_space<vmem>>, vector<16x32xf32>,
    %c0_i32_26 = arith.constant 0 : i32
    %54 = arith.cmpi eq, %arg1, %c0_i32_26 : i32
    %55 = arith.extui %54 : i1 to i32
    %c0_i32_27 = arith.constant 0 : i32
    %56 = arith.cmpi ne, %55, %c0_i32_27 : i32
    scf.if %56 {
      %c0_28 = arith.constant 0 : index
      %c0_29 = arith.constant 0 : index
      %57 = vector.load %arg12[%c0_28, %c0_29] : memref<16x32xf32, #tpu.memory_space<vmem>>, vector<16x32xf32>
      %c0_30 = arith.constant 0 : index
      %c0_31 = arith.constant 0 : index
      %58 = vector.load %arg9[%c0_30, %c0_31] : memref<1x32xf32, #tpu.memory_space<vmem>>, vector<1x32xf32>
      %c0_32 = arith.constant 0 : index
      %c0_33 = arith.constant 0 : index
      %59 = vector.load %arg10[%c0_32, %c0_33] : memref<1x32xf32, #tpu.memory_space<vmem>>, vector<1x32xf32>
      %cst_34 = arith.constant dense<0.000000e+00> : vector<16xf32>
      %60 = vector.multi_reduction <add>, %57, %cst_34 [1] : vector<16x32xf32> to vector<16xf32>
      %61 = vector.shape_cast %60 : vector<16xf32> to vector<16x1xf32>
      %cst_35 = arith.constant 3.200000e+01 : f32
      %62 = vector.broadcast %cst_35 : f32 to vector<16x1xf32>
      %63 = arith.divf %61, %62 : vector<16x1xf32>
      %64 = vector.broadcast %63 : vector<16x1xf32> to vector<16x32xf32>
      %65 = arith.subf %57, %64 : vector<16x32xf32>
      %66 = arith.mulf %65, %65 : vector<16x32xf32>
      %cst_36 = arith.constant dense<0.000000e+00> : vector<16xf32>
      %67 = vector.multi_reduction <add>, %66, %cst_36 [1] : vector<16x32xf32> to vector<16xf32>
      %68 = vector.shape_cast %67 : vector<16xf32> to vector<16x1xf32>
      %cst_37 = arith.constant 3.200000e+01 : f32
      %69 = vector.broadcast %cst_37 : f32 to vector<16x1xf32>
      %70 = arith.divf %68, %69 : vector<16x1xf32>
      %71 = vector.broadcast %63 : vector<16x1xf32> to vector<16x32xf32>
      %72 = arith.subf %57, %71 : vector<16x32xf32>
      %cst_38 = arith.constant 9.99999997E-7 : f32
      %73 = vector.broadcast %cst_38 : f32 to vector<16x1xf32>
      %74 = arith.addf %70, %73 : vector<16x1xf32>
      %75 = math.rsqrt %74 : vector<16x1xf32>
      %76 = vector.broadcast %75 : vector<16x1xf32> to vector<16x32xf32>
      %77 = arith.mulf %72, %76 : vector<16x32xf32>
      %78 = vector.broadcast %58 : vector<1x32xf32> to vector<16x32xf32>
      %79 = arith.mulf %77, %78 : vector<16x32xf32>
      %80 = vector.broadcast %59 : vector<1x32xf32> to vector<16x32xf32>
      %81 = arith.addf %79, %80 : vector<16x32xf32>
      %c0_39 = arith.constant 0 : index
      %c0_40 = arith.constant 0 : index
      %82 = vector.load %arg11[%c0_39, %c0_40] : memref<16x32xf32, #tpu.memory_space<vmem>>, vector<16x32xf32>
      tpu.vector_store %arg11[%c0_39, %c0_40], %81 {strides = array<i32>} : memref<16x32xf32, #tpu.memory_space<vmem>>, vector<16x32xf32>,
    } else {
    }
    return
  }
  func.func @transform_0(%arg0: i32, %arg1: i32) -> (i32, i32) {
    %c0_i32 = arith.constant 0 : i32
    %c0_i32_0 = arith.constant 0 : i32
    return %arg0, %c0_i32 : i32, i32
  }
  func.func @transform_1(%arg0: i32, %arg1: i32) -> (i32, i32) {
    %c0_i32 = arith.constant 0 : i32
    %c0_i32_0 = arith.constant 0 : i32
    %c0_i32_1 = arith.constant 0 : i32
    return %c0_i32, %c0_i32_0 : i32, i32
  }
  func.func @transform_2(%arg0: i32, %arg1: i32) -> (i32, i32) {
    %c0_i32 = arith.constant 0 : i32
    %c0_i32_0 = arith.constant 0 : i32
    %c0_i32_1 = arith.constant 0 : i32
    return %c0_i32, %c0_i32_0 : i32, i32
  }
  func.func @transform_3(%arg0: i32, %arg1: i32) -> (i32, i32) {
    %c0_i32 = arith.constant 0 : i32
    %c0_i32_0 = arith.constant 0 : i32
    return %c0_i32, %arg1 : i32, i32
  }
  func.func @transform_4(%arg0: i32, %arg1: i32) -> (i32, i32) {
    %c0_i32 = arith.constant 0 : i32
    %c0_i32_0 = arith.constant 0 : i32
    return %c0_i32, %arg1 : i32, i32
  }
  func.func @transform_5(%arg0: i32, %arg1: i32) -> (i32, i32) {
    %c0_i32 = arith.constant 0 : i32
    %c0_i32_0 = arith.constant 0 : i32
    return %arg1, %c0_i32 : i32, i32
  }
  func.func @transform_6(%arg0: i32, %arg1: i32) -> (i32, i32) {
    %c0_i32 = arith.constant 0 : i32
    %c0_i32_0 = arith.constant 0 : i32
    %c0_i32_1 = arith.constant 0 : i32
    return %c0_i32, %c0_i32_0 : i32, i32
  }
  func.func @transform_7(%arg0: i32, %arg1: i32) -> (i32, i32) {
    %c0_i32 = arith.constant 0 : i32
    %c0_i32_0 = arith.constant 0 : i32
    %c0_i32_1 = arith.constant 0 : i32
    return %c0_i32, %c0_i32_0 : i32, i32
  }
  func.func @transform_8(%arg0: i32, %arg1: i32) -> (i32, i32) {
    %c0_i32 = arith.constant 0 : i32
    %c0_i32_0 = arith.constant 0 : i32
    %c0_i32_1 = arith.constant 0 : i32
    return %c0_i32, %c0_i32_0 : i32, i32
  }
  func.func @transform_9(%arg0: i32, %arg1: i32) -> (i32, i32) {
    %c0_i32 = arith.constant 0 : i32
    %c0_i32_0 = arith.constant 0 : i32
    return %arg0, %c0_i32 : i32, i32
  }
}

</mosaic_0001>

<bundles_post_ra>
// kernel: transformer_decoder_forward.7
= control target key start
LH: loop header
LB: loop body
LE: loop exit
PB: predicated region body
PF: predicated region fallthrough
CT: control target
= control target key end

     0   :  { %s702_s24 = smov 0   ;;  %s758_s0 = inlined_call_operand.vmem [shape: f32[2,8,32], index: 0, kind: input, shape index: {}]   ;;  %s759_s1 = inlined_call_operand.vmem [shape: bf16[32,32], index: 1, kind: input, shape index: {}]   ;;  %s760_s2 = inlined_call_operand.vmem [shape: bf16[32,32], index: 2, kind: input, shape index: {}]   ;;  %s761_s3 = inlined_call_operand.vmem [shape: bf16[32,32], index: 3, kind: input, shape index: {}]   ;;  %s762_s4 = inlined_call_operand.vmem [shape: f32[1,32], index: 4, kind: input, shape index: {}]   ;;  %s763_s5 = inlined_call_operand.vmem [shape: f32[1,32], index: 5, kind: input, shape index: {}]   ;;  %s764_s6 = inlined_call_operand.vmem [shape: f32[1,32], index: 6, kind: input, shape index: {}]   ;;  %s765_s7 = inlined_call_operand.vmem [shape: bf16[2,8,32], index: 7, kind: output, shape index: {}]  }
   0x1 LB: > { %s578_s25 = sadd.s32 4294967295, %s658_s24   ;;  %p582_p0 = scmp.ge.s32.totalorder %s658_s24, 1  ;;  %s658_s24 = sphi %s702_s24, %s17_s24  }
   0x2   : > { %p236_p1 = scmp.lt.s32.totalorder %s658_s24, 3 }
   0x4   : > { %p237_p2 = pnand %p582_p0, %p236_p1 }
   0x5   : > { %v642_v0 = vld [vmem:[%s759_s1] sm:$0xff] (!%p237_p2)   ;;  %v660_v1 = vmov (!%p237_p2), 0.0   ;;  %v644_v3 = vld [vmem:[%s759_s1 + $0x8] sm:$0xff] (!%p237_p2)   ;;  %vm661_vm0 = vmmov (!%p237_p2), 0   ;;  %p266_p3 = scmp.lt.s32.totalorder (!%p237_p2), %s578_s25, 1  ;;  %vm316_vm1 = vcmask (!%p237_p2), 261120  }
   0x6   : > { %240 = sbr.rel (%p237_p2) target bundleno = 593 (0x251), region = 48  ;;  %608 = vmatprep.subr.bf16.mxu0 (!%p237_p2), %v660_v1  ;;  %616 = vmatprep.subr.bf16.mxu1 (!%p237_p2), %v660_v1  ;;  %v643_v2 = vld [vmem:[%s760_s2] sm:$0xff] (!%p237_p2)   ;;  %v645_v4 = vld [vmem:[%s760_s2 + $0x8] sm:$0xff] (!%p237_p2)   ;;  %vm285_vm2 = vcmask (!%p237_p2), 1040384   ;;  %vm286_vm3 = vsmask.f32 (!%p237_p2), 256 }
   0x7   : > { %609 = vmatpush3.bf16.msra.mxu0 (!%p237_p2), %v642_v0  ;;  %612 = vmatprep.mubr.msk.bf16.mxu0 (!%p237_p2), %vm661_vm0, %v660_v1  ;;  %vm287_vm4 = vmand (!%p237_p2), %vm285_vm2, %vm286_vm3  ;;  %v646_v12 = vld [vmem:[%s761_s3] sm:$0xff] (!%p237_p2)   ;;  %vm292_vm5 = vcmask (!%p237_p2), 1043456   ;;  %vm293_vm6 = vsmask.f32 (!%p237_p2), 3328  ;;  %v647_v14 = vld [vmem:[%s761_s3 + $0x8] sm:$0xff] (!%p237_p2)   ;;  %vm523_vm8 = vcmask (!%p237_p2), 257024  }
   0x8   : > { %617 = vmatpush3.bf16.msra.mxu1 (!%p237_p2), %v643_v2  ;;  %610 = vmatprep.subr.bf16.mxu0 (!%p237_p2), %v660_v1  ;;  %vm294_vm7 = vmand (!%p237_p2), %vm292_vm5, %vm293_vm6  ;;  %v594_v27 = vld [vmem:[%s762_s4] ss:$0 sm:$0xff] (!%p237_p2) }
   0x9   : > { %618 = vmatprep.subr.bf16.mxu1 (!%p237_p2), %v660_v1  ;;  %620 = vmatprep.mubr.msk.bf16.mxu1 (!%p237_p2), %vm661_vm0, %v660_v1  ;;  %v595_v53 = vld [vmem:[%s763_s5] ss:$0 sm:$0xff] (!%p237_p2) }
   0xa   : > { %v596_v55 = vld [vmem:[%s764_s6] ss:$0 sm:$0xff] (!%p237_p2) }
   0xb   : > { %611 = vmatpush3.bf16.msra.mxu0 (!%p237_p2), %v644_v3 }
   0xc   : > { %619 = vmatpush3.bf16.msra.mxu1 (!%p237_p2), %v645_v4  ;;  %624 = vmatprep.subr.bf16.mxu0 (!%p237_p2), %v660_v1 }
   0xd   : > { %s767_s25 = smov (!%p266_p3, %s578_s25), 1 }
   0xe   : > { %s583_s11 = sshll.u32 %s767_s25, 3  ;;  %s584_s27 = sshll.u32 %s767_s25, 2 }
   0xf   : > { %s269_s14 = scalar_lea.vmem %s758_s0, %s583_s11  ;;  %s273_s30 = scalar_lea.vmem %s765_s7, %s584_s27 }
  0x10   : > { %v275_v5 = vld [vmem:[%s269_s14] sm:$0xff] }
  0x11   : > { %v276_v6 = vpack.c.bf16 %v275_v5, %v275_v5 }
  0x13   : > { %v278_v7 = vshrl.u32 %v276_v6, 16  ;;  %v281_v8 = vshll.u32 %v276_v6, 16  ;;  %621 = vmatmul.mubr.msk.bf16.vlgmr.msra.gmra.mrb[0].mxu1 %vm316_vm1, %v276_v6 }
  0x15   : > { %v280_v9 = vrot.slane %v278_v7, 7  ;;  %v289_v11 = vrot.slane %v281_v8, 1 }
  0x17   : > { %v283_v10 = vor.u32 %v281_v8, %v280_v9  ;;  %v290_v15 = vor.u32 %v289_v11, %v278_v7 }
  0x19   : > { %v288_v13 = vsel %vm287_vm4, 0, %v283_v10  ;;  %v295_v16 = vsel %vm294_vm7, %v290_v15, 0 }
  0x1a   : > { %613 = vmatmul.mubr.msk.bf16.vlgmr.msra.gmra.mrb[0].mxu0 %vm316_vm1, %v288_v13 }
  0x1b   : > { %625 = vmatpush3.bf16.msra.mxu0 %v646_v12  ;;  %628 = vmatprep.mubr.msk.bf16.mxu0 %vm661_vm0, %v660_v1 }
  0x1c   : > { %626 = vmatprep.subr.bf16.mxu0 %v660_v1 }
  0x1f   : > { %627 = vmatpush3.bf16.msra.mxu0 %v647_v14 }
  0x22   : > { %629 = vmatmul.mubr.msk.bf16.vlgmr.msra.gmra.mrb[4].mxu0 %vm316_vm1, %v295_v16 }
  0xe6   : > { %v408_v17 = vpop.f32.mrb[0].mxu1 }
  0xe7   : > { %v622_v18 = vpop.f32.mrb[1].mxu1 }
  0xe8   : > { %v411_v19 = vpop.f32.mrb[2].mxu1 }
  0xe9   : > { %v623_v20 = vpop.f32.mrb[3].mxu1 }
  0xed   : > { %v354_v21 = vpop.f32.mrb[0].mxu0 }
  0xee   : > { %v409_v22 = vadd.f32 %v408_v17, %v354_v21  ;;  %v614_v23 = vpop.f32.mrb[1].mxu0 }
  0xef   : > { %v357_v24 = vpop.f32.mrb[2].mxu0 }
  0xf0   : > { %v615_v25 = vpop.f32.mrb[3].mxu0 }
  0xf5   : > { %v467_v26 = vpop.f32.mrb[4].mxu0 }
  0xf6   : > { %v473_v28 = vadd.f32 %v467_v26, %v409_v22  ;;  %v630_v29 = vpop.f32.mrb[5].mxu0 }
  0xf7   : > { %v470_v30 = vpop.f32.mrb[6].mxu0 }
  0xf8   : > { %v481_v31 = vadd.f32 %v594_v27, %v473_v28  ;;  %v631_v32 = vpop.f32.mrb[7].mxu0 }
  0xfa   : > { %v483_v33 = vmul.f32 0.044715, %v481_v31  ;;  %v482_v39 = vmul.f32 0.5, %v481_v31 }
  0xfc   : > { %v484_v34 = vmul.f32 %v483_v33, %v481_v31 }
  0xfe   : > { %v485_v35 = vmul.f32 %v484_v34, %v481_v31 }
 0x100   : > { %v486_v36 = vadd.f32 %v485_v35, %v481_v31 }
 0x102   : > { %v487_v37 = vmul.f32 0.7978846, %v486_v36 }
 0x104   : > { %648 = vtanh.f32 %v487_v37 }
 0x10e   : > { %v649_v38 = vpop.eup %648 }
 0x10f   : > { %v489_v40 = vadd.f32 1.0, %v649_v38 }
 0x111   : > { %v490_v41 = vmul.f32 %v489_v40, %v482_v39 }
 0x113   : > { %v491_v42 = vadd.f32 %v490_v41, %v275_v5 }
 0x115   : > { %v494_v43 = vsel %vm316_vm1, %v491_v42, 0.0 }
 0x116   : > { %495 = vadd.xlane.f32.xlu0 %v494_v43 }
 0x1a3   : > { %v496_v44 = vpop.xlane.xlu0 %495 }
 0x1a4   : > { %v498_v45 = vmul.f32 0.03125, %v496_v44 }
 0x1a6   : > { %v499_v46 = vsub.f32 %v491_v42, %v498_v45 }
 0x1a8   : > { %v500_v47 = vmul.f32 %v499_v46, %v499_v46 }
 0x1aa   : > { %v501_v48 = vsel %vm316_vm1, %v500_v47, 0.0 }
 0x1ab   : > { %502 = vadd.xlane.f32.xlu0 %v501_v48 }
 0x238   : > { %v503_v49 = vpop.xlane.xlu0 %502 }
 0x239   : > { %v504_v50 = vmul.f32 0.03125, %v503_v49 }
 0x23b   : > { %v505_v51 = vadd.f32 1e-06, %v504_v50 }
 0x23d   : > { %650 = vrsqrt.f32 %v505_v51 }
 0x247   : > { %v651_v52 = vpop.eup %650 }
 0x248   : > { %v507_v54 = vmul.f32 %v651_v52, %v499_v46 }
 0x24a   : > { %v514_v56 = vmul.f32 %v595_v53, %v507_v54 }
 0x24c   : > { %v521_v57 = vadd.f32 %v596_v55, %v514_v56 }
 0x24e   : > { %v522_v58 = vpack.c.bf16 %v521_v57, %v521_v57 }
 0x250   : > { %524 = vst.msk [vmem:[%s273_s30] sm:$0xf] %vm523_vm8, %v522_v58 }
 0x251 PF: > { %s17_s24 = sadd.s32 1, %s658_s24  }
 0x252   : > { %p14_p4 = scmp.ge.s32.totalorder %s17_s24, 4  }
 0x254   :  { %16 = sbr.rel (!%p14_p4) target bundleno = 1 (0x1), region = 78 }

// kernel: transformer_decoder_forward.9
= control target key start
LH: loop header
LB: loop body
LE: loop exit
PB: predicated region body
PF: predicated region fallthrough
CT: control target
= control target key end

     0   :  { %s2232_s13 = smov 0   ;;  %s2234_s14 = smov 0   ;;  %s2527_s0 = inlined_call_operand.vmem [shape: bf16[2,8,32], index: 0, kind: input, shape index: {}]   ;;  %s2528_s1 = inlined_call_operand.vmem [shape: bf16[2,12,32], index: 1, kind: input, shape index: {}]   ;;  %s2529_s2 = inlined_call_operand.vmem [shape: f32[1,32], index: 2, kind: input, shape index: {}]   ;;  %s2530_s3 = inlined_call_operand.vmem [shape: f32[1,32], index: 3, kind: input, shape index: {}]   ;;  %s2531_s4 = inlined_call_operand.vmem [shape: bf16[32,32], index: 4, kind: input, shape index: {}]   ;;  %s2532_s5 = inlined_call_operand.vmem [shape: f32[1,32], index: 5, kind: input, shape index: {}]   ;;  %s2533_s6 = inlined_call_operand.vmem [shape: bf16[32,64], index: 6, kind: input, shape index: {}]   ;;  %s2534_s7 = inlined_call_operand.vmem [shape: f32[1,64], index: 7, kind: input, shape index: {}]   ;;  %s2535_s8 = inlined_call_operand.vmem [shape: bf16[32,32], index: 8, kind: input, shape index: {}]   ;;  %s2536_s9 = inlined_call_operand.vmem [shape: f32[1,32], index: 9, kind: input, shape index: {}]   ;;  %s2537_s10 = inlined_call_operand.vmem [shape: bf16[2,8,32], index: 10, kind: output, shape index: {}]  }
   0x1   :  { %s2236_s15 = smov 0  }
   0x2 LB: > { %s32_s16 = sadd.s32 1, %s2159_s14  ;;  %p1946_p0 = scmp.ge.s32.totalorder %s2163_s15, 1  ;;  %s2163_s15 = sphi %s2236_s15, %s20_s15   ;;  %s2159_s14 = sphi %s2234_s14, %s2539_s14   ;;  %s2155_s13 = sphi %s2232_s13, %s2538_s13  }
   0x3   : > { %p34_p1 = scmp.ge.s32.totalorder %s32_s16, 2  ;;  %p340_p2 = scmp.lt.s32.totalorder %s2163_s15, 3 }
   0x5   : > { %s2541_s16 = smov (%p34_p1, %s32_s16), 0  ;;  %p341_p3 = pnand %p1946_p0, %p340_p2 }
   0x6   : > { %p387_p4 = scmp.lt.s32.totalorder (!%p341_p3), %s2155_s13, 1  ;;  %vm411_vm0 = vcmask (!%p341_p3), 261120   ;;  %v2116_v3 = vld [vmem:[%s2533_s6] sm:$0xff] (!%p341_p3)   ;;  %v2165_v4 = vmov (!%p341_p3), 0.0   ;;  %vm2166_vm1 = vmmov (!%p341_p3), 0   ;;  %v2117_v5 = vld [vmem:[%s2533_s6 + $0x8] sm:$0xff] (!%p341_p3)   ;;  %v592_v34 = vlaneseq (!%p341_p3) }
   0x7   : > { %344 = sbr.rel (%p341_p3) target bundleno = 1857 (0x741), region = 60  ;;  %2016 = vmatprep.subr.bf16.mxu1 (!%p341_p3), %v2165_v4  ;;  %2020 = vmatprep.mubr.msk.bf16.mxu1 (!%p341_p3), %vm2166_vm1, %v2165_v4  ;;  %v2119_v12 = vld [vmem:[%s2531_s4] sm:$0xff] (!%p341_p3)   ;;  %v2120_v13 = vld [vmem:[%s2531_s4 + $0x8] sm:$0xff] (!%p341_p3)   ;;  %s2168_s21 = smov (!%p341_p3), 104   ;;  %v2170_v32 = vmov (!%p341_p3), 1983009808  }
   0x8   : > { %2017 = vmatpush3.bf16.msra.mxu1 (!%p341_p3), %v2116_v3  ;;  %2008 = vmatprep.subr.bf16.mxu0 (!%p341_p3), %v2165_v4  ;;  %v1957_v14 = vld [vmem:[%s2534_s7] ss:$0 sm:$0xff] (!%p341_p3)  ;;  %s2169_s22 = smov (!%p341_p3), 112   ;;  %v590_v33 = vunpack.c.l.s4 (!%p341_p3), %v2170_v32  ;;  %v593_v36 = vshrl.u32 (!%p341_p3), %v592_v34, 7  ;;  %v2171_v39 = vmov (!%p341_p3), 1934713408  }
   0x9   : > { %2018 = vmatprep.subr.bf16.mxu1 (!%p341_p3), %v2165_v4  ;;  %2012 = vmatprep.mubr.msk.bf16.mxu0 (!%p341_p3), %vm2166_vm1, %v2165_v4  ;;  %v1951_v26 = vld [vmem:[%s2529_s2] ss:$0 sm:$0xff] (!%p341_p3)  ;;  %v607_v40 = vunpack.c.l.s4 (!%p341_p3), %v2171_v39  ;;  %v2172_v59 = vmov (!%p341_p3), 0   ;;  %vm1201_vm2 = vcmask (!%p341_p3), 64512   ;;  %vm1386_vm3 = vcmask (!%p341_p3), 97280   ;;  %s2173_s29 = smov (!%p341_p3), 96  }
   0xa   : > { %2009 = vmatpush3.bf16.msra.mxu0 (!%p341_p3), %v2119_v12  ;;  %v1952_v28 = vld [vmem:[%s2530_s3] ss:$0 sm:$0xff] (!%p341_p3)  ;;  %v591_v35 = vunpack.c.0.s8 (!%p341_p3), %v590_v33  ;;  %vm1450_vm4 = vcmask (!%p341_p3), 1045504   ;;  %s2174_s19 = smov (!%p341_p3), 16   ;;  %vm1781_vm5 = vcmask (!%p341_p3), 130048   ;;  %vm1783_vm6 = vcmask (!%p341_p3), 195584  }
   0xb   : > { %2010 = vmatprep.subr.bf16.mxu0 (!%p341_p3), %v2165_v4  ;;  %v608_v44 = vunpack.c.0.s8 (!%p341_p3), %v607_v40  ;;  %vm1854_vm7 = vcmask (!%p341_p3), 257024  }
   0xc   : > { %2019 = vmatpush3.bf16.msra.mxu1 (!%p341_p3), %v2117_v5  ;;  %v2315_v38 = vsub.s32 (!%p341_p3), %v591_v35, %v593_v36 }
   0xd   : > { %2030 = vmatprep.subr.bf16.mxu1 (!%p341_p3), %v2165_v4  ;;  %v2329_v48 = vsub.s32 (!%p341_p3), %v608_v44, %v593_v36 }
   0xe   : > { %s2543_s13 = smov (!%p387_p4, %s2155_s13), 1  ;;  %2011 = vmatpush3.bf16.msra.mxu0 %v2120_v13 }
   0xf   : > { %s1947_s17 = sshll.u32 %s2543_s13, 2  ;;  %s1982_s23 = sshll.u32 %s2543_s13, 3  ;;  %2024 = vmatprep.subr.bf16.mxu0 %v2165_v4 }
  0x10   : > { %s393_s20 = scalar_lea.vmem %s2527_s0, %s1947_s17  ;;  %s398_s26 = scalar_lea.vmem %s2528_s1, %s1982_s23 }
  0x11   : > { %v407_v0 = vld [vmem:[%s393_s20] sm:$0xf]  ;;  %s2167_s20 = smov 120  }
  0x12   : > { %v2258_v1 = vunpack.c.l.bf16 %v407_v0  ;;  %v2118_v6 = vld [vmem:[%s398_s26] sm:$0x3f]   ;;  %s405_s26 = scalar_lea.vmem %s2537_s10, %s1947_s17 }
  0x13   : > { %2021 = vmatmul.mubr.msk.bf16.vlgmr.msra.gmra.mrb[0].mxu1 %vm411_vm0, %v2118_v6 }
  0x14   : > { %v412_v2 = vsel %vm411_vm0, %v2258_v1, 0.0  ;;  %2032 = vmatprep.mubr.msk.bf16.mxu1 %vm2166_vm1, %v2165_v4 }
  0x15   : > { %413 = vadd.xlane.f32.xlu0 %v412_v2 }
  0xa2   : > { %v414_v7 = vpop.xlane.xlu0 %413 }
  0xa3   : > { %v416_v8 = vmul.f32 0.03125, %v414_v7 }
  0xa5   : > { %v417_v9 = vsub.f32 %v2258_v1, %v416_v8 }
  0xa7   : > { %v418_v10 = vmul.f32 %v417_v9, %v417_v9 }
  0xa9   : > { %v419_v11 = vsel %vm411_vm0, %v418_v10, 0.0 }
  0xaa   : > { %420 = vadd.xlane.f32.xlu0 %v419_v11 }
  0xe6   : > { %v574_v15 = vpop.f32.mrb[0].mxu1 }
  0xe7   : > { %v575_v16 = vadd.f32 %v1957_v14, %v574_v15  ;;  %v2022_v17 = vpop.f32.mrb[1].mxu1 }
  0xe8   : > { %v577_v18 = vpop.f32.mrb[2].mxu1 }
  0xe9   : > { %v578_v19 = vadd.f32 %v1957_v14, %v577_v18  ;;  %v2023_v20 = vpop.f32.mrb[3].mxu1 }
  0xeb   : > { %v2296_v21 = vpack.c.bf16 %v578_v19, %v575_v16 }
  0xed   : > { %752 = vrot.lane.b32.xlu1 %v2296_v21, %s2167_s20  ;;  %758 = vrot.lane.b32.xlu0 %v2296_v21, %s2168_s21  ;;  %v767_v46 = vrot.slane %v2296_v21, %v2315_v38 }
  0xf1   : > { %755 = vrot.lane.b32.xlu1 %v2296_v21, %s2169_s22 }
 0x137   : > { %v421_v22 = vpop.xlane.xlu0 %420 }
 0x138   : > { %v422_v23 = vmul.f32 0.03125, %v421_v22 }
 0x13a   : > { %v423_v24 = vadd.f32 1e-06, %v422_v23 }
 0x13c   : > { %2123 = vrsqrt.f32 %v423_v24 }
 0x146   : > { %v2124_v25 = vpop.eup %2123 }
 0x147   : > { %v425_v27 = vmul.f32 %v2124_v25, %v417_v9 }
 0x149   : > { %v432_v29 = vmul.f32 %v1951_v26, %v425_v27 }
 0x14b   : > { %v439_v30 = vadd.f32 %v1952_v28, %v432_v29 }
 0x14d   : > { %v440_v31 = vpack.c.bf16 %v439_v30, %v439_v30 }
 0x14f   : > { %2013 = vmatmul.mubr.msk.bf16.vlgmr.msra.gmra.mrb[0].mxu0 %vm411_vm0, %v440_v31 }
 0x150   : > { %2026 = vmatprep.mubr.msk.bf16.mxu0 %vm2166_vm1, %v2165_v4 }
 0x15f   : > { %v2313_v37 = vpop.permute.xlu1 %752  ;;  %v2317_v41 = vpop.permute.xlu0 %758 }
 0x160   : > { %v810_v43 = vrot.slane %v2313_v37, %v2315_v38  ;;  %v818_v45 = vrot.slane %v2317_v41, %v2315_v38  ;;  %v1963_v58 = vcombine.high %v2313_v37, %v2317_v41 }
 0x162   : > { %v820_v49 = vcombine.low %v810_v43, %v818_v45  ;;  %v821_v52 = vcombine.high %v810_v43, %v818_v45  ;;  %v843_v2 = vrot.slane %v1963_v58, %v2329_v48 }
 0x163   : > { %v2319_v42 = vpop.permute.xlu1 %755 }
 0x164   : > { %v775_v47 = vrot.slane %v2319_v42, %v2315_v38  ;;  %v828_v53 = vrot.slane %v820_v49, %v2329_v48  ;;  %v835_v56 = vrot.slane %v821_v52, %v2329_v48  ;;  %v1962_v57 = vcombine.high %v2296_v21, %v2319_v42 }
 0x165   : > { %v846_v13 = vcombine.high %v843_v2, %v2172_v59  ;;  %v883_v19 = vshrl.u32 %v843_v2, 16 }
 0x166   : > { %v777_v50 = vcombine.low %v767_v46, %v775_v47  ;;  %v778_v51 = vcombine.high %v767_v46, %v775_v47  ;;  %v844_v60 = vcombine.high %v828_v53, %v2172_v59  ;;  %v845_v63 = vcombine.high %v835_v56, %v2172_v59 }
 0x167   : > { %v800_v0 = vrot.slane %v1962_v57, %v2329_v48  ;;  %v852_v5 = vshrl.u32 %v828_v53, 16  ;;  %v868_v7 = vshrl.u32 %v835_v56, 16  ;;  %v889_v26 = vshrl.u32 %v846_v13, 16 }
 0x168   : > { %v785_v54 = vrot.slane %v777_v50, %v2329_v48  ;;  %v792_v55 = vrot.slane %v778_v51, %v2329_v48  ;;  %v860_v6 = vshrl.u32 %v844_v60, 16  ;;  %v876_v11 = vshrl.u32 %v845_v63, 16 }
 0x169   : > { %v803_v12 = vcombine.high %v800_v0, %v2172_v59  ;;  %v882_v16 = vshrl.u32 %v800_v0, 16  ;;  %v881_v28 = vpack.i.b16 %v843_v2, %v800_v0 }
 0x16a   : > { %v801_v61 = vcombine.high %v785_v54, %v2172_v59  ;;  %v802_v62 = vcombine.high %v792_v55, %v2172_v59  ;;  %v851_v3 = vshrl.u32 %v785_v54, 16  ;;  %v867_v9 = vshrl.u32 %v792_v55, 16 }
 0x16b   : > { %v849_v14 = vpack.i.b16 %v828_v53, %v785_v54  ;;  %v865_v15 = vpack.i.b16 %v835_v56, %v792_v55  ;;  %v888_v25 = vshrl.u32 %v803_v12, 16  ;;  %v884_v29 = vpack.i.b16 %v883_v19, %v882_v16 }
 0x16c   : > { %v859_v8 = vshrl.u32 %v801_v61, 16  ;;  %v875_v10 = vshrl.u32 %v802_v62, 16  ;;  %v853_v17 = vpack.i.b16 %v852_v5, %v851_v3  ;;  %v857_v18 = vpack.i.b16 %v844_v60, %v801_v61  ;;  %v1953_v5 = vld [vmem:[%s2532_s5] ss:$0 sm:$0xff] }
 0x16d   : > { %v869_v22 = vpack.i.b16 %v868_v7, %v867_v9  ;;  %v873_v23 = vpack.i.b16 %v845_v63, %v802_v62  ;;  %v891_v27 = vcombine.low %v849_v14, %v865_v15  ;;  %v887_v30 = vpack.i.b16 %v846_v13, %v803_v12 }
 0x16e   : > { %v861_v20 = vpack.i.b16 %v860_v6, %v859_v8  ;;  %v877_v24 = vpack.i.b16 %v876_v11, %v875_v10  ;;  %v890_v34 = vpack.i.b16 %v889_v26, %v888_v25 }
 0x16f   : > { %v899_v31 = vcombine.low %v857_v18, %v873_v23  ;;  %v927_v32 = vcombine.low %v853_v17, %v869_v22  ;;  %v898_v35 = vrot.slane %v891_v27, %v2315_v38  ;;  %v917_v44 = vcombine.low %v881_v28, %v887_v30 }
 0x170   : > { %v935_v33 = vcombine.low %v861_v20, %v877_v24  ;;  %v953_v45 = vcombine.low %v884_v29, %v890_v34 }
 0x171   : > { %v906_v36 = vrot.slane %v899_v31, %v2315_v38  ;;  %v934_v39 = vrot.slane %v927_v32, %v2315_v38  ;;  %v924_v49 = vrot.slane %v917_v44, %v2329_v48 }
 0x172   : > { %v942_v40 = vrot.slane %v935_v33, %v2315_v38  ;;  %v960_v50 = vrot.slane %v953_v45, %v2329_v48 }
 0x173   : > { %v909_v43 = vcombine.low %v898_v35, %v906_v36 }
 0x174   : > { %v945_v46 = vcombine.low %v934_v39, %v942_v40 }
 0x175   : > { %v916_v47 = vrot.slane %v909_v43, %v2329_v48 }
 0x176   : > { %v952_v51 = vrot.slane %v945_v46, %v2329_v48 }
 0x177   : > { %v925_v52 = vcombine.low %v916_v47, %v924_v49  ;;  %v2355_v55 = vcombine.high %v916_v47, %v924_v49 }
 0x178   : > { %v961_v53 = vcombine.low %v952_v51, %v960_v50  ;;  %v2357_v56 = vcombine.high %v952_v51, %v960_v50 }
 0x179   : > { %v966_v54 = vshrl.u32 %v925_v52, 16  ;;  %v972_v63 = vshrl.u32 %v2355_v55, 16 }
 0x17a   : > { %v965_v57 = vpack.i.b16 %v961_v53, %v925_v52  ;;  %v967_v58 = vshrl.u32 %v961_v53, 16  ;;  %v971_v60 = vpack.i.b16 %v2357_v56, %v2355_v55  ;;  %v973_v0 = vshrl.u32 %v2357_v56, 16 }
 0x17c   : > { %v1206_v61 = vsel %vm1201_vm2, %v965_v57, 0  ;;  %v968_v62 = vpack.i.b16 %v967_v58, %v966_v54  ;;  %v2366_v3 = vpack.i.b16 %v973_v0, %v972_v63 }
 0x17d   : > { %2025 = vmatpush3.bf16.xpose.msra.mxu0 %v1206_v61 }
 0x17e   : > { %v1252_v2 = vsel %vm1201_vm2, %v968_v62, 0  ;;  %2036 = vmatprep.subr.bf16.mxu0 %v2165_v4 }
 0x17f   : > { %2031 = vmatpush3.bf16.xpose.msra.mxu1 %v1252_v2 }
 0x180   : > { %2042 = vmatprep.subr.bf16.mxu1 %v2165_v4 }
 0x222   : > { %v501_v6 = vpop.f32.mrb[0].mxu0 }
 0x223   : > { %v502_v7 = vadd.f32 %v1953_v5, %v501_v6  ;;  %v2014_v8 = vpop.f32.mrb[1].mxu0 }
 0x224   : > { %v504_v9 = vpop.f32.mrb[2].mxu0 }
 0x225   : > { %v581_v10 = vpack.c.bf16 %v502_v7, %v502_v7  ;;  %v2015_v11 = vpop.f32.mrb[3].mxu0 }
 0x226   : > { %v1298_v11 = vsel %vm1201_vm2, %v971_v60, 0 }
 0x227   : > { %583 = vrot.lane.b32.xlu1 %v581_v10, %s2167_s20  ;;  %v595_v14 = vrot.slane %v581_v10, %v2315_v38  ;;  %s2175_s20 = smov 8  }
 0x22b   : > { %585 = vrot.lane.b32.xlu1 %v581_v10, %s2169_s22 }
 0x22f   : > { %587 = vrot.lane.b32.xlu1 %v581_v10, %s2168_s21  ;;  %s2176_s21 = smov 24  }
 0x299   : > { %v584_v12 = vpop.permute.xlu1 %583 }
 0x29a   : > { %v629_v22 = vrot.slane %v584_v12, %v2315_v38 }
 0x29d   : > { %v586_v13 = vpop.permute.xlu1 %585 }
 0x29e   : > { %v603_v15 = vrot.slane %v586_v13, %v2315_v38 }
 0x2a0   : > { %v604_v16 = vcombine.low %v595_v14, %v603_v15  ;;  %v605_v17 = vcombine.high %v595_v14, %v603_v15  ;;  %v1344_v14 = vsel %vm1201_vm2, %v2366_v3, 0 }
 0x2a1   : > { %v588_v18 = vpop.permute.xlu1 %587 }
 0x2a2   : > { %v612_v19 = vrot.slane %v604_v16, %v2329_v48  ;;  %v637_v20 = vrot.slane %v588_v18, %v2315_v38  ;;  %v619_v23 = vrot.slane %v605_v17, %v2329_v48 }
 0x2a4   : > { %v638_v24 = vcombine.low %v629_v22, %v637_v20  ;;  %v639_v25 = vcombine.high %v629_v22, %v637_v20  ;;  %v620_v26 = vcombine.high %v612_v19, %v2172_v59  ;;  %v621_v29 = vcombine.high %v619_v23, %v2172_v59 }
 0x2a5   : > { %v660_v30 = vshrl.u32 %v612_v19, 16  ;;  %v676_v36 = vshrl.u32 %v619_v23, 16 }
 0x2a6   : > { %v646_v27 = vrot.slane %v638_v24, %v2329_v48  ;;  %v653_v28 = vrot.slane %v639_v25, %v2329_v48  ;;  %v668_v35 = vshrl.u32 %v620_v26, 16  ;;  %v684_v47 = vshrl.u32 %v621_v29, 16 }
 0x2a8   : > { %v654_v31 = vcombine.high %v646_v27, %v2172_v59  ;;  %v655_v32 = vcombine.high %v653_v28, %v2172_v59  ;;  %v658_v33 = vpack.i.b16 %v646_v27, %v612_v19  ;;  %v661_v34 = vshrl.u32 %v646_v27, 16 }
 0x2a9   : > { %v674_v39 = vpack.i.b16 %v653_v28, %v619_v23  ;;  %v677_v40 = vshrl.u32 %v653_v28, 16 }
 0x2aa   : > { %v662_v43 = vpack.i.b16 %v661_v34, %v660_v30  ;;  %v666_v44 = vpack.i.b16 %v654_v31, %v620_v26  ;;  %v669_v45 = vshrl.u32 %v654_v31, 16  ;;  %v682_v46 = vpack.i.b16 %v655_v32, %v621_v29 }
 0x2ab   : > { %v678_v49 = vpack.i.b16 %v677_v40, %v676_v36  ;;  %v685_v50 = vshrl.u32 %v655_v32, 16  ;;  %v688_v51 = vcombine.low %v658_v33, %v674_v39 }
 0x2ac   : > { %v670_v52 = vpack.i.b16 %v669_v45, %v668_v35  ;;  %v696_v53 = vcombine.low %v666_v44, %v682_v46 }
 0x2ad   : > { %v686_v54 = vpack.i.b16 %v685_v50, %v684_v47  ;;  %v713_v57 = vcombine.low %v662_v43, %v678_v49  ;;  %v695_v58 = vrot.slane %v688_v51, %v2315_v38 }
 0x2ae   : > { %v703_v61 = vrot.slane %v696_v53, %v2315_v38 }
 0x2af   : > { %v721_v62 = vcombine.low %v670_v52, %v686_v54  ;;  %v720_v0 = vrot.slane %v713_v57, %v2315_v38 }
 0x2b0   : > { %v704_v63 = vcombine.low %v695_v58, %v703_v61 }
 0x2b1   : > { %v728_v2 = vrot.slane %v721_v62, %v2315_v38 }
 0x2b2   : > { %v711_v6 = vrot.slane %v704_v63, %v2329_v48 }
 0x2b3   : > { %v729_v5 = vcombine.low %v720_v0, %v728_v2 }
 0x2b4   : > { %v741_v9 = vshrl.u32 %v711_v6, 16  ;;  %v712_v15 = vcombine.high %v711_v6, %v2172_v59 }
 0x2b5   : > { %v736_v7 = vrot.slane %v729_v5, %v2329_v48 }
 0x2b6   : > { %v747_v60 = vshrl.u32 %v712_v15, 16 }
 0x2b7   : > { %v740_v8 = vpack.i.b16 %v736_v7, %v711_v6  ;;  %v742_v10 = vshrl.u32 %v736_v7, 16  ;;  %v737_v13 = vcombine.high %v736_v7, %v2172_v59 }
 0x2b9   : > { %2027 = vmatmul.mubr.msk.bf16.vlgmr.msra.gmra.mrb[4].mxu0 %vm1201_vm2, %v740_v8  ;;  %v743_v12 = vpack.i.b16 %v742_v10, %v741_v9  ;;  %v748_v55 = vshrl.u32 %v737_v13, 16  ;;  %v746_v56 = vpack.i.b16 %v737_v13, %v712_v15 }
 0x2ba   : > { %2037 = vmatpush3.bf16.xpose.msra.mxu0 %v1298_v11  ;;  %2038 = vmatprep.mubr.msk.bf16.mxu0 %vm2166_vm1, %v2165_v4 }
 0x2bb   : > { %2033 = vmatmul.mubr.msk.bf16.vlgmr.msra.gmra.mrb[4].mxu1 %vm1201_vm2, %v743_v12  ;;  %2048 = vmatprep.subr.bf16.mxu0 %v2165_v4  ;;  %v749_v16 = vpack.i.b16 %v748_v55, %v747_v60 }
 0x2bc   : > { %2043 = vmatpush3.bf16.xpose.msra.mxu1 %v1344_v14  ;;  %2044 = vmatprep.mubr.msk.bf16.mxu1 %vm2166_vm1, %v2165_v4 }
 0x2bd   : > { %2054 = vmatprep.subr.bf16.mxu1 %v2165_v4 }
 0x2c1   : > { %2039 = vmatmul.mubr.msk.bf16.vlgmr.msra.gmra.mrb[8].mxu0 %vm1201_vm2, %v746_v56 }
 0x2c2   : > { %2050 = vmatprep.mubr.msk.bf16.mxu0 %vm2166_vm1, %v2165_v4 }
 0x2c3   : > { %2045 = vmatmul.mubr.msk.bf16.vlgmr.msra.gmra.mrb[8].mxu1 %vm1201_vm2, %v749_v16 }
 0x2c4   : > { %2056 = vmatprep.mubr.msk.bf16.mxu1 %vm2166_vm1, %v2165_v4 }
 0x38c   : > { %v1242_v3 = vpop.f32.mrb[4].mxu0 }
 0x38d   : > { %v2028_v17 = vpop.f32.mrb[5].mxu0  ;;  %v1387_v18 = vsel %vm1386_vm3, %v1242_v3, -inf }
 0x38e   : > { %v1288_v19 = vpop.f32.mrb[4].mxu1  ;;  %1388 = vmax.xlane.f32.xlu1 %v1387_v18  ;;  %v1245_v20 = vpop.f32.mrb[6].mxu0 }
 0x38f   : > { %v2029_v22 = vpop.f32.mrb[7].mxu0  ;;  %v2034_v23 = vpop.f32.mrb[5].mxu1  ;;  %v1390_v24 = vsel %vm1386_vm3, %v1288_v19, -inf }
 0x390   : > { %1391 = vmax.xlane.f32.xlu0 %v1390_v24  ;;  %v1291_v25 = vpop.f32.mrb[6].mxu1 }
 0x391   : > { %v2035_v26 = vpop.f32.mrb[7].mxu1 }
 0x394   : > { %v1334_v27 = vpop.f32.mrb[8].mxu0 }
 0x395   : > { %v2040_v28 = vpop.f32.mrb[9].mxu0  ;;  %v1393_v29 = vsel %vm1386_vm3, %v1334_v27, -inf }
 0x396   : > { %v1380_v30 = vpop.f32.mrb[8].mxu1  ;;  %1394 = vmax.xlane.f32.xlu1 %v1393_v29  ;;  %v1337_v31 = vpop.f32.mrb[10].mxu0 }
 0x397   : > { %v2041_v32 = vpop.f32.mrb[11].mxu0  ;;  %v2046_v33 = vpop.f32.mrb[9].mxu1  ;;  %v1396_v36 = vsel %vm1386_vm3, %v1380_v30, -inf }
 0x398   : > { %v1383_v34 = vpop.f32.mrb[10].mxu1 }
 0x399   : > { %v2047_v35 = vpop.f32.mrb[11].mxu1 }
 0x39a   : > { %1397 = vmax.xlane.f32.xlu1 %v1396_v36 }
 0x3a6   : > { %975 = vrot.lane.b32.xlu0 %v2296_v21, %s2173_s29 }
 0x3ab   : > { %977 = vrot.lane.b32.xlu1 %v2313_v37, %s2173_s29 }
 0x41b   : > { %v1389_v39 = vpop.xlane.xlu1 %1388 }
 0x41c   : > { %v1399_v40 = vsub.f32 %v1242_v3, %v1389_v39 }
 0x41d   : > { %v1392_v43 = vpop.xlane.xlu0 %1391 }
 0x41e   : > { %v1403_v44 = vmul.f32 1.442695, %v1399_v40  ;;  %v1400_v45 = vsub.f32 %v1288_v19, %v1392_v43 }
 0x420   : > { %2125 = vpow2.f32 %v1403_v44  ;;  %v1405_v46 = vmul.f32 1.442695, %v1400_v45 }
 0x422   : > { %2127 = vpow2.f32 %v1405_v46 }
 0x423   : > { %v1395_v37 = vpop.xlane.xlu1 %1394 }
 0x424   : > { %v1401_v53 = vsub.f32 %v1334_v27, %v1395_v37 }
 0x426   : > { %v1407_v57 = vmul.f32 1.442695, %v1401_v53 }
 0x427   : > { %v1398_v51 = vpop.xlane.xlu1 %1397 }
 0x428   : > { %v1402_v52 = vsub.f32 %v1380_v30, %v1398_v51 }
 0x42a   : > { %v2421_v47 = vpop.eup %2125  ;;  %v1409_v54 = vmul.f32 1.442695, %v1402_v52 }
 0x42b   : > { %v1411_v49 = vsel %vm1386_vm3, %v2421_v47, 0.0  ;;  %v978_v63 = vpop.permute.xlu1 %977 }
 0x42c   : > { %v2425_v50 = vpop.eup %2127  ;;  %1412 = vadd.xlane.f32.xlu0 %v1411_v49  ;;  %2129 = vpow2.f32 %v1409_v54  ;;  %v1036_v6 = vrot.slane %v978_v63, %v2315_v38 }
 0x42d   : > { %v1414_v21 = vsel %vm1386_vm3, %v2425_v50, 0.0  ;;  %2131 = vpow2.f32 %v1407_v57 }
 0x42e   : > { %1415 = vadd.xlane.f32.xlu1 %v1414_v21 }
 0x436   : > { %v2431_v58 = vpop.eup %2129 }
 0x437   : > { %v2433_v61 = vpop.eup %2131  ;;  %v1420_v62 = vsel %vm1386_vm3, %v2431_v58, 0.0 }
 0x43f   : > { %979 = vrot.lane.b32.xlu1 %v2319_v42, %s2173_s29  ;;  %v1417_v42 = vsel %vm1386_vm3, %v2433_v61, 0.0 }
 0x442   : > { %981 = vrot.lane.b32.xlu0 %v2317_v41, %s2173_s29  ;;  %v976_v41 = vpop.permute.xlu0 %975 }
 0x443   : > { %v993_v13 = vrot.slane %v976_v41, %v2315_v38 }
 0x461   : > { %1421 = vadd.xlane.f32.xlu0 %v1420_v62 }
 0x463   : > { %1418 = vadd.xlane.f32.xlu1 %v1417_v42 }
 0x4b9   : > { %v1413_v0 = vpop.xlane.xlu0 %1412 }
 0x4ba   : > { %2133 = vrcp.f32 %v1413_v0 }
 0x4bb   : > { %v1416_v2 = vpop.xlane.xlu1 %1415 }
 0x4bc   : > { %2135 = vrcp.f32 %v1416_v2 }
 0x4bd   : > { %v982_v5 = vpop.permute.xlu0 %981 }
 0x4be   : > { %v1044_v7 = vrot.slane %v982_v5, %v2315_v38  ;;  %v1965_v8 = vcombine.high %v978_v63, %v982_v5 }
 0x4bf   : > { %v980_v9 = vpop.permute.xlu1 %979 }
 0x4c0   : > { %v1046_v10 = vcombine.low %v1036_v6, %v1044_v7  ;;  %v1047_v11 = vcombine.high %v1036_v6, %v1044_v7  ;;  %v1001_v12 = vrot.slane %v980_v9, %v2315_v38  ;;  %v1964_v14 = vcombine.high %v976_v41, %v980_v9 }
 0x4c1   : > { %v1069_v56 = vrot.slane %v1965_v8, %v2329_v48 }
 0x4c2   : > { %v1054_v15 = vrot.slane %v1046_v10, %v2329_v48  ;;  %v1061_v55 = vrot.slane %v1047_v11, %v2329_v48  ;;  %v1003_v60 = vcombine.low %v993_v13, %v1001_v12  ;;  %v1004_v16 = vcombine.high %v993_v13, %v1001_v12 }
 0x4c3   : > { %v1026_v3 = vrot.slane %v1964_v14, %v2329_v48  ;;  %v1072_v22 = vcombine.high %v1069_v56, %v2172_v59  ;;  %v1109_v24 = vshrl.u32 %v1069_v56, 16 }
 0x4c4   : > { %v1070_v17 = vcombine.high %v1054_v15, %v2172_v59  ;;  %v1071_v18 = vcombine.high %v1061_v55, %v2172_v59  ;;  %v1011_v19 = vrot.slane %v1003_v60, %v2329_v48  ;;  %v1018_v20 = vrot.slane %v1004_v16, %v2329_v48  ;;  %v2134_v29 = vpop.eup %2133 }
 0x4c5   : > { %v1078_v23 = vshrl.u32 %v1054_v15, 16  ;;  %v1094_v25 = vshrl.u32 %v1061_v55, 16  ;;  %v1029_v28 = vcombine.high %v1026_v3, %v2172_v59  ;;  %v1427_v49 = vmul.f32 %v2134_v29, %v1413_v0 }
 0x4c6   : > { %v1027_v26 = vcombine.high %v1011_v19, %v2172_v59  ;;  %v1028_v27 = vcombine.high %v1018_v20, %v2172_v59  ;;  %v1075_v30 = vpack.i.b16 %v1054_v15, %v1011_v19  ;;  %v1077_v31 = vshrl.u32 %v1011_v19, 16  ;;  %v2136_v46 = vpop.eup %2135 }
 0x4c7   : > { %v1091_v32 = vpack.i.b16 %v1061_v55, %v1018_v20  ;;  %v1093_v33 = vshrl.u32 %v1018_v20, 16  ;;  %v1086_v34 = vshrl.u32 %v1070_v17, 16  ;;  %v1102_v35 = vshrl.u32 %v1071_v18, 16 }
 0x4c8   : > { %v1083_v36 = vpack.i.b16 %v1070_v17, %v1027_v26  ;;  %v1085_v39 = vshrl.u32 %v1027_v26, 16  ;;  %v1079_v40 = vpack.i.b16 %v1078_v23, %v1077_v31  ;;  %v1099_v44 = vpack.i.b16 %v1071_v18, %v1028_v27 }
 0x4c9   : > { %v1095_v43 = vpack.i.b16 %v1094_v25, %v1093_v33  ;;  %v1101_v45 = vshrl.u32 %v1028_v27, 16  ;;  %v1115_v21 = vshrl.u32 %v1072_v22, 16  ;;  %v1108_v51 = vshrl.u32 %v1026_v3, 16 }
 0x4ca   : > { %v1087_v37 = vpack.i.b16 %v1086_v34, %v1085_v39  ;;  %v1113_v59 = vpack.i.b16 %v1072_v22, %v1029_v28  ;;  %v1114_v53 = vshrl.u32 %v1029_v28, 16  ;;  %v1117_v54 = vcombine.low %v1075_v30, %v1091_v32 }
 0x4cb   : > { %v1103_v52 = vpack.i.b16 %v1102_v35, %v1101_v45  ;;  %v1107_v57 = vpack.i.b16 %v1069_v56, %v1026_v3  ;;  %v1125_v62 = vcombine.low %v1083_v36, %v1099_v44  ;;  %v1428_v42 = vmul.f32 %v2136_v46, %v1416_v2 }
 0x4cc   : > { %v1110_v41 = vpack.i.b16 %v1109_v24, %v1108_v51  ;;  %v1116_v63 = vpack.i.b16 %v1115_v21, %v1114_v53  ;;  %v1153_v5 = vcombine.low %v1079_v40, %v1095_v43  ;;  %v1124_v7 = vrot.slane %v1117_v54, %v2315_v38  ;;  %v2121_v54 = vld [vmem:[%s2535_s8] sm:$0xff]  }
 0x4cd   : > { %v1143_v6 = vcombine.low %v1107_v57, %v1113_v59  ;;  %v1132_v8 = vrot.slane %v1125_v62, %v2315_v38  ;;  %v1161_v9 = vcombine.low %v1087_v37, %v1103_v52  ;;  %v1431_v0 = vsub.f32 2.0, %v1427_v49 }
 0x4ce   : > { %v1160_v11 = vrot.slane %v1153_v5, %v2315_v38  ;;  %v1179_v13 = vcombine.low %v1110_v41, %v1116_v63  ;;  %v1432_v14 = vsub.f32 2.0, %v1428_v42 }
 0x4cf   : > { %v1135_v10 = vcombine.low %v1124_v7, %v1132_v8  ;;  %v1168_v12 = vrot.slane %v1161_v9, %v2315_v38  ;;  %v1150_v2 = vrot.slane %v1143_v6, %v2329_v48  ;;  %v1435_v56 = vmul.f32 %v2134_v29, %v1431_v0 }
 0x4d0   : > { %v1186_v3 = vrot.slane %v1179_v13, %v2329_v48  ;;  %v1436_v17 = vmul.f32 %v2136_v46, %v1432_v14 }
 0x4d1   : > { %v1142_v15 = vrot.slane %v1135_v10, %v2329_v48  ;;  %v1171_v55 = vcombine.low %v1160_v11, %v1168_v12  ;;  %v1439_v22 = vmul.f32 %v2421_v47, %v1435_v56 }
 0x4d2   : > { %v1440_v27 = vmul.f32 %v2425_v50, %v1436_v17 }
 0x4d3   : > { %v1151_v60 = vcombine.low %v1142_v15, %v1150_v2  ;;  %v1178_v16 = vrot.slane %v1171_v55, %v2329_v48  ;;  %v1152_v19 = vcombine.high %v1142_v15, %v1150_v2  ;;  %v1443_v32 = vpack.c.bf16 %v1439_v22, %v1439_v22 }
 0x4d4   : > { %v1444_v47 = vpack.c.bf16 %v1440_v27, %v1440_v27 }
 0x4d5   : > { %v1187_v18 = vcombine.low %v1178_v16, %v1186_v3  ;;  %v1188_v20 = vcombine.high %v1178_v16, %v1186_v3  ;;  %v1192_v24 = vshrl.u32 %v1151_v60, 16  ;;  %v1198_v31 = vshrl.u32 %v1152_v19, 16 }
 0x4d7   : > { %v1191_v23 = vpack.i.b16 %v1187_v18, %v1151_v60  ;;  %v1193_v25 = vshrl.u32 %v1187_v18, 16  ;;  %v1199_v26 = vshrl.u32 %v1188_v20, 16  ;;  %v1197_v30 = vpack.i.b16 %v1188_v20, %v1152_v19  ;;  %v2122_v19 = vld [vmem:[%s2535_s8 + $0x8] sm:$0xff]  }
 0x4d9   : > { %v1452_v28 = vsel %vm1450_vm4, %v1191_v23, 0  ;;  %v1194_v29 = vpack.i.b16 %v1193_v25, %v1192_v24  ;;  %v1200_v34 = vpack.i.b16 %v1199_v26, %v1198_v31  ;;  %v1544_v35 = vsel %vm1450_vm4, %v1197_v30, 0 }
 0x4da   : > { %2049 = vmatpush3.bf16.msra.mxu0 %v1452_v28 }
 0x4db   : > { %v1498_v33 = vsel %vm1450_vm4, %v1194_v29, 0  ;;  %2060 = vmatprep.subr.bf16.mxu0 %v2165_v4  ;;  %v1590_v50 = vsel %vm1450_vm4, %v1200_v34, 0 }
 0x4dc   : > { %2055 = vmatpush3.bf16.msra.mxu1 %v1498_v33 }
 0x4dd   : > { %2051 = vmatmul.mubr.msk.bf16.vlgmr.msra.gmra.mrb[12].mxu0 %vm1386_vm3, %v1443_v32  ;;  %2066 = vmatprep.subr.bf16.mxu1 %v2165_v4 }
 0x4de   : > { %2061 = vmatpush3.bf16.msra.mxu0 %v1544_v35  ;;  %2062 = vmatprep.mubr.msk.bf16.mxu0 %vm2166_vm1, %v2165_v4 }
 0x4df   : > { %2057 = vmatmul.mubr.msk.bf16.vlgmr.msra.gmra.mrb[12].mxu1 %vm1386_vm3, %v1444_v47  ;;  %2072 = vmatprep.subr.bf16.mxu0 %v2165_v4 }
 0x4e0   : > { %2067 = vmatpush3.bf16.msra.mxu1 %v1590_v50  ;;  %2068 = vmatprep.mubr.msk.bf16.mxu1 %vm2166_vm1, %v2165_v4 }
 0x4ee   : > { %v1422_v36 = vpop.xlane.xlu0 %1421 }
 0x4ef   : > { %2137 = vrcp.f32 %v1422_v36 }
 0x4f0   : > { %v1419_v39 = vpop.xlane.xlu1 %1418 }
 0x4f1   : > { %2139 = vrcp.f32 %v1419_v39 }
 0x4f9   : > { %v2138_v40 = vpop.eup %2137 }
 0x4fa   : > { %v1430_v43 = vmul.f32 %v2138_v40, %v1422_v36 }
 0x4fb   : > { %v2140_v44 = vpop.eup %2139 }
 0x4fc   : > { %v1434_v45 = vsub.f32 2.0, %v1430_v43  ;;  %v1429_v46 = vmul.f32 %v2140_v44, %v1419_v39 }
 0x4fe   : > { %v1438_v49 = vmul.f32 %v2138_v40, %v1434_v45  ;;  %v1433_v21 = vsub.f32 2.0, %v1429_v46 }
 0x500   : > { %v1442_v37 = vmul.f32 %v2431_v58, %v1438_v49  ;;  %v1437_v51 = vmul.f32 %v2140_v44, %v1433_v21 }
 0x502   : > { %v1446_v52 = vpack.c.bf16 %v1442_v37, %v1442_v37  ;;  %v1441_v59 = vmul.f32 %v2433_v61, %v1437_v51 }
 0x504   : > { %v1445_v53 = vpack.c.bf16 %v1441_v59, %v1441_v59  ;;  %2069 = vmatmul.mubr.msk.bf16.vlgmr.msra.gmra.mrb[16].mxu1 %vm1386_vm3, %v1446_v52  ;;  %v1976_v59 = vld [vmem:[%s2536_s9] ss:$0 sm:$0xff] }
 0x506   : > { %2063 = vmatmul.mubr.msk.bf16.vlgmr.msra.gmra.mrb[16].mxu0 %vm1386_vm3, %v1445_v53 }
 0x507   : > { %2076 = vmatprep.mubr.msk.bf16.mxu0 %vm2166_vm1, %v2165_v4  ;;  %2073 = vmatpush3.bf16.msra.mxu0 %v2121_v54 }
 0x508   : > { %2074 = vmatprep.subr.bf16.mxu0 %v2165_v4 }
 0x50b   : > { %2075 = vmatpush3.bf16.msra.mxu0 %v2122_v19 }
 0x5b0   : > { %v1488_v58 = vpop.f32.mrb[12].mxu0 }
 0x5b1   : > { %v2052_v57 = vpop.f32.mrb[13].mxu0 }
 0x5b2   : > { %v1491_v62 = vpop.f32.mrb[14].mxu0  ;;  %v1534_v42 = vpop.f32.mrb[12].mxu1 }
 0x5b3   : > { %v2053_v61 = vpop.f32.mrb[15].mxu0  ;;  %v2058_v41 = vpop.f32.mrb[13].mxu1 }
 0x5b4   : > { %v1537_v63 = vpop.f32.mrb[14].mxu1 }
 0x5b5   : > { %v2059_v5 = vpop.f32.mrb[15].mxu1 }
 0x5d7   : > { %v1626_v6 = vpop.f32.mrb[16].mxu1 }
 0x5d8   : > { %v1648_v7 = vcombine.low %v1534_v42, %v1626_v6  ;;  %v1649_v8 = vcombine.high %v1534_v42, %v1626_v6  ;;  %v2070_v9 = vpop.f32.mrb[17].mxu1 }
 0x5d9   : > { %v1580_v0 = vpop.f32.mrb[16].mxu0  ;;  %v1629_v10 = vpop.f32.mrb[18].mxu1 }
 0x5da   : > { %v1632_v11 = vcombine.low %v1488_v58, %v1580_v0  ;;  %v1633_v12 = vcombine.high %v1488_v58, %v1580_v0  ;;  %v2064_v13 = vpop.f32.mrb[17].mxu0  ;;  %v2071_v14 = vpop.f32.mrb[19].mxu1  ;;  %v1656_v4 = vrot.slane %v1648_v7, %v2315_v38  ;;  %v1663_v2 = vrot.slane %v1649_v8, %v2315_v38 }
 0x5db   : > { %v1583_v15 = vpop.f32.mrb[18].mxu0 }
 0x5dc   : > { %v1640_v55 = vrot.slane %v1632_v11, %v2315_v38  ;;  %v1647_v56 = vrot.slane %v1633_v12, %v2315_v38  ;;  %v2065_v60 = vpop.f32.mrb[19].mxu0 }
 0x5de   : > { %v1664_v16 = vcombine.low %v1640_v55, %v1656_v4  ;;  %v1665_v3 = vcombine.high %v1640_v55, %v1656_v4  ;;  %v1680_v17 = vcombine.low %v1647_v56, %v1663_v2  ;;  %v1681_v18 = vcombine.high %v1647_v56, %v1663_v2 }
 0x5e0   : > { %v1672_v20 = vrot.slane %v1664_v16, %v2329_v48  ;;  %v1679_v22 = vrot.slane %v1665_v3, %v2329_v48  ;;  %v1688_v23 = vrot.slane %v1680_v17, %v2329_v48  ;;  %v1695_v24 = vrot.slane %v1681_v18, %v2329_v48 }
 0x5e2   : > { %v1700_v25 = vcombine.low %v1672_v20, %v1679_v22  ;;  %v1974_v26 = vcombine.high %v1672_v20, %v1679_v22  ;;  %v1716_v27 = vcombine.low %v1688_v23, %v1695_v24  ;;  %v1975_v28 = vcombine.high %v1688_v23, %v1695_v24 }
 0x5e4   : > { %v1707_v29 = vrot.slane %v1700_v25, %v2315_v38  ;;  %v1715_v30 = vrot.slane %v1974_v26, %v2315_v38  ;;  %v1723_v31 = vrot.slane %v1716_v27, %v2315_v38  ;;  %v1731_v32 = vrot.slane %v1975_v28, %v2315_v38 }
 0x5e6   : > { %v1733_v33 = vcombine.high %v1707_v29, %v1715_v30  ;;  %v1749_v34 = vcombine.high %v1723_v31, %v1731_v32  ;;  %v1732_v47 = vcombine.low %v1707_v29, %v1715_v30  ;;  %v1748_v35 = vcombine.low %v1723_v31, %v1731_v32 }
 0x5e8   : > { %v1747_v50 = vrot.slane %v1733_v33, %v2329_v48  ;;  %v1763_v36 = vrot.slane %v1749_v34, %v2329_v48  ;;  %v1740_v39 = vrot.slane %v1732_v47, %v2329_v48  ;;  %v1756_v40 = vrot.slane %v1748_v35, %v2329_v48 }
 0x5ea   : > { %v1766_v43 = vcombine.low %v1747_v50, %v1763_v36  ;;  %v1765_v44 = vcombine.high %v1740_v39, %v1756_v40  ;;  %v1767_v45 = vcombine.high %v1747_v50, %v1763_v36  ;;  %v1764_v46 = vcombine.low %v1740_v39, %v1756_v40 }
 0x5ec   : > { %1773 = vrot.lane.b32.xlu1 %v1766_v43, %s2174_s19  ;;  %1769 = vrot.lane.b32.xlu0 %v1765_v44, %s2175_s20 }
 0x5f0   : > { %1777 = vrot.lane.b32.xlu1 %v1767_v45, %s2176_s21 }
 0x65e   : > { %v1774_v38 = vpop.permute.xlu1 %1773  ;;  %v1770_v49 = vpop.permute.xlu0 %1769 }
 0x65f   : > { %v1780_v21 = vsel %vm1201_vm2, %v1764_v46, %v1770_v49 }
 0x660   : > { %v1782_v51 = vsel %vm1781_vm5, %v1780_v21, %v1774_v38 }
 0x662   : > { %v1778_v37 = vpop.permute.xlu1 %1777 }
 0x663   : > { %v1784_v48 = vsel %vm1783_vm6, %v1782_v51, %v1778_v37 }
 0x664   : > { %v1785_v52 = vpack.c.bf16 %v1784_v48, %v1784_v48 }
 0x666   : > { %2077 = vmatmul.mubr.msk.bf16.vlgmr.msra.gmra.mrb[20].mxu0 %vm411_vm0, %v1785_v52 }
 0x739   : > { %v1846_v53 = vpop.f32.mrb[20].mxu0 }
 0x73a   : > { %v1847_v54 = vadd.f32 %v1976_v59, %v1846_v53  ;;  %v2078_v58 = vpop.f32.mrb[21].mxu0 }
 0x73b   : > { %v1849_v57 = vpop.f32.mrb[22].mxu0 }
 0x73c   : > { %v1852_v62 = vadd.f32 %v1847_v54, %v2258_v1  ;;  %v2079_v42 = vpop.f32.mrb[23].mxu0 }
 0x73e   : > { %v1853_v61 = vpack.c.bf16 %v1852_v62, %v1852_v62 }
 0x740   : > { %1855 = vst.msk [vmem:[%s405_s26] sm:$0xf] %vm1854_vm7, %v1853_v61 }
 0x741 PF: > { %s20_s15 = sadd.s32 1, %s2163_s15   ;;  %s2538_s13 = smov %s2159_s14 }
 0x742   : > { %p17_p5 = scmp.ge.s32.totalorder %s20_s15, 4   ;;  %s2539_s14 = smov %s2541_s16 }
 0x744   :  { %19 = sbr.rel (!%p17_p5) target bundleno = 2 (0x2), region = 93 }

// kernel: transformer_decoder_forward.8
= control target key start
LH: loop header
LB: loop body
LE: loop exit
PB: predicated region body
PF: predicated region fallthrough
CT: control target
= control target key end

     0   :  { %s2187_s17 = smov 0   ;;  %s2189_s18 = smov 0   ;;  %s2452_s0 = inlined_call_operand.vmem [shape: bf16[2,8,32], index: 0, kind: input, shape index: {}, may-alias: {0,1}]   ;;  %s2453_s1 = inlined_call_operand.vmem [shape: bf16[2,8,32], index: 1, kind: input, shape index: {}, may-alias: {0,1}]   ;;  %s2454_s2 = inlined_call_operand.vmem [shape: f32[8,8], index: 2, kind: input, shape index: {}]   ;;  %s2455_s3 = inlined_call_operand.vmem [shape: f32[1,32], index: 3, kind: input, shape index: {}]   ;;  %s2456_s4 = inlined_call_operand.vmem [shape: f32[1,32], index: 4, kind: input, shape index: {}]   ;;  %s2457_s5 = inlined_call_operand.vmem [shape: bf16[32,32], index: 5, kind: input, shape index: {}]   ;;  %s2458_s6 = inlined_call_operand.vmem [shape: f32[1,32], index: 6, kind: input, shape index: {}]   ;;  %s2459_s7 = inlined_call_operand.vmem [shape: bf16[32,64], index: 7, kind: input, shape index: {}]   ;;  %s2460_s8 = inlined_call_operand.vmem [shape: f32[1,64], index: 8, kind: input, shape index: {}]   ;;  %s2461_s9 = inlined_call_operand.vmem [shape: bf16[32,32], index: 9, kind: input, shape index: {}]   ;;  %s2462_s10 = inlined_call_operand.vmem [shape: f32[1,32], index: 10, kind: input, shape index: {}]   ;;  %s2463_s11 = inlined_call_operand.vmem [shape: bf16[2,8,32], index: 11, kind: output, shape index: {}]  }
   0x1   :  { %s2191_s19 = smov 0  }
   0x2 LB: > { %s33_s20 = sadd.s32 1, %s2109_s18  ;;  %p1902_p0 = scmp.ge.s32.totalorder %s2113_s19, 1  ;;  %s2113_s19 = sphi %s2191_s19, %s21_s19   ;;  %s2109_s18 = sphi %s2189_s18, %s2465_s18   ;;  %s2105_s17 = sphi %s2187_s17, %s2464_s17  }
   0x3   : > { %p35_p1 = scmp.ge.s32.totalorder %s33_s20, 2  ;;  %p373_p2 = scmp.lt.s32.totalorder %s2113_s19, 3 }
   0x5   : > { %s2467_s20 = smov (%p35_p1, %s33_s20), 0  ;;  %p374_p3 = pnand %p1902_p0, %p373_p2 }
   0x6   : > { %p425_p4 = scmp.lt.s32.totalorder (!%p374_p3), %s2105_s17, 1  ;;  %vm452_vm0 = vcmask (!%p374_p3), 261120   ;;  %v2065_v16 = vld [vmem:[%s2459_s7] sm:$0xff] (!%p374_p3)   ;;  %v2115_v18 = vmov (!%p374_p3), 0.0   ;;  %v2067_v19 = vld [vmem:[%s2459_s7 + $0x8] sm:$0xff] (!%p374_p3)   ;;  %vm2116_vm1 = vmmov (!%p374_p3), 0   ;;  %v643_v55 = vlaneseq (!%p374_p3) }
   0x7   : > { %377 = sbr.rel (%p374_p3) target bundleno = 1864 (0x748), region = 64  ;;  %v2066_v17 = vld [vmem:[%s2457_s5] sm:$0xff] (!%p374_p3)   ;;  %1965 = vmatprep.subr.bf16.mxu1 (!%p374_p3), %v2115_v18  ;;  %1957 = vmatprep.subr.bf16.mxu0 (!%p374_p3), %v2115_v18  ;;  %v2068_v20 = vld [vmem:[%s2457_s5 + $0x8] sm:$0xff] (!%p374_p3)   ;;  %s2117_s29 = smov (!%p374_p3), 120   ;;  %v2120_v53 = vmov (!%p374_p3), 1983009808  }
   0x8   : > { %1966 = vmatpush3.bf16.msra.mxu1 (!%p374_p3), %v2065_v16  ;;  %1958 = vmatpush3.bf16.msra.mxu0 (!%p374_p3), %v2066_v17  ;;  %v1906_v28 = vld [vmem:[%s2455_s3] ss:$0 sm:$0xff] (!%p374_p3)  ;;  %s2118_s30 = smov (!%p374_p3), 112   ;;  %s2119_s12 = smov (!%p374_p3), 104   ;;  %v641_v54 = vunpack.c.l.s4 (!%p374_p3), %v2120_v53  ;;  %v644_v57 = vshrl.u32 (!%p374_p3), %v643_v55, 7  ;;  %vm1141_vm2 = vcmask (!%p374_p3), 64512  }
   0x9   : > { %1967 = vmatprep.subr.bf16.mxu1 (!%p374_p3), %v2115_v18  ;;  %1969 = vmatprep.mubr.msk.bf16.mxu1 (!%p374_p3), %vm2116_vm1, %v2115_v18  ;;  %v1907_v30 = vld [vmem:[%s2456_s4] ss:$0 sm:$0xff] (!%p374_p3)  ;;  %v2121_v58 = vmov (!%p374_p3), 1934713408   ;;  %s2123_s15 = smov (!%p374_p3), 96   ;;  %vm1389_vm3 = vcmask (!%p374_p3), 1043456  }
   0xa   : > { %1959 = vmatprep.subr.bf16.mxu0 (!%p374_p3), %v2115_v18  ;;  %1961 = vmatprep.mubr.msk.bf16.mxu0 (!%p374_p3), %vm2116_vm1, %v2115_v18  ;;  %v1912_v39 = vld [vmem:[%s2460_s8] ss:$0 sm:$0xff] (!%p374_p3)  ;;  %v642_v56 = vunpack.c.0.s8 (!%p374_p3), %v641_v54  ;;  %v658_v59 = vunpack.c.l.s4 (!%p374_p3), %v2121_v58  ;;  %s2125_s25 = smov (!%p374_p3), 8   ;;  %s2126_s26 = smov (!%p374_p3), 24   ;;  %vm1720_vm4 = vcmask (!%p374_p3), 130048   ;;  %vm1722_vm5 = vcmask (!%p374_p3), 195584  }
   0xb   : > { %v1908_v44 = vld [vmem:[%s2458_s6] ss:$0 sm:$0xff] (!%p374_p3)  ;;  %vm1793_vm6 = vcmask (!%p374_p3), 257024  }
   0xc   : > { %1968 = vmatpush3.bf16.msra.mxu1 (!%p374_p3), %v2067_v19  ;;  %1960 = vmatpush3.bf16.msra.mxu0 (!%p374_p3), %v2068_v20  ;;  %v2268_v60 = vsub.s32 (!%p374_p3), %v642_v56, %v644_v57  ;;  %v659_v61 = vunpack.c.0.s8 (!%p374_p3), %v658_v59 }
   0xd   : > { %1979 = vmatprep.subr.bf16.mxu1 (!%p374_p3), %v2115_v18  ;;  %1973 = vmatprep.subr.bf16.mxu0 (!%p374_p3), %v2115_v18 }
   0xe   : > { %s2469_s17 = smov (!%p425_p4, %s2105_s17), 1 }
   0xf   : > { %s2205_s21 = sshll.u32 %s2469_s17, 2 }
  0x10   : > { %s435_s24 = scalar_lea.vmem %s2453_s1, %s2205_s21  ;;  %s431_s27 = scalar_lea.vmem %s2452_s0, %s2205_s21 }
  0x11   : > { %v548_v0 = vld [vmem:[%s435_s24] sm:$0xf]  ;;  %s2124_s24 = smov 16  }
  0x12   : > { %v549_v1 = vunpack.c.l.bf16 %v548_v0  ;;  %v448_v2 = vld [vmem:[%s431_s27] sm:$0xf]  ;;  %v2274_v0 = vsub.s32 %v659_v61, %v644_v57 }
  0x13   : > { %v2215_v3 = vunpack.c.l.bf16 %v448_v2 }
  0x14   : > { %v550_v4 = vsel %vm452_vm0, %v549_v1, 0.0 }
  0x15   : > { %551 = vadd.xlane.f32.xlu0 %v550_v4  ;;  %v453_v5 = vsel %vm452_vm0, %v2215_v3, 0.0 }
  0x19   : > { %454 = vadd.xlane.f32.xlu0 %v453_v5 }
  0xa2   : > { %v552_v6 = vpop.xlane.xlu0 %551 }
  0xa3   : > { %v553_v7 = vmul.f32 0.03125, %v552_v6 }
  0xa5   : > { %v554_v8 = vsub.f32 %v549_v1, %v553_v7 }
  0xa6   : > { %v455_v9 = vpop.xlane.xlu0 %454 }
  0xa7   : > { %v457_v10 = vmul.f32 0.03125, %v455_v9  ;;  %v555_v11 = vmul.f32 %v554_v8, %v554_v8 }
  0xa9   : > { %v458_v12 = vsub.f32 %v2215_v3, %v457_v10  ;;  %v556_v13 = vsel %vm452_vm0, %v555_v11, 0.0 }
  0xaa   : > { %557 = vadd.xlane.f32.xlu1 %v556_v13  ;;  %v2122_v13 = vmov 0  }
  0xab   : > { %v459_v14 = vmul.f32 %v458_v12, %v458_v12 }
  0xad   : > { %v460_v15 = vsel %vm452_vm0, %v459_v14, 0.0 }
  0xae   : > { %461 = vadd.xlane.f32.xlu1 %v460_v15 }
 0x137   : > { %v558_v21 = vpop.xlane.xlu1 %557 }
 0x138   : > { %v559_v22 = vmul.f32 0.03125, %v558_v21 }
 0x13a   : > { %v560_v23 = vadd.f32 1e-06, %v559_v22 }
 0x13b   : > { %v462_v24 = vpop.xlane.xlu1 %461 }
 0x13c   : > { %2071 = vrsqrt.f32 %v560_v23  ;;  %v463_v25 = vmul.f32 0.03125, %v462_v24 }
 0x13e   : > { %v464_v26 = vadd.f32 1e-06, %v463_v25 }
 0x140   : > { %2073 = vrsqrt.f32 %v464_v26 }
 0x146   : > { %v2072_v27 = vpop.eup %2071 }
 0x147   : > { %v562_v29 = vmul.f32 %v2072_v27, %v554_v8 }
 0x149   : > { %v563_v31 = vmul.f32 %v1906_v28, %v562_v29 }
 0x14a   : > { %v2074_v32 = vpop.eup %2073 }
 0x14b   : > { %v564_v33 = vadd.f32 %v1907_v30, %v563_v31  ;;  %v466_v34 = vmul.f32 %v2074_v32, %v458_v12 }
 0x14d   : > { %v565_v35 = vpack.c.bf16 %v564_v33, %v564_v33  ;;  %v473_v36 = vmul.f32 %v1906_v28, %v466_v34 }
 0x14f   : > { %1970 = vmatmul.mubr.msk.bf16.vlgmr.msra.gmra.mrb[0].mxu1 %vm452_vm0, %v565_v35  ;;  %v480_v37 = vadd.f32 %v1907_v30, %v473_v36 }
 0x150   : > { %1981 = vmatprep.mubr.msk.bf16.mxu1 %vm2116_vm1, %v2115_v18 }
 0x151   : > { %v481_v38 = vpack.c.bf16 %v480_v37, %v480_v37 }
 0x153   : > { %1962 = vmatmul.mubr.msk.bf16.vlgmr.msra.gmra.mrb[0].mxu0 %vm452_vm0, %v481_v38 }
 0x154   : > { %1975 = vmatprep.mubr.msk.bf16.mxu0 %vm2116_vm1, %v2115_v18 }
 0x222   : > { %v626_v40 = vpop.f32.mrb[0].mxu1 }
 0x223   : > { %v627_v41 = vadd.f32 %v1912_v39, %v626_v40  ;;  %v1971_v42 = vpop.f32.mrb[1].mxu1 }
 0x224   : > { %v629_v43 = vpop.f32.mrb[2].mxu1 }
 0x225   : > { %v2263_v45 = vpack.c.bf16 %v627_v41, %v627_v41  ;;  %v1972_v46 = vpop.f32.mrb[3].mxu1 }
 0x226   : > { %v542_v47 = vpop.f32.mrb[0].mxu0 }
 0x227   : > { %v543_v48 = vadd.f32 %v1908_v44, %v542_v47  ;;  %803 = vrot.lane.b32.xlu0 %v2263_v45, %s2117_s29  ;;  %805 = vrot.lane.b32.xlu1 %v2263_v45, %s2118_s30  ;;  %v1963_v49 = vpop.f32.mrb[1].mxu0  ;;  %v815_v1 = vrot.slane %v2263_v45, %v2268_v60 }
 0x228   : > { %v545_v50 = vpop.f32.mrb[2].mxu0 }
 0x229   : > { %v632_v51 = vpack.c.bf16 %v543_v48, %v543_v48  ;;  %v1964_v52 = vpop.f32.mrb[3].mxu0 }
 0x22b   : > { %807 = vrot.lane.b32.xlu1 %v2263_v45, %s2119_s12  ;;  %636 = vrot.lane.b32.xlu0 %v632_v51, %s2118_s30  ;;  %v646_v15 = vrot.slane %v632_v51, %v2268_v60 }
 0x22f   : > { %634 = vrot.lane.b32.xlu1 %v632_v51, %s2117_s29 }
 0x233   : > { %638 = vrot.lane.b32.xlu1 %v632_v51, %s2119_s12  ;;  %s446_s12 = scalar_lea.vmem %s2463_s11, %s2205_s21 }
 0x299   : > { %v2270_v62 = vpop.permute.xlu1 %805  ;;  %v2272_v63 = vpop.permute.xlu0 %803 }
 0x29a   : > { %v823_v2 = vrot.slane %v2270_v62, %v2268_v60  ;;  %v849_v11 = vrot.slane %v2272_v63, %v2268_v60 }
 0x29c   : > { %v824_v4 = vcombine.low %v815_v1, %v823_v2  ;;  %v825_v5 = vcombine.high %v815_v1, %v823_v2 }
 0x29d   : > { %v2280_v6 = vpop.permute.xlu1 %807  ;;  %v637_v7 = vpop.permute.xlu0 %636 }
 0x29e   : > { %v832_v8 = vrot.slane %v824_v4, %v2274_v0  ;;  %v857_v9 = vrot.slane %v2280_v6, %v2268_v60  ;;  %v654_v10 = vrot.slane %v637_v7, %v2268_v60  ;;  %v839_v12 = vrot.slane %v825_v5, %v2274_v0 }
 0x2a0   : > { %v840_v14 = vcombine.high %v832_v8, %v2122_v13  ;;  %v858_v16 = vcombine.low %v849_v11, %v857_v9  ;;  %v859_v17 = vcombine.high %v849_v11, %v857_v9  ;;  %v655_v20 = vcombine.low %v646_v15, %v654_v10 }
 0x2a1   : > { %v635_v19 = vpop.permute.xlu1 %634  ;;  %v656_v21 = vcombine.high %v646_v15, %v654_v10  ;;  %v841_v24 = vcombine.high %v839_v12, %v2122_v13  ;;  %v880_v25 = vshrl.u32 %v832_v8, 16  ;;  %v896_v27 = vshrl.u32 %v839_v12, 16 }
 0x2a2   : > { %v866_v22 = vrot.slane %v858_v16, %v2274_v0  ;;  %v873_v23 = vrot.slane %v859_v17, %v2274_v0  ;;  %v888_v26 = vshrl.u32 %v840_v14, 16  ;;  %v663_v34 = vrot.slane %v655_v20, %v2274_v0 }
 0x2a3   : > { %v670_v35 = vrot.slane %v656_v21, %v2274_v0  ;;  %v904_v41 = vshrl.u32 %v841_v24, 16  ;;  %v680_v50 = vrot.slane %v635_v19, %v2268_v60 }
 0x2a4   : > { %v874_v28 = vcombine.high %v866_v22, %v2122_v13  ;;  %v875_v29 = vcombine.high %v873_v23, %v2122_v13  ;;  %v878_v30 = vpack.i.b16 %v866_v22, %v832_v8  ;;  %v881_v31 = vshrl.u32 %v866_v22, 16 }
 0x2a5   : > { %v894_v32 = vpack.i.b16 %v873_v23, %v839_v12  ;;  %v897_v33 = vshrl.u32 %v873_v23, 16  ;;  %v639_v40 = vpop.permute.xlu1 %638  ;;  %v671_v49 = vcombine.high %v663_v34, %v2122_v13  ;;  %v672_v53 = vcombine.high %v670_v35, %v2122_v13 }
 0x2a6   : > { %v882_v36 = vpack.i.b16 %v881_v31, %v880_v25  ;;  %v886_v37 = vpack.i.b16 %v874_v28, %v840_v14  ;;  %v889_v38 = vshrl.u32 %v874_v28, 16  ;;  %v902_v39 = vpack.i.b16 %v875_v29, %v841_v24 }
 0x2a7   : > { %v898_v42 = vpack.i.b16 %v897_v33, %v896_v27  ;;  %v905_v43 = vshrl.u32 %v875_v29, 16  ;;  %v908_v44 = vcombine.low %v878_v30, %v894_v32  ;;  %v688_v51 = vrot.slane %v639_v40, %v2268_v60 }
 0x2a8   : > { %v890_v46 = vpack.i.b16 %v889_v38, %v888_v26  ;;  %v916_v47 = vcombine.low %v886_v37, %v902_v39  ;;  %v711_v61 = vshrl.u32 %v663_v34, 16  ;;  %v719_v5 = vshrl.u32 %v671_v49, 16 }
 0x2a9   : > { %v906_v48 = vpack.i.b16 %v905_v43, %v904_v41  ;;  %v933_v52 = vcombine.low %v882_v36, %v898_v42  ;;  %v915_v54 = vrot.slane %v908_v44, %v2268_v60  ;;  %v689_v56 = vcombine.low %v680_v50, %v688_v51 }
 0x2aa   : > { %v923_v55 = vrot.slane %v916_v47, %v2268_v60  ;;  %v690_v57 = vcombine.high %v680_v50, %v688_v51  ;;  %v727_v7 = vshrl.u32 %v670_v35, 16  ;;  %v735_v8 = vshrl.u32 %v672_v53, 16 }
 0x2ab   : > { %v941_v58 = vcombine.low %v890_v46, %v906_v48  ;;  %v697_v1 = vrot.slane %v689_v56, %v2274_v0  ;;  %v940_v9 = vrot.slane %v933_v52, %v2268_v60 }
 0x2ac   : > { %v924_v59 = vcombine.low %v915_v54, %v923_v55  ;;  %v704_v2 = vrot.slane %v690_v57, %v2274_v0 }
 0x2ad   : > { %v948_v4 = vrot.slane %v941_v58, %v2268_v60  ;;  %v705_v10 = vcombine.high %v697_v1, %v2122_v13  ;;  %v709_v12 = vpack.i.b16 %v697_v1, %v663_v34  ;;  %v712_v14 = vshrl.u32 %v697_v1, 16 }
 0x2ae   : > { %v706_v11 = vcombine.high %v704_v2, %v2122_v13  ;;  %v725_v15 = vpack.i.b16 %v704_v2, %v670_v35  ;;  %v728_v16 = vshrl.u32 %v704_v2, 16  ;;  %v931_v17 = vrot.slane %v924_v59, %v2274_v0 }
 0x2af   : > { %v949_v19 = vcombine.low %v940_v9, %v948_v4  ;;  %v713_v20 = vpack.i.b16 %v712_v14, %v711_v61  ;;  %v717_v21 = vpack.i.b16 %v705_v10, %v671_v49  ;;  %v720_v22 = vshrl.u32 %v705_v10, 16 }
 0x2b0   : > { %v733_v23 = vpack.i.b16 %v706_v11, %v672_v53  ;;  %v729_v24 = vpack.i.b16 %v728_v16, %v727_v7  ;;  %v736_v25 = vshrl.u32 %v706_v11, 16  ;;  %v739_v26 = vcombine.low %v709_v12, %v725_v15 }
 0x2b1   : > { %v956_v27 = vrot.slane %v949_v19, %v2274_v0  ;;  %v721_v28 = vpack.i.b16 %v720_v22, %v719_v5  ;;  %v961_v35 = vshrl.u32 %v931_v17, 16  ;;  %v932_v44 = vcombine.high %v931_v17, %v2122_v13 }
 0x2b2   : > { %v747_v29 = vcombine.low %v717_v21, %v733_v23  ;;  %v737_v30 = vpack.i.b16 %v736_v25, %v735_v8  ;;  %v764_v31 = vcombine.low %v713_v20, %v729_v24  ;;  %v746_v33 = vrot.slane %v739_v26, %v2268_v60  ;;  %v1140_v8 = vld [vmem:[%s2454_s2] sm:$0xff] }
 0x2b3   : > { %v960_v32 = vpack.i.b16 %v956_v27, %v931_v17  ;;  %v962_v36 = vshrl.u32 %v956_v27, 16  ;;  %v957_v39 = vcombine.high %v956_v27, %v2122_v13  ;;  %v967_v52 = vshrl.u32 %v932_v44, 16 }
 0x2b4   : > { %v754_v34 = vrot.slane %v747_v29, %v2268_v60  ;;  %v772_v37 = vcombine.low %v721_v28, %v737_v30  ;;  %v771_v42 = vrot.slane %v764_v31, %v2268_v60 }
 0x2b5   : > { %v1146_v38 = vsel %vm1141_vm2, %v960_v32, 0  ;;  %v963_v41 = vpack.i.b16 %v962_v36, %v961_v35  ;;  %v968_v49 = vshrl.u32 %v957_v39, 16  ;;  %v966_v51 = vpack.i.b16 %v957_v39, %v932_v44 }
 0x2b6   : > { %v755_v40 = vcombine.low %v746_v33, %v754_v34  ;;  %1974 = vmatpush3.bf16.xpose.msra.mxu0 %v1146_v38  ;;  %v779_v43 = vrot.slane %v772_v37, %v2268_v60 }
 0x2b7   : > { %1985 = vmatprep.subr.bf16.mxu0 %v2115_v18  ;;  %v1192_v46 = vsel %vm1141_vm2, %v963_v41, 0  ;;  %v969_v56 = vpack.i.b16 %v968_v49, %v967_v52  ;;  %v1238_v57 = vsel %vm1141_vm2, %v966_v51, 0 }
 0x2b8   : > { %v780_v47 = vcombine.low %v771_v42, %v779_v43  ;;  %1980 = vmatpush3.bf16.xpose.msra.mxu1 %v1192_v46  ;;  %v762_v48 = vrot.slane %v755_v40, %v2274_v0 }
 0x2b9   : > { %1991 = vmatprep.subr.bf16.mxu1 %v2115_v18  ;;  %v1284_v61 = vsel %vm1141_vm2, %v969_v56, 0 }
 0x2ba   : > { %v787_v50 = vrot.slane %v780_v47, %v2274_v0  ;;  %v792_v54 = vshrl.u32 %v762_v48, 16  ;;  %v763_v1 = vcombine.high %v762_v48, %v2122_v13 }
 0x2bc   : > { %v791_v53 = vpack.i.b16 %v787_v50, %v762_v48  ;;  %v793_v55 = vshrl.u32 %v787_v50, 16  ;;  %v788_v59 = vcombine.high %v787_v50, %v2122_v13  ;;  %v798_v5 = vshrl.u32 %v763_v1, 16 }
 0x2be   : > { %1976 = vmatmul.mubr.msk.bf16.vlgmr.msra.gmra.mrb[4].mxu0 %vm1141_vm2, %v791_v53  ;;  %v794_v58 = vpack.i.b16 %v793_v55, %v792_v54  ;;  %v799_v2 = vshrl.u32 %v788_v59, 16  ;;  %v797_v4 = vpack.i.b16 %v788_v59, %v763_v1 }
 0x2bf   : > { %1986 = vmatpush3.bf16.xpose.msra.mxu0 %v1238_v57  ;;  %1987 = vmatprep.mubr.msk.bf16.mxu0 %vm2116_vm1, %v2115_v18 }
 0x2c0   : > { %1982 = vmatmul.mubr.msk.bf16.vlgmr.msra.gmra.mrb[4].mxu1 %vm1141_vm2, %v794_v58  ;;  %1997 = vmatprep.subr.bf16.mxu0 %v2115_v18  ;;  %v800_v7 = vpack.i.b16 %v799_v2, %v798_v5 }
 0x2c1   : > { %1992 = vmatpush3.bf16.xpose.msra.mxu1 %v1284_v61  ;;  %1993 = vmatprep.mubr.msk.bf16.mxu1 %vm2116_vm1, %v2115_v18 }
 0x2c2   : > { %2003 = vmatprep.subr.bf16.mxu1 %v2115_v18 }
 0x2c6   : > { %1988 = vmatmul.mubr.msk.bf16.vlgmr.msra.gmra.mrb[8].mxu0 %vm1141_vm2, %v797_v4 }
 0x2c7   : > { %1999 = vmatprep.mubr.msk.bf16.mxu0 %vm2116_vm1, %v2115_v18 }
 0x2c8   : > { %1994 = vmatmul.mubr.msk.bf16.vlgmr.msra.gmra.mrb[8].mxu1 %vm1141_vm2, %v800_v7 }
 0x2c9   : > { %2005 = vmatprep.mubr.msk.bf16.mxu1 %vm2116_vm1, %v2115_v18 }
 0x391   : > { %v1182_v9 = vpop.f32.mrb[4].mxu0 }
 0x392   : > { %v1183_v10 = vadd.f32 %v1182_v9, %v1140_v8  ;;  %v1977_v11 = vpop.f32.mrb[5].mxu0 }
 0x393   : > { %v1185_v12 = vpop.f32.mrb[6].mxu0  ;;  %v1228_v14 = vpop.f32.mrb[4].mxu1 }
 0x394   : > { %v1229_v15 = vadd.f32 %v1228_v14, %v1140_v8  ;;  %v1978_v16 = vpop.f32.mrb[7].mxu0  ;;  %v1983_v17 = vpop.f32.mrb[5].mxu1  ;;  %v1326_v19 = vsel %vm1141_vm2, %v1183_v10, -inf }
 0x395   : > { %v1231_v20 = vpop.f32.mrb[6].mxu1  ;;  %1327 = vmax.xlane.f32.xlu0 %v1326_v19 }
 0x396   : > { %v1984_v21 = vpop.f32.mrb[7].mxu1  ;;  %v1329_v22 = vsel %vm1141_vm2, %v1229_v15, -inf }
 0x397   : > { %1330 = vmax.xlane.f32.xlu1 %v1329_v22 }
 0x399   : > { %v1274_v23 = vpop.f32.mrb[8].mxu0 }
 0x39a   : > { %v1275_v24 = vadd.f32 %v1274_v23, %v1140_v8  ;;  %v1989_v25 = vpop.f32.mrb[9].mxu0 }
 0x39b   : > { %v1277_v26 = vpop.f32.mrb[10].mxu0  ;;  %v1320_v27 = vpop.f32.mrb[8].mxu1 }
 0x39c   : > { %v1321_v28 = vadd.f32 %v1320_v27, %v1140_v8  ;;  %v1990_v29 = vpop.f32.mrb[11].mxu0  ;;  %v1995_v30 = vpop.f32.mrb[9].mxu1  ;;  %v1332_v31 = vsel %vm1141_vm2, %v1275_v24, -inf }
 0x39d   : > { %v1323_v32 = vpop.f32.mrb[10].mxu1  ;;  %1333 = vmax.xlane.f32.xlu0 %v1332_v31 }
 0x39e   : > { %v1996_v33 = vpop.f32.mrb[11].mxu1  ;;  %v1335_v34 = vsel %vm1141_vm2, %v1321_v28, -inf }
 0x3a1   : > { %1336 = vmax.xlane.f32.xlu0 %v1335_v34 }
 0x3a8   : > { %972 = vrot.lane.b32.xlu1 %v2272_v63, %s2123_s15 }
 0x3ac   : > { %974 = vrot.lane.b32.xlu1 %v2270_v62, %s2123_s15 }
 0x422   : > { %v1328_v35 = vpop.xlane.xlu0 %1327 }
 0x423   : > { %v1338_v36 = vsub.f32 %v1183_v10, %v1328_v35 }
 0x424   : > { %v1331_v37 = vpop.xlane.xlu1 %1330 }
 0x425   : > { %v1342_v38 = vmul.f32 1.442695, %v1338_v36  ;;  %v1339_v39 = vsub.f32 %v1229_v15, %v1331_v37 }
 0x427   : > { %2075 = vpow2.f32 %v1342_v38  ;;  %v1344_v40 = vmul.f32 1.442695, %v1339_v39 }
 0x429   : > { %2077 = vpow2.f32 %v1344_v40 }
 0x42a   : > { %v1334_v62 = vpop.xlane.xlu0 %1333 }
 0x42b   : > { %v1340_v46 = vsub.f32 %v1275_v24, %v1334_v62 }
 0x42d   : > { %v1346_v48 = vmul.f32 1.442695, %v1340_v46 }
 0x42e   : > { %v1337_v44 = vpop.xlane.xlu0 %1336 }
 0x42f   : > { %v1341_v47 = vsub.f32 %v1321_v28, %v1337_v44  ;;  %2079 = vpow2.f32 %v1346_v48 }
 0x431   : > { %v2351_v41 = vpop.eup %2075  ;;  %v1348_v49 = vmul.f32 1.442695, %v1341_v47 }
 0x432   : > { %v1350_v42 = vsel %vm1141_vm2, %v2351_v41, 0.0 }
 0x433   : > { %v2355_v43 = vpop.eup %2077  ;;  %1351 = vadd.xlane.f32.xlu0 %v1350_v42  ;;  %2081 = vpow2.f32 %v1348_v49 }
 0x434   : > { %v1353_v63 = vsel %vm1141_vm2, %v2355_v43, 0.0 }
 0x435   : > { %1354 = vadd.xlane.f32.xlu1 %v1353_v63 }
 0x439   : > { %v2361_v50 = vpop.eup %2079 }
 0x43a   : > { %v1356_v52 = vsel %vm1141_vm2, %v2361_v50, 0.0 }
 0x43d   : > { %v2363_v51 = vpop.eup %2081 }
 0x446   : > { %976 = vrot.lane.b32.xlu1 %v2280_v6, %s2123_s15  ;;  %v1359_v6 = vsel %vm1141_vm2, %v2363_v51, 0.0 }
 0x449   : > { %970 = vrot.lane.b32.xlu0 %v2263_v45, %s2123_s15  ;;  %v973_v45 = vpop.permute.xlu1 %972 }
 0x44a   : > { %v1019_v61 = vrot.slane %v973_v45, %v2268_v60 }
 0x44d   : > { %v975_v53 = vpop.permute.xlu1 %974 }
 0x44e   : > { %v993_v57 = vrot.slane %v975_v53, %v2268_v60 }
 0x468   : > { %1357 = vadd.xlane.f32.xlu0 %v1356_v52 }
 0x46a   : > { %1360 = vadd.xlane.f32.xlu1 %v1359_v6 }
 0x4c0   : > { %v1352_v54 = vpop.xlane.xlu0 %1351 }
 0x4c1   : > { %2083 = vrcp.f32 %v1352_v54 }
 0x4c2   : > { %v1355_v55 = vpop.xlane.xlu1 %1354 }
 0x4c3   : > { %2085 = vrcp.f32 %v1355_v55 }
 0x4c4   : > { %v971_v56 = vpop.permute.xlu0 %970 }
 0x4c5   : > { %v985_v58 = vrot.slane %v971_v56, %v2268_v60 }
 0x4c6   : > { %v977_v59 = vpop.permute.xlu1 %976 }
 0x4c7   : > { %v994_v1 = vcombine.low %v985_v58, %v993_v57  ;;  %v995_v2 = vcombine.high %v985_v58, %v993_v57  ;;  %v1027_v4 = vrot.slane %v977_v59, %v2268_v60 }
 0x4c9   : > { %v1002_v5 = vrot.slane %v994_v1, %v2274_v0  ;;  %v1009_v7 = vrot.slane %v995_v2, %v2274_v0  ;;  %v1028_v8 = vcombine.low %v1019_v61, %v1027_v4  ;;  %v1029_v9 = vcombine.high %v1019_v61, %v1027_v4 }
 0x4cb   : > { %v2084_v10 = vpop.eup %2083  ;;  %v1010_v11 = vcombine.high %v1002_v5, %v2122_v13  ;;  %v1011_v12 = vcombine.high %v1009_v7, %v2122_v13  ;;  %v1036_v14 = vrot.slane %v1028_v8, %v2274_v0  ;;  %v1043_v15 = vrot.slane %v1029_v9, %v2274_v0 }
 0x4cc   : > { %v1050_v16 = vshrl.u32 %v1002_v5, 16  ;;  %v1366_v17 = vmul.f32 %v2084_v10, %v1352_v54  ;;  %v1066_v19 = vshrl.u32 %v1009_v7, 16 }
 0x4cd   : > { %v1044_v20 = vcombine.high %v1036_v14, %v2122_v13  ;;  %v1045_v21 = vcombine.high %v1043_v15, %v2122_v13  ;;  %v2086_v22 = vpop.eup %2085  ;;  %v1048_v23 = vpack.i.b16 %v1036_v14, %v1002_v5  ;;  %v1051_v24 = vshrl.u32 %v1036_v14, 16 }
 0x4ce   : > { %v1064_v25 = vpack.i.b16 %v1043_v15, %v1009_v7  ;;  %v1067_v26 = vshrl.u32 %v1043_v15, 16  ;;  %v1058_v27 = vshrl.u32 %v1010_v11, 16  ;;  %v1074_v28 = vshrl.u32 %v1011_v12, 16 }
 0x4cf   : > { %v1056_v29 = vpack.i.b16 %v1044_v20, %v1010_v11  ;;  %v1059_v30 = vshrl.u32 %v1044_v20, 16  ;;  %v1052_v31 = vpack.i.b16 %v1051_v24, %v1050_v16  ;;  %v1072_v33 = vpack.i.b16 %v1045_v21, %v1011_v12 }
 0x4d0   : > { %v1068_v32 = vpack.i.b16 %v1067_v26, %v1066_v19  ;;  %v1075_v34 = vshrl.u32 %v1045_v21, 16  ;;  %v1367_v35 = vmul.f32 %v2086_v22, %v1355_v55  ;;  %v1078_v37 = vcombine.low %v1048_v23, %v1064_v25 }
 0x4d1   : > { %v1060_v36 = vpack.i.b16 %v1059_v30, %v1058_v27  ;;  %v1086_v39 = vcombine.low %v1056_v29, %v1072_v33  ;;  %v1370_v42 = vsub.f32 2.0, %v1366_v17 }
 0x4d2   : > { %v1076_v38 = vpack.i.b16 %v1075_v34, %v1074_v28  ;;  %v1103_v40 = vcombine.low %v1052_v31, %v1068_v32  ;;  %v1085_v63 = vrot.slane %v1078_v37, %v2268_v60  ;;  %v1371_v46 = vsub.f32 2.0, %v1367_v35 }
 0x4d3   : > { %v1093_v44 = vrot.slane %v1086_v39, %v2268_v60  ;;  %v1374_v52 = vmul.f32 %v2084_v10, %v1370_v42 }
 0x4d4   : > { %v1111_v62 = vcombine.low %v1060_v36, %v1076_v38  ;;  %v1110_v48 = vrot.slane %v1103_v40, %v2268_v60  ;;  %v1375_v53 = vmul.f32 %v2086_v22, %v1371_v46 }
 0x4d5   : > { %v1094_v47 = vcombine.low %v1085_v63, %v1093_v44  ;;  %v1378_v56 = vmul.f32 %v2351_v41, %v1374_v52 }
 0x4d6   : > { %v1118_v49 = vrot.slane %v1111_v62, %v2268_v60  ;;  %v1379_v1 = vmul.f32 %v2355_v43, %v1375_v53 }
 0x4d7   : > { %v1101_v6 = vrot.slane %v1094_v47, %v2274_v0  ;;  %v1382_v9 = vpack.c.bf16 %v1378_v56, %v1378_v56 }
 0x4d8   : > { %v1119_v45 = vcombine.low %v1110_v48, %v1118_v49  ;;  %v1383_v11 = vpack.c.bf16 %v1379_v1, %v1379_v1 }
 0x4d9   : > { %v1102_v55 = vcombine.high %v1101_v6, %v2122_v13  ;;  %v1131_v58 = vshrl.u32 %v1101_v6, 16 }
 0x4da   : > { %v1126_v54 = vrot.slane %v1119_v45, %v2274_v0 }
 0x4db   : > { %v1137_v2 = vshrl.u32 %v1102_v55, 16 }
 0x4dc   : > { %v1130_v57 = vpack.i.b16 %v1126_v54, %v1101_v6  ;;  %v1132_v59 = vshrl.u32 %v1126_v54, 16  ;;  %v1127_v61 = vcombine.high %v1126_v54, %v2122_v13 }
 0x4de   : > { %v1391_v4 = vsel %vm1389_vm3, %v1130_v57, 0  ;;  %v1133_v5 = vpack.i.b16 %v1132_v59, %v1131_v58  ;;  %v1136_v7 = vpack.i.b16 %v1127_v61, %v1102_v55  ;;  %v1138_v8 = vshrl.u32 %v1127_v61, 16  ;;  %v2069_v55 = vld [vmem:[%s2461_s9] sm:$0xff]  }
 0x4df   : > { %1998 = vmatpush3.bf16.msra.mxu0 %v1391_v4 }
 0x4e0   : > { %v1437_v10 = vsel %vm1389_vm3, %v1133_v5, 0  ;;  %2009 = vmatprep.subr.bf16.mxu0 %v2115_v18  ;;  %v1139_v41 = vpack.i.b16 %v1138_v8, %v1137_v2  ;;  %v1483_v13 = vsel %vm1389_vm3, %v1136_v7, 0 }
 0x4e1   : > { %2004 = vmatpush3.bf16.msra.mxu1 %v1437_v10  ;;  %v2070_v10 = vld [vmem:[%s2461_s9 + $0x8] sm:$0xff]  }
 0x4e2   : > { %2000 = vmatmul.mubr.msk.bf16.vlgmr.msra.gmra.mrb[12].mxu0 %vm1141_vm2, %v1382_v9  ;;  %2015 = vmatprep.subr.bf16.mxu1 %v2115_v18  ;;  %v1529_v43 = vsel %vm1389_vm3, %v1139_v41, 0 }
 0x4e3   : > { %2010 = vmatpush3.bf16.msra.mxu0 %v1483_v13  ;;  %2011 = vmatprep.mubr.msk.bf16.mxu0 %vm2116_vm1, %v2115_v18 }
 0x4e4   : > { %2006 = vmatmul.mubr.msk.bf16.vlgmr.msra.gmra.mrb[12].mxu1 %vm1141_vm2, %v1383_v11  ;;  %2021 = vmatprep.subr.bf16.mxu0 %v2115_v18 }
 0x4e5   : > { %2016 = vmatpush3.bf16.msra.mxu1 %v1529_v43  ;;  %2017 = vmatprep.mubr.msk.bf16.mxu1 %vm2116_vm1, %v2115_v18 }
 0x4f5   : > { %v1358_v12 = vpop.xlane.xlu0 %1357 }
 0x4f6   : > { %2087 = vrcp.f32 %v1358_v12 }
 0x4f7   : > { %v1361_v14 = vpop.xlane.xlu1 %1360 }
 0x4f8   : > { %2089 = vrcp.f32 %v1361_v14 }
 0x500   : > { %v2088_v15 = vpop.eup %2087 }
 0x501   : > { %v1368_v16 = vmul.f32 %v2088_v15, %v1358_v12 }
 0x502   : > { %v2090_v17 = vpop.eup %2089 }
 0x503   : > { %v1372_v19 = vsub.f32 2.0, %v1368_v16  ;;  %v1369_v20 = vmul.f32 %v2090_v17, %v1361_v14 }
 0x505   : > { %v1376_v21 = vmul.f32 %v2088_v15, %v1372_v19  ;;  %v1373_v22 = vsub.f32 2.0, %v1369_v20 }
 0x507   : > { %v1380_v23 = vmul.f32 %v2361_v50, %v1376_v21  ;;  %v1377_v24 = vmul.f32 %v2090_v17, %v1373_v22 }
 0x509   : > { %v1384_v25 = vpack.c.bf16 %v1380_v23, %v1380_v23  ;;  %v1381_v26 = vmul.f32 %v2363_v51, %v1377_v24 }
 0x50b   : > { %v1385_v27 = vpack.c.bf16 %v1381_v26, %v1381_v26  ;;  %2012 = vmatmul.mubr.msk.bf16.vlgmr.msra.gmra.mrb[16].mxu0 %vm1141_vm2, %v1384_v25  ;;  %v1926_v26 = vld [vmem:[%s2462_s10] ss:$0 sm:$0xff] }
 0x50c   : > { %2025 = vmatprep.mubr.msk.bf16.mxu0 %vm2116_vm1, %v2115_v18  ;;  %2022 = vmatpush3.bf16.msra.mxu0 %v2069_v55 }
 0x50d   : > { %2018 = vmatmul.mubr.msk.bf16.vlgmr.msra.gmra.mrb[16].mxu1 %vm1141_vm2, %v1385_v27  ;;  %2023 = vmatprep.subr.bf16.mxu0 %v2115_v18 }
 0x510   : > { %2024 = vmatpush3.bf16.msra.mxu0 %v2070_v10 }
 0x5b5   : > { %v1427_v28 = vpop.f32.mrb[12].mxu0 }
 0x5b6   : > { %v2001_v29 = vpop.f32.mrb[13].mxu0 }
 0x5b7   : > { %v1430_v30 = vpop.f32.mrb[14].mxu0  ;;  %v1473_v31 = vpop.f32.mrb[12].mxu1 }
 0x5b8   : > { %v2002_v32 = vpop.f32.mrb[15].mxu0  ;;  %v2007_v33 = vpop.f32.mrb[13].mxu1 }
 0x5b9   : > { %v1476_v34 = vpop.f32.mrb[14].mxu1 }
 0x5ba   : > { %v2008_v50 = vpop.f32.mrb[15].mxu1 }
 0x5de   : > { %v1519_v35 = vpop.f32.mrb[16].mxu0 }
 0x5df   : > { %v1571_v36 = vcombine.low %v1427_v28, %v1519_v35  ;;  %v1572_v37 = vcombine.high %v1427_v28, %v1519_v35  ;;  %v2013_v51 = vpop.f32.mrb[17].mxu0 }
 0x5e0   : > { %v1522_v38 = vpop.f32.mrb[18].mxu0  ;;  %v1565_v39 = vpop.f32.mrb[16].mxu1 }
 0x5e1   : > { %v1587_v40 = vcombine.low %v1473_v31, %v1565_v39  ;;  %v1588_v42 = vcombine.high %v1473_v31, %v1565_v39  ;;  %v2014_v63 = vpop.f32.mrb[19].mxu0  ;;  %v2019_v62 = vpop.f32.mrb[17].mxu1  ;;  %v1579_v46 = vrot.slane %v1571_v36, %v2268_v60  ;;  %v1586_v47 = vrot.slane %v1572_v37, %v2268_v60 }
 0x5e2   : > { %v1568_v44 = vpop.f32.mrb[18].mxu1 }
 0x5e3   : > { %v1595_v48 = vrot.slane %v1587_v40, %v2268_v60  ;;  %v1602_v49 = vrot.slane %v1588_v42, %v2268_v60  ;;  %v2020_v52 = vpop.f32.mrb[19].mxu1 }
 0x5e5   : > { %v1603_v6 = vcombine.low %v1579_v46, %v1595_v48  ;;  %v1604_v45 = vcombine.high %v1579_v46, %v1595_v48  ;;  %v1619_v53 = vcombine.low %v1586_v47, %v1602_v49  ;;  %v1620_v54 = vcombine.high %v1586_v47, %v1602_v49 }
 0x5e7   : > { %v1611_v56 = vrot.slane %v1603_v6, %v2274_v0  ;;  %v1618_v57 = vrot.slane %v1604_v45, %v2274_v0  ;;  %v1627_v58 = vrot.slane %v1619_v53, %v2274_v0  ;;  %v1634_v59 = vrot.slane %v1620_v54, %v2274_v0 }
 0x5e9   : > { %v1639_v61 = vcombine.low %v1611_v56, %v1618_v57  ;;  %v1924_v1 = vcombine.high %v1611_v56, %v1618_v57  ;;  %v1655_v2 = vcombine.low %v1627_v58, %v1634_v59  ;;  %v1925_v4 = vcombine.high %v1627_v58, %v1634_v59 }
 0x5eb   : > { %v1646_v5 = vrot.slane %v1639_v61, %v2268_v60  ;;  %v1654_v7 = vrot.slane %v1924_v1, %v2268_v60  ;;  %v1662_v8 = vrot.slane %v1655_v2, %v2268_v60  ;;  %v1670_v9 = vrot.slane %v1925_v4, %v2268_v60 }
 0x5ed   : > { %v1672_v41 = vcombine.high %v1646_v5, %v1654_v7  ;;  %v1688_v11 = vcombine.high %v1662_v8, %v1670_v9  ;;  %v1671_v13 = vcombine.low %v1646_v5, %v1654_v7  ;;  %v1687_v43 = vcombine.low %v1662_v8, %v1670_v9 }
 0x5ef   : > { %v1686_v12 = vrot.slane %v1672_v41, %v2274_v0  ;;  %v1702_v18 = vrot.slane %v1688_v11, %v2274_v0  ;;  %v1679_v14 = vrot.slane %v1671_v13, %v2274_v0  ;;  %v1695_v15 = vrot.slane %v1687_v43, %v2274_v0 }
 0x5f1   : > { %v1705_v16 = vcombine.low %v1686_v12, %v1702_v18  ;;  %v1704_v17 = vcombine.high %v1679_v14, %v1695_v15  ;;  %v1706_v60 = vcombine.high %v1686_v12, %v1702_v18  ;;  %v1703_v19 = vcombine.low %v1679_v14, %v1695_v15 }
 0x5f3   : > { %1712 = vrot.lane.b32.xlu1 %v1705_v16, %s2124_s24  ;;  %1708 = vrot.lane.b32.xlu0 %v1704_v17, %s2125_s25 }
 0x5f7   : > { %1716 = vrot.lane.b32.xlu0 %v1706_v60, %s2126_s26 }
 0x665   : > { %v1709_v20 = vpop.permute.xlu0 %1708  ;;  %v1713_v21 = vpop.permute.xlu1 %1712 }
 0x666   : > { %v1719_v22 = vsel %vm1141_vm2, %v1703_v19, %v1709_v20 }
 0x667   : > { %v1721_v24 = vsel %vm1720_vm4, %v1719_v22, %v1713_v21 }
 0x669   : > { %v1717_v23 = vpop.permute.xlu0 %1716 }
 0x66a   : > { %v1723_v0 = vsel %vm1722_vm5, %v1721_v24, %v1717_v23 }
 0x66b   : > { %v1724_v25 = vpack.c.bf16 %v1723_v0, %v1723_v0 }
 0x66d   : > { %2026 = vmatmul.mubr.msk.bf16.vlgmr.msra.gmra.mrb[20].mxu0 %vm452_vm0, %v1724_v25 }
 0x740   : > { %v1785_v27 = vpop.f32.mrb[20].mxu0 }
 0x741   : > { %v1786_v28 = vadd.f32 %v1926_v26, %v1785_v27  ;;  %v2027_v29 = vpop.f32.mrb[21].mxu0 }
 0x742   : > { %v1788_v30 = vpop.f32.mrb[22].mxu0 }
 0x743   : > { %v1791_v31 = vadd.f32 %v1786_v28, %v2215_v3  ;;  %v2028_v32 = vpop.f32.mrb[23].mxu0 }
 0x745   : > { %v1792_v33 = vpack.c.bf16 %v1791_v31, %v1791_v31 }
 0x747   : > { %1794 = vst.msk [vmem:[%s446_s12] sm:$0xf] %vm1793_vm6, %v1792_v33 }
 0x748 PF: > { %s21_s19 = sadd.s32 1, %s2113_s19   ;;  %s2464_s17 = smov %s2109_s18 }
 0x749   : > { %p18_p5 = scmp.ge.s32.totalorder %s21_s19, 4   ;;  %s2465_s18 = smov %s2467_s20 }
 0x74b   :  { %20 = sbr.rel (!%p18_p5) target bundleno = 2 (0x2), region = 100 }

// kernel: transformer_decoder_forward.10
= control target key start
LH: loop header
LB: loop body
LE: loop exit
PB: predicated region body
PF: predicated region fallthrough
CT: control target
= control target key end

     0   :  { %vm33_vm0 = vcmask 261120   ;;  %v346_v19 = vmov 0.0   ;;  %vm347_vm1 = vmmov 0   ;;  %vm196_vm2 = vcmask 523264   ;;  %s436_s0 = inlined_call_operand.vmem [shape: bf16[16,32], index: 0, kind: input, shape index: {}]   ;;  %s437_s6 = inlined_call_operand.vmem [shape: f32[1,32], index: 6, kind: input, shape index: {}]   ;;  %s438_s3 = inlined_call_operand.vmem [shape: bf16[32,64], index: 3, kind: input, shape index: {}]   ;;  %s439_s1 = inlined_call_operand.vmem [shape: f32[1,32], index: 1, kind: input, shape index: {}]   ;;  %s440_s2 = inlined_call_operand.vmem [shape: f32[1,32], index: 2, kind: input, shape index: {}]   ;;  %s441_s5 = inlined_call_operand.vmem [shape: bf16[64,32], index: 5, kind: input, shape index: {}]   ;;  %s442_s4 = inlined_call_operand.vmem [shape: f32[1,64], index: 4, kind: input, shape index: {}]   ;;  %s443_s7 = inlined_call_operand.vmem [shape: bf16[16,32], index: 7, kind: output, shape index: {}]  }
   0x1   :  { %v299_v0 = vld [vmem:[%s436_s0] sm:$0xff]   ;;  %310 = vmatprep.subr.bf16.mxu0 %v346_v19  ;;  %318 = vmatprep.subr.bf16.mxu1 %v346_v19  ;;  %v333_v20 = vld [vmem:[%s438_s3 + $0x8] sm:$0xff]   ;;  %v336_v40 = vld [vmem:[%s441_s5 + $0x10] sm:$0xff]   ;;  %vm275_vm3 = vcmask 257024  }
   0x2   :  { %v293_v1 = vld [vmem:[%s437_s6] ss:$0 sm:$0xff]  ;;  %v300_v2 = vunpack.c.l.bf16 %v299_v0  ;;  %v301_v3 = vunpack.c.h.bf16 %v299_v0  ;;  %314 = vmatprep.mubr.msk.bf16.mxu0 %vm347_vm1, %v346_v19  ;;  %326 = vmatprep.mubr.msk.bf16.mxu1 %vm347_vm1, %v346_v19  ;;  %v335_v39 = vld [vmem:[%s441_s5 + $0x8] sm:$0xff]   ;;  %v337_v41 = vld [vmem:[%s441_s5 + $0x18] sm:$0xff]  }
   0x3   :  { %v332_v18 = vld [vmem:[%s438_s3] sm:$0xff]  }
   0x4   :  { %v34_v4 = vsel %vm33_vm0, %v300_v2, 0.0  ;;  %v252_v5 = vadd.f32 %v300_v2, %v293_v1  ;;  %v253_v6 = vadd.f32 %v301_v3, %v293_v1  ;;  %v37_v7 = vsel %vm33_vm0, %v301_v3, 0.0  ;;  %311 = vmatpush3.bf16.msra.mxu0 %v332_v18  ;;  %v282_v29 = vld [vmem:[%s439_s1] ss:$0 sm:$0xff] }
   0x5   :  { %35 = vadd.xlane.f32.xlu0 %v34_v4  ;;  %312 = vmatprep.subr.bf16.mxu0 %v346_v19  ;;  %v283_v33 = vld [vmem:[%s440_s2] ss:$0 sm:$0xff] }
   0x6   :  { %254 = vst.msk [vmem:[#allocation2] sm:$0xff] %vm33_vm0, %v252_v5  ;;  %255 = vst.msk [vmem:[#allocation2 + $0x8] sm:$0xff] %vm33_vm0, %v253_v6  ;;  %v334_v38 = vld [vmem:[%s441_s5] sm:$0xff]  }
   0x7   :  { %319 = vmatpush3.bf16.msra.mxu1 %v334_v38  ;;  %v284_v42 = vld [vmem:[%s442_s4] ss:$0 sm:$0xff] }
   0x8   :  { %313 = vmatpush3.bf16.msra.mxu0 %v333_v20  ;;  %320 = vmatprep.subr.bf16.mxu1 %v346_v19 }
   0x9   :  { %38 = vadd.xlane.f32.xlu0 %v37_v7 }
   0xb   :  { %321 = vmatpush3.bf16.msra.mxu1 %v335_v39 }
   0xc   :  { %322 = vmatprep.subr.bf16.mxu1 %v346_v19 }
   0xd   :  { %v256_v4 = vld [vmem:[#allocation2] sm:$0xff]  ;;  %v257_v6 = vld [vmem:[#allocation2 + $0x8] sm:$0xff] }
   0xf   :  { %323 = vmatpush3.bf16.msra.mxu1 %v336_v40 }
  0x10   :  { %324 = vmatprep.subr.bf16.mxu1 %v346_v19 }
  0x13   :  { %325 = vmatpush3.bf16.msra.mxu1 %v337_v41 }
  0x92   :  { %v36_v8 = vpop.xlane.xlu0 %35 }
  0x93   :  { %v41_v9 = vmul.f32 0.03125, %v36_v8 }
  0x95   :  { %v43_v10 = vsub.f32 %v300_v2, %v41_v9 }
  0x96   :  { %v39_v11 = vpop.xlane.xlu0 %38 }
  0x97   :  { %v42_v12 = vmul.f32 0.03125, %v39_v11  ;;  %v45_v13 = vmul.f32 %v43_v10, %v43_v10 }
  0x99   :  { %v44_v14 = vsub.f32 %v301_v3, %v42_v12  ;;  %v47_v15 = vsel %vm33_vm0, %v45_v13, 0.0 }
  0x9a   :  { %48 = vadd.xlane.f32.xlu1 %v47_v15 }
  0x9b   :  { %v46_v16 = vmul.f32 %v44_v14, %v44_v14 }
  0x9d   :  { %v50_v17 = vsel %vm33_vm0, %v46_v16, 0.0 }
  0x9e   :  { %51 = vadd.xlane.f32.xlu1 %v50_v17 }
 0x127   :  { %v49_v21 = vpop.xlane.xlu1 %48 }
 0x128   :  { %v53_v22 = vmul.f32 0.03125, %v49_v21 }
 0x12a   :  { %v55_v23 = vadd.f32 1e-06, %v53_v22 }
 0x12b   :  { %v52_v24 = vpop.xlane.xlu1 %51 }
 0x12c   :  { %338 = vrsqrt.f32 %v55_v23  ;;  %v54_v25 = vmul.f32 0.03125, %v52_v24 }
 0x12e   :  { %v56_v26 = vadd.f32 1e-06, %v54_v25 }
 0x130   :  { %340 = vrsqrt.f32 %v56_v26 }
 0x136   :  { %v339_v27 = vpop.eup %338 }
 0x137   :  { %v59_v28 = vmul.f32 %v339_v27, %v43_v10 }
 0x139   :  { %v67_v32 = vmul.f32 %v282_v29, %v59_v28 }
 0x13a   :  { %v341_v30 = vpop.eup %340 }
 0x13b   :  { %v60_v31 = vmul.f32 %v341_v30, %v44_v14  ;;  %v75_v35 = vadd.f32 %v283_v33, %v67_v32 }
 0x13d   :  { %v68_v34 = vmul.f32 %v282_v29, %v60_v31 }
 0x13f   :  { %v76_v36 = vadd.f32 %v283_v33, %v68_v34 }
 0x141   :  { %v77_v37 = vpack.c.bf16 %v76_v36, %v75_v35 }
 0x143   :  { %315 = vmatmul.mubr.msk.bf16.vlgmr.msra.gmra.mrb[0].mxu0 %vm33_vm0, %v77_v37 }
 0x216   :  { %v138_v43 = vpop.f32.mrb[0].mxu0 }
 0x217   :  { %v139_v44 = vadd.f32 %v284_v42, %v138_v43  ;;  %v316_v45 = vpop.f32.mrb[1].mxu0 }
 0x218   :  { %v141_v46 = vpop.f32.mrb[2].mxu0 }
 0x219   :  { %v147_v47 = vmul.f32 0.044715, %v139_v44  ;;  %v142_v48 = vadd.f32 %v284_v42, %v141_v46  ;;  %v317_v49 = vpop.f32.mrb[3].mxu0  ;;  %v145_v62 = vmul.f32 0.5, %v139_v44 }
 0x21b   :  { %v149_v50 = vmul.f32 %v147_v47, %v139_v44  ;;  %v148_v51 = vmul.f32 0.044715, %v142_v48  ;;  %v146_v63 = vmul.f32 0.5, %v142_v48 }
 0x21d   :  { %v151_v52 = vmul.f32 %v149_v50, %v139_v44  ;;  %v150_v53 = vmul.f32 %v148_v51, %v142_v48 }
 0x21f   :  { %v153_v54 = vadd.f32 %v151_v52, %v139_v44  ;;  %v152_v55 = vmul.f32 %v150_v53, %v142_v48 }
 0x221   :  { %v155_v56 = vmul.f32 0.7978846, %v153_v54  ;;  %v154_v57 = vadd.f32 %v152_v55, %v142_v48 }
 0x223   :  { %342 = vtanh.f32 %v155_v56  ;;  %v156_v58 = vmul.f32 0.7978846, %v154_v57 }
 0x225   :  { %344 = vtanh.f32 %v156_v58 }
 0x22d   :  { %v343_v59 = vpop.eup %342 }
 0x22e   :  { %v159_v60 = vadd.f32 1.0, %v343_v59 }
 0x22f   :  { %v345_v61 = vpop.eup %344 }
 0x230   :  { %v160_v0 = vadd.f32 1.0, %v345_v61  ;;  %v161_v1 = vmul.f32 %v159_v60, %v145_v62 }
 0x232   :  { %v162_v2 = vmul.f32 %v160_v0, %v146_v63 }
 0x234   :  { %v163_v3 = vpack.c.bf16 %v162_v2, %v161_v1 }
 0x236   :  { %327 = vmatmul.mubr.msk.bf16.vlgmr.msra.gmra.mrb[0].mxu1 %vm196_vm2, %v163_v3 }
 0x309   :  { %v234_v5 = vpop.f32.mrb[0].mxu1 }
 0x30a   :  { %v258_v7 = vadd.f32 %v256_v4, %v234_v5  ;;  %v328_v8 = vpop.f32.mrb[1].mxu1 }
 0x30b   :  { %v237_v9 = vpop.f32.mrb[2].mxu1 }
 0x30c   :  { %260 = vst.msk [vmem:[#allocation2] sm:$0xff] %vm33_vm0, %v258_v7  ;;  %v259_v10 = vadd.f32 %v257_v6, %v237_v9  ;;  %v329_v11 = vpop.f32.mrb[3].mxu1 }
 0x30e   :  { %261 = vst.msk [vmem:[#allocation2 + $0x8] sm:$0xff] %vm33_vm0, %v259_v10 }
 0x313   :  { %v265_v12 = vld [vmem:[#allocation2] sm:$0xff] }
 0x314   :  { %v296_v13 = vpack.c.bf16 %v265_v12, %v265_v12 }
 0x315   :  { %v266_v14 = vld [vmem:[#allocation2 + $0x8] sm:$0xff] }
 0x316   :  { %276 = vst.msk [vmem:[%s443_s7] sm:$0xf] %vm275_vm3, %v296_v13  ;;  %v297_v15 = vpack.c.bf16 %v266_v14, %v266_v14 }
 0x318   :  { %277 = vst.msk [vmem:[%s443_s7 + $0x4] sm:$0xf] %vm275_vm3, %v297_v15 }

// kernel: transformer_decoder_forward.13
= control target key start
LH: loop header
LB: loop body
LE: loop exit
PB: predicated region body
PF: predicated region fallthrough
CT: control target
= control target key end

     0   :  { %vm40_vm0 = vcmask 261120   ;;  %s550_s0 = inlined_call_operand.vmem [shape: bf16[16,32], index: 0, kind: input, shape index: {}]   ;;  %s551_s1 = inlined_call_operand.vmem [shape: f32[1,32], index: 1, kind: input, shape index: {}]   ;;  %s552_s2 = inlined_call_operand.vmem [shape: f32[1,32], index: 2, kind: input, shape index: {}]   ;;  %s553_s3 = inlined_call_operand.vmem [shape: bf16[32,64], index: 3, kind: input, shape index: {}]   ;;  %s554_s4 = inlined_call_operand.vmem [shape: f32[1,64], index: 4, kind: input, shape index: {}]   ;;  %s555_s5 = inlined_call_operand.vmem [shape: bf16[64,32], index: 5, kind: input, shape index: {}]   ;;  %s556_s6 = inlined_call_operand.vmem [shape: f32[1,32], index: 6, kind: input, shape index: {}]   ;;  %s557_s7 = inlined_call_operand.vmem [shape: f32[1,32], index: 7, kind: input, shape index: {}]   ;;  %s558_s8 = inlined_call_operand.vmem [shape: f32[1,32], index: 8, kind: input, shape index: {}]   ;;  %s559_s9 = inlined_call_operand.hbm [shape: f32[16,32], index: 9, kind: output, shape index: {}]  }
   0x1   :  { %v351_v0 = vld [vmem:[%s550_s0] sm:$0xff]  }
   0x2   :  { %v347_v1 = vld [vmem:[%s556_s6] ss:$0 sm:$0xff]  ;;  %v352_v2 = vunpack.c.l.bf16 %v351_v0  ;;  %v353_v3 = vunpack.c.h.bf16 %v351_v0 }
   0x4   :  { %v41_v4 = vsel %vm40_vm0, %v352_v2, 0.0  ;;  %v259_v5 = vadd.f32 %v352_v2, %v347_v1  ;;  %v260_v6 = vadd.f32 %v353_v3, %v347_v1  ;;  %v44_v7 = vsel %vm40_vm0, %v353_v3, 0.0 }
   0x5   :  { %42 = vadd.xlane.f32.xlu0 %v41_v4 }
   0x6   :  { %261 = vst.msk [vmem:[#allocation2] sm:$0xff] %vm40_vm0, %v259_v5  ;;  %262 = vst.msk [vmem:[#allocation2 + $0x8] sm:$0xff] %vm40_vm0, %v260_v6 }
   0x7   :  { %14 = vsyncpa [#allocation4], 0  ;;  %v387_v18 = vld [vmem:[%s553_s3] sm:$0xff]   ;;  %v429_v19 = vmov 0.0   ;;  %v388_v20 = vld [vmem:[%s553_s3 + $0x8] sm:$0xff]   ;;  %vm430_vm1 = vmmov 0  }
   0x8   :  { %362 = vmatprep.subr.bf16.mxu0 %v429_v19  ;;  %370 = vmatprep.subr.bf16.mxu1 %v429_v19  ;;  %v336_v29 = vld [vmem:[%s551_s1] ss:$0 sm:$0xff]  ;;  %v390_v39 = vld [vmem:[%s555_s5 + $0x8] sm:$0xff]   ;;  %v391_v40 = vld [vmem:[%s555_s5 + $0x10] sm:$0xff]   ;;  %vm203_vm2 = vcmask 523264   ;;  %s431_s28 = smov [#allocation3]  }
   0x9   :  { %45 = vadd.xlane.f32.xlu0 %v44_v7  ;;  %363 = vmatpush3.bf16.msra.mxu0 %v387_v18  ;;  %v337_v33 = vld [vmem:[%s552_s2] ss:$0 sm:$0xff]  ;;  %v392_v41 = vld [vmem:[%s555_s5 + $0x18] sm:$0xff]   ;;  %s325_s29 = sshll.u32 %s431_s28, 4  ;;  %s326_s29 = int_to_ptr.vmem [resolvable:$true] %s325_s29 }
   0xa   :  { %366 = vmatprep.mubr.msk.bf16.mxu0 %vm430_vm1, %v429_v19  ;;  %364 = vmatprep.subr.bf16.mxu0 %v429_v19  ;;  %v389_v38 = vld [vmem:[%s555_s5] sm:$0xff]   ;;  %s405_s30 = scalar_lea.vmem %s326_s29, 256  ;;  %p410_p1 = scmp.lt.s32.totalorder %s326_s29, %s326_s29 }
   0xb   :  { %378 = vmatprep.mubr.msk.bf16.mxu1 %vm430_vm1, %v429_v19  ;;  %371 = vmatpush3.bf16.msra.mxu1 %v389_v38  ;;  %v338_v42 = vld [vmem:[%s554_s4] ss:$0 sm:$0xff]  ;;  %p406_p0 = scmp.ne.s32.totalorder %s326_s29, %s405_s30  ;;  %p411_p2 = scmp.lt.s32.totalorder %s405_s30, %s405_s30 }
   0xc   :  { %372 = vmatprep.subr.bf16.mxu1 %v429_v19 }
   0xd   :  { %365 = vmatpush3.bf16.msra.mxu0 %v388_v20  ;;  %v263_v4 = vld [vmem:[#allocation2] sm:$0xff]  ;;  %v264_v6 = vld [vmem:[#allocation2 + $0x8] sm:$0xff]  ;;  %p412_p3 = por %p411_p2, %p410_p1 }
   0xf   :  { %373 = vmatpush3.bf16.msra.mxu1 %v390_v39  ;;  %p413_p4 = pnand %p412_p3, %p406_p0 }
  0x10   :  { %374 = vmatprep.subr.bf16.mxu1 %v429_v19 }
  0x13   :  { %375 = vmatpush3.bf16.msra.mxu1 %v391_v40 }
  0x14   :  { %376 = vmatprep.subr.bf16.mxu1 %v429_v19 }
  0x17   :  { %377 = vmatpush3.bf16.msra.mxu1 %v392_v41 }
  0x92   :  { %v43_v8 = vpop.xlane.xlu0 %42 }
  0x93   :  { %v48_v9 = vmul.f32 0.03125, %v43_v8 }
  0x95   :  { %v50_v10 = vsub.f32 %v352_v2, %v48_v9 }
  0x96   :  { %v46_v11 = vpop.xlane.xlu0 %45 }
  0x97   :  { %v49_v12 = vmul.f32 0.03125, %v46_v11  ;;  %v52_v13 = vmul.f32 %v50_v10, %v50_v10 }
  0x99   :  { %v51_v14 = vsub.f32 %v353_v3, %v49_v12  ;;  %v54_v15 = vsel %vm40_vm0, %v52_v13, 0.0 }
  0x9a   :  { %55 = vadd.xlane.f32.xlu1 %v54_v15 }
  0x9b   :  { %v53_v16 = vmul.f32 %v51_v14, %v51_v14 }
  0x9d   :  { %v57_v17 = vsel %vm40_vm0, %v53_v16, 0.0 }
  0x9e   :  { %58 = vadd.xlane.f32.xlu1 %v57_v17 }
 0x127   :  { %v56_v21 = vpop.xlane.xlu1 %55 }
 0x128   :  { %v60_v22 = vmul.f32 0.03125, %v56_v21 }
 0x12a   :  { %v62_v23 = vadd.f32 1e-06, %v60_v22 }
 0x12b   :  { %v59_v24 = vpop.xlane.xlu1 %58 }
 0x12c   :  { %393 = vrsqrt.f32 %v62_v23  ;;  %v61_v25 = vmul.f32 0.03125, %v59_v24 }
 0x12e   :  { %v63_v26 = vadd.f32 1e-06, %v61_v25 }
 0x130   :  { %395 = vrsqrt.f32 %v63_v26 }
 0x136   :  { %v394_v27 = vpop.eup %393 }
 0x137   :  { %v66_v28 = vmul.f32 %v394_v27, %v50_v10 }
 0x139   :  { %v74_v32 = vmul.f32 %v336_v29, %v66_v28 }
 0x13a   :  { %v396_v30 = vpop.eup %395 }
 0x13b   :  { %v67_v31 = vmul.f32 %v396_v30, %v51_v14  ;;  %v82_v35 = vadd.f32 %v337_v33, %v74_v32 }
 0x13d   :  { %v75_v34 = vmul.f32 %v336_v29, %v67_v31 }
 0x13f   :  { %v83_v36 = vadd.f32 %v337_v33, %v75_v34  ;;  %v348_v33 = vld [vmem:[%s557_s7] ss:$0 sm:$0xff] }
 0x141   :  { %v84_v37 = vpack.c.bf16 %v83_v36, %v82_v35  ;;  %v349_v36 = vld [vmem:[%s558_s8] ss:$0 sm:$0xff] }
 0x143   :  { %367 = vmatmul.mubr.msk.bf16.vlgmr.msra.gmra.mrb[0].mxu0 %vm40_vm0, %v84_v37 }
 0x216   :  { %v145_v43 = vpop.f32.mrb[0].mxu0 }
 0x217   :  { %v146_v44 = vadd.f32 %v338_v42, %v145_v43  ;;  %v368_v45 = vpop.f32.mrb[1].mxu0 }
 0x218   :  { %v148_v46 = vpop.f32.mrb[2].mxu0 }
 0x219   :  { %v154_v47 = vmul.f32 0.044715, %v146_v44  ;;  %v149_v48 = vadd.f32 %v338_v42, %v148_v46  ;;  %v369_v49 = vpop.f32.mrb[3].mxu0  ;;  %v152_v62 = vmul.f32 0.5, %v146_v44 }
 0x21b   :  { %v156_v50 = vmul.f32 %v154_v47, %v146_v44  ;;  %v155_v51 = vmul.f32 0.044715, %v149_v48  ;;  %v153_v63 = vmul.f32 0.5, %v149_v48 }
 0x21d   :  { %v158_v52 = vmul.f32 %v156_v50, %v146_v44  ;;  %v157_v53 = vmul.f32 %v155_v51, %v149_v48 }
 0x21f   :  { %v160_v54 = vadd.f32 %v158_v52, %v146_v44  ;;  %v159_v55 = vmul.f32 %v157_v53, %v149_v48 }
 0x221   :  { %v162_v56 = vmul.f32 0.7978846, %v160_v54  ;;  %v161_v57 = vadd.f32 %v159_v55, %v149_v48 }
 0x223   :  { %397 = vtanh.f32 %v162_v56  ;;  %v163_v58 = vmul.f32 0.7978846, %v161_v57 }
 0x225   :  { %399 = vtanh.f32 %v163_v58 }
 0x22d   :  { %v398_v59 = vpop.eup %397 }
 0x22e   :  { %v166_v60 = vadd.f32 1.0, %v398_v59 }
 0x22f   :  { %v400_v61 = vpop.eup %399 }
 0x230   :  { %v167_v0 = vadd.f32 1.0, %v400_v61  ;;  %v168_v1 = vmul.f32 %v166_v60, %v152_v62 }
 0x232   :  { %v169_v2 = vmul.f32 %v167_v0, %v153_v63 }
 0x234   :  { %v170_v3 = vpack.c.bf16 %v169_v2, %v168_v1 }
 0x236   :  { %379 = vmatmul.mubr.msk.bf16.vlgmr.msra.gmra.mrb[0].mxu1 %vm203_vm2, %v170_v3 }
 0x309   :  { %v241_v5 = vpop.f32.mrb[0].mxu1 }
 0x30a   :  { %v265_v7 = vadd.f32 %v263_v4, %v241_v5  ;;  %v380_v8 = vpop.f32.mrb[1].mxu1 }
 0x30b   :  { %v244_v9 = vpop.f32.mrb[2].mxu1 }
 0x30c   :  { %267 = vst.msk [vmem:[#allocation2] sm:$0xff] %vm40_vm0, %v265_v7  ;;  %v266_v10 = vadd.f32 %v264_v6, %v244_v9  ;;  %v381_v11 = vpop.f32.mrb[3].mxu1 }
 0x30e   :  { %268 = vst.msk [vmem:[#allocation2 + $0x8] sm:$0xff] %vm40_vm0, %v266_v10 }
 0x313   :  { %v272_v12 = vld [vmem:[#allocation2] sm:$0xff] }
 0x314   :  { %v276_v13 = vsel %vm40_vm0, %v272_v12, 0.0 }
 0x315   :  { %277 = vadd.xlane.f32.xlu0 %v276_v13  ;;  %v273_v14 = vld [vmem:[#allocation2 + $0x8] sm:$0xff] }
 0x316   :  { %v279_v15 = vsel %vm40_vm0, %v273_v14, 0.0 }
 0x317   :  { %280 = vadd.xlane.f32.xlu1 %v279_v15 }
 0x3a2   :  { %v278_v16 = vpop.xlane.xlu0 %277 }
 0x3a3   :  { %v282_v17 = vmul.f32 0.03125, %v278_v16 }
 0x3a4   :  { %v281_v18 = vpop.xlane.xlu1 %280 }
 0x3a5   :  { %v284_v19 = vsub.f32 %v272_v12, %v282_v17  ;;  %v283_v20 = vmul.f32 0.03125, %v281_v18 }
 0x3a7   :  { %v285_v21 = vsub.f32 %v273_v14, %v283_v20  ;;  %v286_v22 = vmul.f32 %v284_v19, %v284_v19 }
 0x3a9   :  { %v288_v23 = vsel %vm40_vm0, %v286_v22, 0.0  ;;  %v287_v24 = vmul.f32 %v285_v21, %v285_v21 }
 0x3aa   :  { %289 = vadd.xlane.f32.xlu0 %v288_v23 }
 0x3ab   :  { %v291_v25 = vsel %vm40_vm0, %v287_v24, 0.0 }
 0x3ac   :  { %292 = vadd.xlane.f32.xlu1 %v291_v25 }
 0x437   :  { %v290_v26 = vpop.xlane.xlu0 %289 }
 0x438   :  { %v294_v27 = vmul.f32 0.03125, %v290_v26 }
 0x439   :  { %v293_v28 = vpop.xlane.xlu1 %292 }
 0x43a   :  { %v296_v29 = vadd.f32 1e-06, %v294_v27  ;;  %v295_v30 = vmul.f32 0.03125, %v293_v28 }
 0x43c   :  { %401 = vrsqrt.f32 %v296_v29  ;;  %v297_v31 = vadd.f32 1e-06, %v295_v30 }
 0x43e   :  { %403 = vrsqrt.f32 %v297_v31 }
 0x446   :  { %v402_v32 = vpop.eup %401 }
 0x447   :  { %v300_v34 = vmul.f32 %v402_v32, %v284_v19 }
 0x448   :  { %v404_v35 = vpop.eup %403 }
 0x449   :  { %v301_v37 = vmul.f32 %v404_v35, %v285_v21  ;;  %v308_v38 = vmul.f32 %v348_v33, %v300_v34 }
 0x44b   :  { %v309_v39 = vmul.f32 %v348_v33, %v301_v37  ;;  %v316_v40 = vadd.f32 %v349_v36, %v308_v38 }
 0x44d   :  { %v317_v41 = vadd.f32 %v349_v36, %v309_v39  ;;  %318 = vst.msk [vmem:[#allocation3] sm:$0xff] %vm40_vm0, %v316_v40 }
 0x44f   :  { %319 = vst.msk [vmem:[#allocation3 + $0x8] sm:$0xff] %vm40_vm0, %v317_v41 }
 0x450   :  { %416 = shalt.err (!%p413_p4)
}
 0x451   :  { %s417_s10 = scalar_lea.hbm %s559_s9, 256 }
 0x452   :  { %p418_p5 = scmp.ne.s32.totalorder %s559_s9, %s417_s10  ;;  %p421_p6 = scmp.lt.u32.totalorder %s417_s10, %s559_s9 }
 0x454   :  { %p423_p7 = pnand %p421_p6, %p418_p5 }
 0x456   :  { %426 = shalt.err (!%p423_p7)
}
 0x457   :  { %s432_s13 = smov 128   ;;  %s433_s14 = smov 8  }
 0x458   :  { %331 = dma.vmem_to_hbm [thread:$0]  %s326_s29, 256, %s559_s9, [#allocation4], %s432_s13, %s432_s13, %s433_s14  }
 0x459   :  { %427 = dma.done.wait [#allocation4], 256  }
 0x45a   :  { %428 = vsyncadd [#allocation4], 4294967040 }
 0x45b   :  { %335 = vsyncpa [#allocation4], 1 }

</bundles_post_ra>
